<compile_context>
chip_gen: v7x
topology: tpu7x:2x2x1
jax: 0.10.0
libtpu: 0.0.40
codegen_flags: <defaults>
</compile_context>

<pallas_src>
import functools

import jax
import jax.numpy as jnp
from jax.experimental import pallas as pl
from jax.experimental.pallas import tpu as pltpu

HEAD_LANES = 128  # lane-padded width of the fused task-head output slab


# ---------------------------------------------------------------------------
# Fused forward kernel (whole Net forward in one pallas_call)
# ---------------------------------------------------------------------------
def _fused_forward_kernel(actions_ref,   # SMEM [B]        int32  (scalar prefetch)
                          patches_ref,   # VMEM [P, B, K]  bf16   im2col patches
                          wc_ref,        # VMEM [P, K, C]  bf16   conv weight (tiled over P)
                          bc_ref,        # VMEM [1, C]     f32
                          wfc_ref,       # VMEM [P, C, R]  bf16   FC weight, reshaped
                          bfc_ref,       # VMEM [1, R]     f32
                          emb_ref,       # VMEM [A, E]     f32    action embedding table
                          whf_ref,       # VMEM [R, 128]   bf16   head weights (feature rows)
                          whe_ref,       # VMEM [E, 128]   bf16   head weights (embedding rows)
                          bh_ref,        # VMEM [1, 128]   f32
                          out_ref,       # VMEM [B, 128]   f32    lane-dense fused head output
                          *, batch, num_classes, num_reg):
    # --- conv stem (3x3/s2) as a P-batched matmul over spatial positions ---------
    # conv[p, b, c] = sum_k patches[p, b, k] * Wc[k, c]
    conv = jnp.einsum("pbk,pkc->pbc", patches_ref[...], wc_ref[...],
                      preferred_element_type=jnp.float32)            # [P, B, C] f32
    conv = jnp.maximum(conv + bc_ref[...], 0.0)                      # bias + ReLU (f32)

    # --- FC over the flattened conv output, kept factored (no in-kernel reshape) --
    # feats[b, r] = sum_p sum_c conv[p, b, c] * Wfc[p, c, r]
    part = jnp.einsum("pbc,pcr->pbr", conv.astype(jnp.bfloat16), wfc_ref[...],
                      preferred_element_type=jnp.float32)            # [P, B, R] f32
    feats = jnp.maximum(jnp.sum(part, axis=0) + bfc_ref[...], 0.0)   # [B, R]

    # --- action embedding lookup from scalar-prefetched indices (SMEM) -----------
    emb = jnp.concatenate(
        [emb_ref[pl.ds(actions_ref[b], 1), :] for b in range(batch)], axis=0)  # [B, E]

    # --- both task heads in one lane-dense [B, 128] slab --------------------------
    # columns [0, NC) -> classifier logits, [NC, NC+NR) -> egomotion (tanh), rest pad
    y = (jnp.dot(feats.astype(jnp.bfloat16), whf_ref[...],
                 preferred_element_type=jnp.float32)
         + jnp.dot(emb.astype(jnp.bfloat16), whe_ref[...],
                   preferred_element_type=jnp.float32)
         + bh_ref[...])                                              # [B, 128] f32
    lane = jax.lax.broadcasted_iota(jnp.int32, y.shape, dimension=1)
    is_reg = (lane >= num_classes) & (lane < num_classes + num_reg)
    out_ref[...] = jnp.where(is_reg, jnp.tanh(y), y).astype(out_ref.dtype)


# ---------------------------------------------------------------------------
# XLA-side layout glue (pure data movement, fused by XLA into the input feed)
# ---------------------------------------------------------------------------
def _conv_out_hw(h, w, k=3, s=2, p=1):
    return (h + 2 * p - k) // s + 1, (w + 2 * p - k) // s + 1


def im2col_pbk(x_nhwc, kh, kw, stride, pad):
    """im2col with output layout [P, B, K], P = Ho*Wo, K = kh*kw*C."""
    B, H, W, C = x_nhwc.shape
    xp = jnp.pad(x_nhwc, ((0, 0), (pad, pad), (pad, pad), (0, 0)))
    Ho = (H + 2 * pad - kh) // stride + 1
    Wo = (W + 2 * pad - kw) // stride + 1
    cols = []
    for di in range(kh):
        for dj in range(kw):
            cols.append(xp[:, di:di + Ho * stride:stride, dj:dj + Wo * stride:stride, :])
    patches = jnp.concatenate(cols, axis=-1)              # [B, Ho, Wo, kh*kw*C]
    patches = patches.reshape(B, Ho * Wo, kh * kw * C)    # [B, P, K]
    return jnp.transpose(patches, (1, 0, 2)), Ho, Wo      # [P, B, K]


# ---------------------------------------------------------------------------
# Parameters
# ---------------------------------------------------------------------------
def orthogonal_init(key, out_dim, in_dim, gain):
    n = max(out_dim, in_dim)
    a = jax.random.normal(key, (n, n), dtype=jnp.float32)
    q, r = jnp.linalg.qr(a)
    q = q * jnp.sign(jnp.diag(r))[None, :]
    return gain * q[:out_dim, :in_dim]


def make_params(key, cnn_in_channels, baseplanes, repr_size, n_actions,
                action_embed_size, num_classes, num_reg, h, w):
    keys = jax.random.split(key, 6)
    kh = kw = 3
    ho, wo = _conv_out_hw(h, w, k=3, s=2, p=1)   # matches im2col for odd H/W too
    flat = ho * wo * baseplanes

    conv_w = 0.05 * jax.random.normal(keys[0], (kh * kw * cnn_in_channels, baseplanes),
                                      jnp.float32)
    conv_b = jnp.zeros((baseplanes,), jnp.float32)

    fc_w = 0.02 * jax.random.normal(keys[1], (flat, repr_size), jnp.float32)
    fc_b = jnp.zeros((repr_size,), jnp.float32)

    embed = 0.1 * jax.random.normal(keys[2], (n_actions, action_embed_size), jnp.float32)

    head_in = repr_size + action_embed_size
    # layer_init(): orthogonal gain 0.01, zero bias (stored transposed: [in, out])
    cls_w = orthogonal_init(keys[3], num_classes, head_in, 0.01).T
    cls_b = jnp.zeros((num_classes,), jnp.float32)
    reg_w = orthogonal_init(keys[4], num_reg, head_in, 0.01).T
    reg_b = jnp.zeros((num_reg,), jnp.float32)

    return dict(conv_w=conv_w, conv_b=conv_b, fc_w=fc_w, fc_b=fc_b, embed=embed,
                cls_w=cls_w, cls_b=cls_b, reg_w=reg_w, reg_b=reg_b,
                baseplanes=baseplanes, ho=ho, wo=wo)


def prepare_kernel_params(params, repr_size, action_embed_size, num_classes, num_reg):
    """One-time layout/dtype prep: bf16 MXU operands, FC weight reshaped to [P,C,R],
    both task-head weights packed into one zero-padded lane-dense [*, 128] slab."""
    P = params["ho"] * params["wo"]
    C = params["baseplanes"]
    K = params["conv_w"].shape[0]
    R, E = repr_size, action_embed_size

    wc = jnp.broadcast_to(params["conv_w"][None], (P, K, C)).astype(jnp.bfloat16)
    wfc = params["fc_w"].reshape(P, C, R).astype(jnp.bfloat16)

    head_in = R + E
    wh = jnp.zeros((head_in, HEAD_LANES), jnp.float32)
    wh = wh.at[:, :num_classes].set(params["cls_w"])
    wh = wh.at[:, num_classes:num_classes + num_reg].set(params["reg_w"])
    bh = jnp.zeros((HEAD_LANES,), jnp.float32)
    bh = bh.at[:num_classes].set(params["cls_b"])
    bh = bh.at[num_classes:num_classes + num_reg].set(params["reg_b"])

    return dict(
        wc=wc,
        bc=params["conv_b"].reshape(1, C),
        wfc=wfc,
        bfc=params["fc_b"].reshape(1, R),
        emb=params["embed"],                       # f32; rows gathered in-kernel
        whf=wh[:R].astype(jnp.bfloat16),
        whe=wh[R:].astype(jnp.bfloat16),
        bh=bh.reshape(1, HEAD_LANES),
    )


# ---------------------------------------------------------------------------
# Forward
# ---------------------------------------------------------------------------
def net_forward(kparams, rgb_nchw, depth_nchw, actions, *, num_classes, num_reg):
    # XLA layout glue: modality concat, NCHW->NHWC, im2col -> [P, B, K] bf16
    x = jnp.transpose(jnp.concatenate([rgb_nchw, depth_nchw], axis=1), (0, 2, 3, 1))
    patches, _, _ = im2col_pbk(x, kh=3, kw=3, stride=2, pad=1)
    patches = patches.astype(jnp.bfloat16)

    P, B, K = patches.shape
    C = kparams["wc"].shape[2]
    R = kparams["wfc"].shape[2]
    E = kparams["whe"].shape[0]
    A = kparams["emb"].shape[0]
    assert kparams["wc"].shape[0] == P and kparams["wfc"].shape[0] == P

    flops = 2 * P * B * K * C + 2 * P * B * C * R + 2 * B * (R + E) * HEAD_LANES
    bytes_accessed = B * HEAD_LANES * 4 + sum(
        int(a.size) * a.dtype.itemsize
        for a in (patches, kparams["wc"], kparams["bc"], kparams["wfc"], kparams["bfc"],
                  kparams["emb"], kparams["whf"], kparams["whe"], kparams["bh"]))

    kernel = functools.partial(_fused_forward_kernel, batch=B,
                               num_classes=num_classes, num_reg=num_reg)

    out = pl.pallas_call(
        kernel,
        out_shape=jax.ShapeDtypeStruct((B, HEAD_LANES), jnp.float32),
        grid_spec=pltpu.PrefetchScalarGridSpec(
            num_scalar_prefetch=1,                 # actions -> SMEM
            grid=(1,),
            in_specs=[
                pl.BlockSpec((P, B, K), lambda i, a: (0, 0, 0)),
                pl.BlockSpec((P, K, C), lambda i, a: (0, 0, 0)),
                pl.BlockSpec((1, C), lambda i, a: (0, 0)),
                pl.BlockSpec((P, C, R), lambda i, a: (0, 0, 0)),
                pl.BlockSpec((1, R), lambda i, a: (0, 0)),
                pl.BlockSpec((A, E), lambda i, a: (0, 0)),
                pl.BlockSpec((R, HEAD_LANES), lambda i, a: (0, 0)),
                pl.BlockSpec((E, HEAD_LANES), lambda i, a: (0, 0)),
                pl.BlockSpec((1, HEAD_LANES), lambda i, a: (0, 0)),
            ],
            out_specs=pl.BlockSpec((B, HEAD_LANES), lambda i, a: (0, 0)),
        ),
        compiler_params=pltpu.CompilerParams(dimension_semantics=("arbitrary",)),
        cost_estimate=pl.CostEstimate(flops=flops, transcendentals=B * HEAD_LANES,
                                      bytes_accessed=bytes_accessed),
    )(actions.astype(jnp.int32), patches,
      kparams["wc"], kparams["bc"], kparams["wfc"], kparams["bfc"],
      kparams["emb"], kparams["whf"], kparams["whe"], kparams["bh"])

    return {"logits": out[:, :num_classes],
            "egomotion_preds": out[:, num_classes:num_classes + num_reg]}


def reference_forward(params, rgb, depth, actions):
    """Plain-JAX f32 reference of the same forward (test-time correctness check only)."""
    x = jnp.transpose(jnp.concatenate([rgb, depth], axis=1), (0, 2, 3, 1))
    patches, _, _ = im2col_pbk(x, 3, 3, 2, 1)                        # [P, B, K]
    B = x.shape[0]
    conv = jnp.maximum(jnp.einsum("pbk,kc->pbc", patches, params["conv_w"])
                       + params["conv_b"], 0.0)                      # [P, B, C]
    flat = jnp.transpose(conv, (1, 0, 2)).reshape(B, -1)             # NHWC flatten order
    feats = jnp.maximum(flat @ params["fc_w"] + params["fc_b"], 0.0)
    head_in = jnp.concatenate([feats, params["embed"][actions]], axis=1)
    logits = head_in @ params["cls_w"] + params["cls_b"]
    ego = jnp.tanh(head_in @ params["reg_w"] + params["reg_b"])
    return {"logits": logits, "egomotion_preds": ego}


# ---------------------------------------------------------------------------
if __name__ == "__main__":
    B, H, W = 2, 16, 16
    REPR_SIZE = 32
    BASEPLANES = 32
    N_ACTIONS = 4
    ACTION_EMBED = 8
    NUM_CLASSES = 4
    NUM_REG = 3

    key = jax.random.PRNGKey(0)
    k_param, k_rgb, k_depth, k_act = jax.random.split(key, 4)

    params = make_params(k_param, cnn_in_channels=4, baseplanes=BASEPLANES,
                         repr_size=REPR_SIZE, n_actions=N_ACTIONS,
                         action_embed_size=ACTION_EMBED, num_classes=NUM_CLASSES,
                         num_reg=NUM_REG, h=H, w=W)
    kparams = prepare_kernel_params(params, REPR_SIZE, ACTION_EMBED, NUM_CLASSES, NUM_REG)

    rgb = jax.random.uniform(k_rgb, (B, 3, H, W), jnp.float32)
    depth = jax.random.uniform(k_depth, (B, 1, H, W), jnp.float32)
    actions = jax.random.randint(k_act, (B,), 0, N_ACTIONS, dtype=jnp.int32)

    fwd = jax.jit(functools.partial(net_forward, num_classes=NUM_CLASSES, num_reg=NUM_REG))
    out = fwd(kparams, rgb, depth, actions)
    jax.block_until_ready(out)

    # checks live outside the hot path (no device sync inside the timed forward)
    ref = reference_forward(params, rgb, depth, actions)
    assert out["logits"].shape == (B, NUM_CLASSES)
    assert out["egomotion_preds"].shape == (B, NUM_REG)
    assert jnp.allclose(out["logits"], ref["logits"], rtol=1e-1, atol=1e-2)
    assert jnp.allclose(out["egomotion_preds"], ref["egomotion_preds"], rtol=1e-1, atol=1e-2)
    assert bool(jnp.all(jnp.abs(out["egomotion_preds"]) <= 1.0))     # tanh head
    print("KERNEL_OK")
</pallas_src>

<mosaic_0001>
module attributes {stable_mosaic.version = 11 : i64} {
  func.func @_fused_forward_kernel(%arg0: i32, %arg1: memref<2xi32, #tpu.memory_space<smem>>, %arg2: memref<64x2x36xbf16, #tpu.memory_space<vmem>>, %arg3: memref<64x36x32xbf16, #tpu.memory_space<vmem>>, %arg4: memref<1x32xf32, #tpu.memory_space<vmem>>, %arg5: memref<64x32x32xbf16, #tpu.memory_space<vmem>>, %arg6: memref<1x32xf32, #tpu.memory_space<vmem>>, %arg7: memref<4x8xf32, #tpu.memory_space<vmem>>, %arg8: memref<32x128xbf16, #tpu.memory_space<vmem>>, %arg9: memref<8x128xbf16, #tpu.memory_space<vmem>>, %arg10: memref<1x128xf32, #tpu.memory_space<vmem>>, %arg11: memref<2x128xf32, #tpu.memory_space<vmem>>) attributes {dimension_semantics = [#tpu.dimension_semantics<arbitrary>], iteration_bounds = array<i64: 1>, scalar_prefetch = 1 : i64, scratch_operands = 0 : i64, tpu.core_type = #tpu.core_type<tc>, window_params = [{pipeline_mode = #tpu.pipeline_mode<synchronous>, transform_indices = @transform_0, window_bounds = array<i64: 64, 2, 36>}, {pipeline_mode = #tpu.pipeline_mode<synchronous>, transform_indices = @transform_1, window_bounds = array<i64: 64, 36, 32>}, {pipeline_mode = #tpu.pipeline_mode<synchronous>, transform_indices = @transform_2, window_bounds = array<i64: 1, 32>}, {pipeline_mode = #tpu.pipeline_mode<synchronous>, transform_indices = @transform_3, window_bounds = array<i64: 64, 32, 32>}, {pipeline_mode = #tpu.pipeline_mode<synchronous>, transform_indices = @transform_4, window_bounds = array<i64: 1, 32>}, {pipeline_mode = #tpu.pipeline_mode<synchronous>, transform_indices = @transform_5, window_bounds = array<i64: 4, 8>}, {pipeline_mode = #tpu.pipeline_mode<synchronous>, transform_indices = @transform_6, window_bounds = array<i64: 32, 128>}, {pipeline_mode = #tpu.pipeline_mode<synchronous>, transform_indices = @transform_7, window_bounds = array<i64: 8, 128>}, {pipeline_mode = #tpu.pipeline_mode<synchronous>, transform_indices = @transform_8, window_bounds = array<i64: 1, 128>}, {pipeline_mode = #tpu.pipeline_mode<synchronous>, transform_indices = @transform_9, window_bounds = array<i64: 2, 128>}]} {
    %c0 = arith.constant 0 : index
    %c0_0 = arith.constant 0 : index
    %c0_1 = arith.constant 0 : index
    %0 = vector.load %arg2[%c0, %c0_0, %c0_1] : memref<64x2x36xbf16, #tpu.memory_space<vmem>>, vector<64x2x36xbf16>
    %c0_2 = arith.constant 0 : index
    %c0_3 = arith.constant 0 : index
    %c0_4 = arith.constant 0 : index
    %1 = vector.load %arg3[%c0_2, %c0_3, %c0_4] : memref<64x36x32xbf16, #tpu.memory_space<vmem>>, vector<64x36x32xbf16>
    "tpu.trace_start"() <{level = 10 : i32, message = "pbk,pkc->pbc"}> : () -> ()
    %cst = arith.constant dense<0.000000e+00> : vector<64x2x32xf32>
    %2 = tpu.matmul %0, %1, %cst {dimension_numbers = #tpu.dot_dimension_numbers<[2], [1], [1], [2], [0, 0, 0, 1, 1, 2], [0], [0]>} : vector<64x2x36xbf16>, vector<64x36x32xbf16>, vector<64x2x32xf32> -> vector<64x2x32xf32>
    "tpu.trace_stop"() : () -> ()
    %c0_5 = arith.constant 0 : index
    %c0_6 = arith.constant 0 : index
    %3 = vector.load %arg4[%c0_5, %c0_6] : memref<1x32xf32, #tpu.memory_space<vmem>>, vector<1x32xf32>
    %4 = vector.shape_cast %3 : vector<1x32xf32> to vector<1x1x32xf32>
    %5 = vector.broadcast %4 : vector<1x1x32xf32> to vector<64x2x32xf32>
    %6 = arith.addf %2, %5 : vector<64x2x32xf32>
    %cst_7 = arith.constant 0.000000e+00 : f32
    %7 = vector.broadcast %cst_7 : f32 to vector<64x2x32xf32>
    %8 = arith.maximumf %6, %7 : vector<64x2x32xf32>
    %9 = arith.truncf %8 : vector<64x2x32xf32> to vector<64x2x32xbf16>
    %c0_8 = arith.constant 0 : index
    %c0_9 = arith.constant 0 : index
    %c0_10 = arith.constant 0 : index
    %10 = vector.load %arg5[%c0_8, %c0_9, %c0_10] : memref<64x32x32xbf16, #tpu.memory_space<vmem>>, vector<64x32x32xbf16>
    "tpu.trace_start"() <{level = 10 : i32, message = "pbc,pcr->pbr"}> : () -> ()
    %cst_11 = arith.constant dense<0.000000e+00> : vector<64x2x32xf32>
    %11 = tpu.matmul %9, %10, %cst_11 {dimension_numbers = #tpu.dot_dimension_numbers<[2], [1], [1], [2], [0, 0, 0, 1, 1, 2], [0], [0]>} : vector<64x2x32xbf16>, vector<64x32x32xbf16>, vector<64x2x32xf32> -> vector<64x2x32xf32>
    "tpu.trace_stop"() : () -> ()
    %cst_12 = arith.constant dense<0.000000e+00> : vector<2x32xf32>
    %12 = vector.multi_reduction <add>, %11, %cst_12 [0] : vector<64x2x32xf32> to vector<2x32xf32>
    %c0_13 = arith.constant 0 : index
    %c0_14 = arith.constant 0 : index
    %13 = vector.load %arg6[%c0_13, %c0_14] : memref<1x32xf32, #tpu.memory_space<vmem>>, vector<1x32xf32>
    %14 = vector.broadcast %13 : vector<1x32xf32> to vector<2x32xf32>
    %15 = arith.addf %12, %14 : vector<2x32xf32>
    %cst_15 = arith.constant 0.000000e+00 : f32
    %16 = vector.broadcast %cst_15 : f32 to vector<2x32xf32>
    %17 = arith.maximumf %15, %16 : vector<2x32xf32>
    %c0_16 = arith.constant 0 : index
    %18 = memref.load %arg1[%c0_16] : memref<2xi32, #tpu.memory_space<smem>>
    %19 = arith.index_cast %18 : i32 to index
    %c0_17 = arith.constant 0 : index
    %20 = vector.load %arg7[%19, %c0_17] : memref<4x8xf32, #tpu.memory_space<vmem>>, vector<1x8xf32>
    %c1 = arith.constant 1 : index
    %21 = memref.load %arg1[%c1] : memref<2xi32, #tpu.memory_space<smem>>
    %22 = arith.index_cast %21 : i32 to index
    %c0_18 = arith.constant 0 : index
    %23 = vector.load %arg7[%22, %c0_18] : memref<4x8xf32, #tpu.memory_space<vmem>>, vector<1x8xf32>
    %24 = tpu.concatenate %20, %23 in 0 : vector<1x8xf32>, vector<1x8xf32> -> vector<2x8xf32>
    %25 = arith.truncf %17 : vector<2x32xf32> to vector<2x32xbf16>
    %c0_19 = arith.constant 0 : index
    %c0_20 = arith.constant 0 : index
    %26 = vector.load %arg8[%c0_19, %c0_20] : memref<32x128xbf16, #tpu.memory_space<vmem>>, vector<32x128xbf16>
    %cst_21 = arith.constant dense<0.000000e+00> : vector<2x128xf32>
    %27 = tpu.matmul %25, %26, %cst_21 {dimension_numbers = #tpu.dot_dimension_numbers<[1], [0], [0], [1], [0, 0, 1, 1], [], []>} : vector<2x32xbf16>, vector<32x128xbf16>, vector<2x128xf32> -> vector<2x128xf32>
    %28 = arith.truncf %24 : vector<2x8xf32> to vector<2x8xbf16>
    %c0_22 = arith.constant 0 : index
    %c0_23 = arith.constant 0 : index
    %29 = vector.load %arg9[%c0_22, %c0_23] : memref<8x128xbf16, #tpu.memory_space<vmem>>, vector<8x128xbf16>
    %cst_24 = arith.constant dense<0.000000e+00> : vector<2x128xf32>
    %30 = tpu.matmul %28, %29, %cst_24 {dimension_numbers = #tpu.dot_dimension_numbers<[1], [0], [0], [1], [0, 0, 1, 1], [], []>} : vector<2x8xbf16>, vector<8x128xbf16>, vector<2x128xf32> -> vector<2x128xf32>
    %31 = arith.addf %27, %30 : vector<2x128xf32>
    %c0_25 = arith.constant 0 : index
    %c0_26 = arith.constant 0 : index
    %32 = vector.load %arg10[%c0_25, %c0_26] : memref<1x128xf32, #tpu.memory_space<vmem>>, vector<1x128xf32>
    %33 = vector.broadcast %32 : vector<1x128xf32> to vector<2x128xf32>
    %34 = arith.addf %31, %33 : vector<2x128xf32>
    %35 = tpu.iota {dimensions = array<i32: 1>} : vector<2x128xi32>
    %c4_i32 = arith.constant 4 : i32
    %36 = vector.broadcast %c4_i32 : i32 to vector<2x128xi32>
    %37 = arith.cmpi sge, %35, %36 : vector<2x128xi32>
    %c7_i32 = arith.constant 7 : i32
    %38 = vector.broadcast %c7_i32 : i32 to vector<2x128xi32>
    %39 = arith.cmpi slt, %35, %38 : vector<2x128xi32>
    %40 = arith.andi %37, %39 : vector<2x128xi1>
    %41 = math.tanh %34 : vector<2x128xf32>
    %42 = arith.select %40, %41, %34 : vector<2x128xi1>, vector<2x128xf32>
    %c0_27 = arith.constant 0 : index
    %c0_28 = arith.constant 0 : index
    %43 = vector.load %arg11[%c0_27, %c0_28] : memref<2x128xf32, #tpu.memory_space<vmem>>, vector<2x128xf32>
    tpu.vector_store %arg11[%c0_27, %c0_28], %42 {strides = array<i32>} : memref<2x128xf32, #tpu.memory_space<vmem>>, vector<2x128xf32>,
    return
  }
  func.func @transform_0(%arg0: i32, %arg1: memref<2xi32, #tpu.memory_space<smem>>) -> (i32, i32, i32) {
    %c0_i32 = arith.constant 0 : i32
    %c0_i32_0 = arith.constant 0 : i32
    %c0_i32_1 = arith.constant 0 : i32
    %c0_i32_2 = arith.constant 0 : i32
    return %c0_i32, %c0_i32_0, %c0_i32_1 : i32, i32, i32
  }
  func.func @transform_1(%arg0: i32, %arg1: memref<2xi32, #tpu.memory_space<smem>>) -> (i32, i32, i32) {
    %c0_i32 = arith.constant 0 : i32
    %c0_i32_0 = arith.constant 0 : i32
    %c0_i32_1 = arith.constant 0 : i32
    %c0_i32_2 = arith.constant 0 : i32
    return %c0_i32, %c0_i32_0, %c0_i32_1 : i32, i32, i32
  }
  func.func @transform_2(%arg0: i32, %arg1: memref<2xi32, #tpu.memory_space<smem>>) -> (i32, i32) {
    %c0_i32 = arith.constant 0 : i32
    %c0_i32_0 = arith.constant 0 : i32
    %c0_i32_1 = arith.constant 0 : i32
    return %c0_i32, %c0_i32_0 : i32, i32
  }
  func.func @transform_3(%arg0: i32, %arg1: memref<2xi32, #tpu.memory_space<smem>>) -> (i32, i32, i32) {
    %c0_i32 = arith.constant 0 : i32
    %c0_i32_0 = arith.constant 0 : i32
    %c0_i32_1 = arith.constant 0 : i32
    %c0_i32_2 = arith.constant 0 : i32
    return %c0_i32, %c0_i32_0, %c0_i32_1 : i32, i32, i32
  }
  func.func @transform_4(%arg0: i32, %arg1: memref<2xi32, #tpu.memory_space<smem>>) -> (i32, i32) {
    %c0_i32 = arith.constant 0 : i32
    %c0_i32_0 = arith.constant 0 : i32
    %c0_i32_1 = arith.constant 0 : i32
    return %c0_i32, %c0_i32_0 : i32, i32
  }
  func.func @transform_5(%arg0: i32, %arg1: memref<2xi32, #tpu.memory_space<smem>>) -> (i32, i32) {
    %c0_i32 = arith.constant 0 : i32
    %c0_i32_0 = arith.constant 0 : i32
    %c0_i32_1 = arith.constant 0 : i32
    return %c0_i32, %c0_i32_0 : i32, i32
  }
  func.func @transform_6(%arg0: i32, %arg1: memref<2xi32, #tpu.memory_space<smem>>) -> (i32, i32) {
    %c0_i32 = arith.constant 0 : i32
    %c0_i32_0 = arith.constant 0 : i32
    %c0_i32_1 = arith.constant 0 : i32
    return %c0_i32, %c0_i32_0 : i32, i32
  }
  func.func @transform_7(%arg0: i32, %arg1: memref<2xi32, #tpu.memory_space<smem>>) -> (i32, i32) {
    %c0_i32 = arith.constant 0 : i32
    %c0_i32_0 = arith.constant 0 : i32
    %c0_i32_1 = arith.constant 0 : i32
    return %c0_i32, %c0_i32_0 : i32, i32
  }
  func.func @transform_8(%arg0: i32, %arg1: memref<2xi32, #tpu.memory_space<smem>>) -> (i32, i32) {
    %c0_i32 = arith.constant 0 : i32
    %c0_i32_0 = arith.constant 0 : i32
    %c0_i32_1 = arith.constant 0 : i32
    return %c0_i32, %c0_i32_0 : i32, i32
  }
  func.func @transform_9(%arg0: i32, %arg1: memref<2xi32, #tpu.memory_space<smem>>) -> (i32, i32) {
    %c0_i32 = arith.constant 0 : i32
    %c0_i32_0 = arith.constant 0 : i32
    %c0_i32_1 = arith.constant 0 : i32
    return %c0_i32, %c0_i32_0 : i32, i32
  }
}

</mosaic_0001>

<bundles_post_ra>
// kernel: net_forward.1
= control target key start
LH: loop header
LB: loop body
LE: loop exit
PB: predicated region body
PF: predicated region fallthrough
CT: control target
= control target key end

     0   :  { %s13282_s0 = inlined_call_operand.vmem [shape: s32[2], index: 0, kind: input, shape index: {}]   ;;  %s13283_s1 = inlined_call_operand.vmem [shape: bf16[64,2,36], index: 1, kind: input, shape index: {}]   ;;  %s13284_s2 = inlined_call_operand.vmem [shape: bf16[64,36,32], index: 2, kind: input, shape index: {}]   ;;  %s13285_s3 = inlined_call_operand.vmem [shape: f32[1,32], index: 3, kind: input, shape index: {}]   ;;  %s13286_s4 = inlined_call_operand.vmem [shape: bf16[64,32,32], index: 4, kind: input, shape index: {}]   ;;  %s13287_s5 = inlined_call_operand.vmem [shape: f32[1,32], index: 5, kind: input, shape index: {}]   ;;  %s13288_s6 = inlined_call_operand.vmem [shape: f32[4,8], index: 6, kind: input, shape index: {}]   ;;  %s13289_s7 = inlined_call_operand.vmem [shape: bf16[32,128], index: 7, kind: input, shape index: {}]   ;;  %s13290_s8 = inlined_call_operand.vmem [shape: bf16[8,128], index: 8, kind: input, shape index: {}]   ;;  %s13291_s9 = inlined_call_operand.vmem [shape: f32[1,128], index: 9, kind: input, shape index: {}]   ;;  %s13292_s10 = inlined_call_operand.vmem [shape: f32[2,128], index: 10, kind: output, shape index: {}]  }
   0x1   :  { %s15_s15 = sshll.u32 %s13282_s0, 4  ;;  %s16_s15 = int_to_ptr.vmem [resolvable:$true] %s15_s15 }
   0x2   :  { %s10925_s16 = scalar_lea.vmem %s16_s15, 16  ;;  %p10930_p1 = scmp.lt.s32.totalorder %s16_s15, %s16_s15 }
   0x3   :  { %p10926_p0 = scmp.ne.s32.totalorder %s16_s15, %s10925_s16  ;;  %p10931_p2 = scmp.lt.s32.totalorder %s10925_s16, %s10925_s16 }
   0x5   :  { %p10932_p3 = por %p10931_p2, %p10930_p1 }
   0x7   :  { %p10933_p4 = pnand %p10932_p3, %p10926_p0 }
   0x9   :  { %10936 = shalt.err (!%p10933_p4)  }
   0xa   :  { %s10939_s17 = smov [#allocation3]  }
   0xb   :  { %18 = dma.vmem_to_smem %s16_s15, 16, %s10939_s17, [#allocation2] }
   0xc   :  { %10937 = dma.done.wait [#allocation2], 16 }
   0xd   :  { %10938 = vsyncadd [#allocation2], 4294967280 }
   0xe   :  { %20 = sfence }
   0xf   :  { %v10600_v0 = vld [vmem:[%s13284_s2] sm:$0xff]   ;;  %v10940_v1 = vmov 0.0   ;;  %v10601_v2 = vld [vmem:[%s13284_s2 + $0x14] sm:$0xff]   ;;  %v10602_v3 = vld [vmem:[%s13284_s2 + $0x8] sm:$0xff]   ;;  %vm450_vm0 = vcmask 1041408   ;;  %vm10941_vm1 = vmmov 0  }
  0x10   :  { %9431 = vmatprep.subr.bf16.mxu0 %v10940_v1  ;;  %9441 = vmatprep.subr.bf16.mxu1 %v10940_v1  ;;  %v10603_v4 = vld [vmem:[%s13284_s2 + $0x1c] sm:$0xff]   ;;  %v10604_v5 = vld [vmem:[%s13284_s2 + $0x10] ss:$0 sps:$4 sm:$0x33]   ;;  %vm446_vm2 = vcmask 293888   ;;  %v10606_v10 = vld [vmem:[%s13284_s2 + $0x28] sm:$0xff]  }
  0x11   :  { %9432 = vmatpush3.bf16.msra.mxu0 %v10600_v0  ;;  %9442 = vmatpush3.bf16.msra.mxu1 %v10601_v2  ;;  %v10605_v6 = vld [vmem:[%s13284_s2 + $0x24] ss:$0 sps:$4 sm:$0x33]   ;;  %v452_v7 = vsel %vm450_vm0, %v10604_v5, 0  ;;  %v40_v9 = vld [vmem:[%s13283_s1] sm:$0x1] }
  0x12   :  { %9433 = vmatprep.subr.bf16.mxu0 %v10940_v1  ;;  %9443 = vmatprep.subr.bf16.mxu1 %v10940_v1  ;;  %v513_v8 = vsel %vm450_vm0, %v10605_v6, 0  ;;  %v41_v11 = vld [vmem:[%s13283_s1 + $0x1] sm:$0x1]  ;;  %v10608_v13 = vld [vmem:[%s13284_s2 + $0x30] sm:$0xff]   ;;  %v10609_v14 = vld [vmem:[%s13284_s2 + $0x44] sm:$0xff]   ;;  %vm4733_vm3 = vcmask 261120  }
  0x13   :  { %9437 = vmatprep.mubr.msk.bf16.mxu0 %vm10941_vm1, %v10940_v1  ;;  %9447 = vmatprep.mubr.msk.bf16.mxu1 %vm10941_vm1, %v10940_v1  ;;  %v10607_v12 = vld [vmem:[%s13284_s2 + $0x3c] sm:$0xff]   ;;  %v10610_v15 = vld [vmem:[%s13284_s2 + $0x38] ss:$0 sps:$4 sm:$0x33]   ;;  %v10612_v20 = vld [vmem:[%s13284_s2 + $0x50] sm:$0xff]   ;;  %vm8242_vm4 = vcmask 254976  }
  0x14   :  { %v10611_v16 = vld [vmem:[%s13284_s2 + $0x4c] ss:$0 sps:$4 sm:$0x33]   ;;  %v574_v17 = vsel %vm450_vm0, %v10610_v15, 0  ;;  %v42_v19 = vld [vmem:[%s13283_s1 + $0x2] sm:$0x1] }
  0x15   :  { %9434 = vmatpush3.bf16.msra.mxu0 %v10602_v3  ;;  %9444 = vmatpush3.bf16.msra.mxu1 %v10603_v4  ;;  %v635_v18 = vsel %vm450_vm0, %v10611_v16, 0  ;;  %v43_v21 = vld [vmem:[%s13283_s1 + $0x3] sm:$0x1]  ;;  %v10613_v22 = vld [vmem:[%s13284_s2 + $0x64] sm:$0xff]   ;;  %v10614_v23 = vld [vmem:[%s13284_s2 + $0x58] sm:$0xff]   ;;  %s8379_s26 = sld [smem:[#allocation3]] }
  0x16   :  { %9435 = vmatprep.subr.bf16.mxu0 %v10940_v1  ;;  %9445 = vmatprep.subr.bf16.mxu1 %v10940_v1  ;;  %v10615_v24 = vld [vmem:[%s13284_s2 + $0x6c] sm:$0xff]   ;;  %v10616_v25 = vld [vmem:[%s13284_s2 + $0x60] ss:$0 sps:$4 sm:$0x33]   ;;  %v44_v29 = vld [vmem:[%s13283_s1 + $0x4] sm:$0x1] }
  0x17   :  { %v10617_v26 = vld [vmem:[%s13284_s2 + $0x74] ss:$0 sps:$4 sm:$0x33]   ;;  %v696_v27 = vsel %vm450_vm0, %v10616_v25, 0  ;;  %v10618_v30 = vld [vmem:[%s13284_s2 + $0x78] sm:$0xff]   ;;  %v10619_v32 = vld [vmem:[%s13284_s2 + $0x8c] sm:$0xff]  }
  0x18   :  { %v757_v28 = vsel %vm450_vm0, %v10617_v26, 0  ;;  %v45_v31 = vld [vmem:[%s13283_s1 + $0x5] sm:$0x1]  ;;  %v10621_v34 = vld [vmem:[%s13284_s2 + $0x94] sm:$0xff]   ;;  %v46_v39 = vld [vmem:[%s13283_s1 + $0x6] sm:$0x1] }
  0x19   :  { %9436 = vmatpush3.bf16.msra.mxu0 %v452_v7  ;;  %9446 = vmatpush3.bf16.msra.mxu1 %v513_v8  ;;  %v10620_v33 = vld [vmem:[%s13284_s2 + $0x80] sm:$0xff]   ;;  %v10622_v35 = vld [vmem:[%s13284_s2 + $0x88] ss:$0 sps:$4 sm:$0x33]   ;;  %v10625_v42 = vld [vmem:[%s13284_s2 + $0xb4] sm:$0xff]   ;;  %vm8401_vm5 = vcmask 1043456  }
  0x1a   :  { %9451 = vmatprep.subr.bf16.mxu0 %v10940_v1  ;;  %9461 = vmatprep.subr.bf16.mxu1 %v10940_v1  ;;  %v10623_v36 = vld [vmem:[%s13284_s2 + $0x9c] ss:$0 sps:$4 sm:$0x33]   ;;  %v818_v37 = vsel %vm450_vm0, %v10622_v35, 0  ;;  %v10624_v40 = vld [vmem:[%s13284_s2 + $0xa0] sm:$0xff]   ;;  %v10626_v43 = vld [vmem:[%s13284_s2 + $0xa8] sm:$0xff]  }
  0x1b   :  { %v879_v38 = vsel %vm450_vm0, %v10623_v36, 0  ;;  %v47_v41 = vld [vmem:[%s13283_s1 + $0x7] sm:$0x1]  ;;  %v10627_v44 = vld [vmem:[%s13284_s2 + $0xbc] sm:$0xff]   ;;  %v48_v49 = vld [vmem:[%s13283_s1 + $0x8] sm:$0x1]  ;;  %s8380_s15 = scalar_lea.vmem %s13288_s6, %s8379_s26 }
  0x1c   :  { %9438 = vmatmul.mubr.msk.bf16.vlgmr.msra.gmra.mrb[0].mxu0 %vm446_vm2, %v40_v9  ;;  %9448 = vmatmul.mubr.msk.bf16.vlgmr.msra.gmra.mrb[0].mxu1 %vm446_vm2, %v41_v11  ;;  %v10628_v45 = vld [vmem:[%s13284_s2 + $0xb0] ss:$0 sps:$4 sm:$0x33]   ;;  %v10629_v46 = vld [vmem:[%s13284_s2 + $0xc4] ss:$0 sps:$4 sm:$0x33]  }
  0x1d   :  { %9452 = vmatpush3.bf16.msra.mxu0 %v10606_v10  ;;  %9462 = vmatpush3.bf16.msra.mxu1 %v10607_v12  ;;  %v940_v47 = vsel %vm450_vm0, %v10628_v45, 0  ;;  %v1001_v48 = vsel %vm450_vm0, %v10629_v46, 0  ;;  %v10630_v50 = vld [vmem:[%s13284_s2 + $0xc8] sm:$0xff]   ;;  %v10631_v52 = vld [vmem:[%s13284_s2 + $0xdc] sm:$0xff]   ;;  %v10632_v53 = vld [vmem:[%s13284_s2 + $0xd0] sm:$0xff]   ;;  %vm8388_vm6 = vcmask 1040384  }
  0x1e   :  { %9453 = vmatprep.subr.bf16.mxu0 %v10940_v1  ;;  %9463 = vmatprep.subr.bf16.mxu1 %v10940_v1  ;;  %v49_v51 = vld [vmem:[%s13283_s1 + $0x9] sm:$0x1]  ;;  %v10634_v55 = vld [vmem:[%s13284_s2 + $0xd8] ss:$0 sps:$4 sm:$0x33]   ;;  %v10636_v60 = vld [vmem:[%s13284_s2 + $0xf0] sm:$0xff]  }
  0x1f   :  { %9457 = vmatprep.mubr.msk.bf16.mxu0 %vm10941_vm1, %v10940_v1  ;;  %9467 = vmatprep.mubr.msk.bf16.mxu1 %vm10941_vm1, %v10940_v1  ;;  %v10633_v54 = vld [vmem:[%s13284_s2 + $0xe4] sm:$0xff]   ;;  %v10635_v56 = vld [vmem:[%s13284_s2 + $0xec] ss:$0 sps:$4 sm:$0x33]   ;;  %v1062_v57 = vsel %vm450_vm0, %v10634_v55, 0  ;;  %v10638_v63 = vld [vmem:[%s13284_s2 + $0xf8] sm:$0xff]  }
  0x20   :  { %v1123_v58 = vsel %vm450_vm0, %v10635_v56, 0  ;;  %v50_v59 = vld [vmem:[%s13283_s1 + $0xa] sm:$0x1]  ;;  %v51_v61 = vld [vmem:[%s13283_s1 + $0xb] sm:$0x1]  ;;  %v10639_v0 = vld [vmem:[%s13284_s2 + $0x10c] sm:$0xff]  }
  0x21   :  { %9454 = vmatpush3.bf16.msra.mxu0 %v10608_v13  ;;  %9464 = vmatpush3.bf16.msra.mxu1 %v10609_v14  ;;  %v10637_v62 = vld [vmem:[%s13284_s2 + $0x104] sm:$0xff]   ;;  %v10640_v2 = vld [vmem:[%s13284_s2 + $0x100] ss:$0 sps:$4 sm:$0x33]   ;;  %v52_v6 = vld [vmem:[%s13283_s1 + $0xc] sm:$0x1] }
  0x22   :  { %9455 = vmatprep.subr.bf16.mxu0 %v10940_v1  ;;  %9465 = vmatprep.subr.bf16.mxu1 %v10940_v1  ;;  %v10641_v3 = vld [vmem:[%s13284_s2 + $0x114] ss:$0 sps:$4 sm:$0x33]   ;;  %v1184_v4 = vsel %vm450_vm0, %v10640_v2, 0  ;;  %v10642_v7 = vld [vmem:[%s13284_s2 + $0x118] sm:$0xff]   ;;  %v10643_v9 = vld [vmem:[%s13284_s2 + $0x12c] sm:$0xff]  }
  0x23   :  { %v1245_v5 = vsel %vm450_vm0, %v10641_v3, 0  ;;  %v53_v8 = vld [vmem:[%s13283_s1 + $0xd] sm:$0x1]  ;;  %v10644_v10 = vld [vmem:[%s13284_s2 + $0x120] sm:$0xff]   ;;  %v10645_v11 = vld [vmem:[%s13284_s2 + $0x134] sm:$0xff]   ;;  %vm8397_vm7 = vcmask 64512  }
  0x24   :  { %v10646_v12 = vld [vmem:[%s13284_s2 + $0x128] ss:$0 sps:$4 sm:$0x33]   ;;  %v10647_v13 = vld [vmem:[%s13284_s2 + $0x13c] ss:$0 sps:$4 sm:$0x33]  }
  0x25   :  { %9456 = vmatpush3.bf16.msra.mxu0 %v574_v17  ;;  %9466 = vmatpush3.bf16.msra.mxu1 %v635_v18  ;;  %v1306_v14 = vsel %vm450_vm0, %v10646_v12, 0  ;;  %v1367_v15 = vsel %vm450_vm0, %v10647_v13, 0  ;;  %v54_v16 = vld [vmem:[%s13283_s1 + $0xe] sm:$0x1]  ;;  %v10648_v17 = vld [vmem:[%s13284_s2 + $0x140] sm:$0xff]   ;;  %v10660_v36 = vld [vmem:[%s13284_s2 + $0x190] sm:$0xff]  }
  0x26   :  { %9471 = vmatprep.subr.bf16.mxu0 %v10940_v1  ;;  %9481 = vmatprep.subr.bf16.mxu1 %v10940_v1  ;;  %v55_v18 = vld [vmem:[%s13283_s1 + $0xf] sm:$0x1]  ;;  %v56_v26 = vld [vmem:[%s13283_s1 + $0x10] sm:$0x1]  ;;  %v60_v46 = vld [vmem:[%s13283_s1 + $0x14] sm:$0x1] }
  0x27   :  { %v62_v56 = vld [vmem:[%s13283_s1 + $0x16] sm:$0x1]  ;;  %v64_v3 = vld [vmem:[%s13283_s1 + $0x18] sm:$0x1]  ;;  %v66_v13 = vld [vmem:[%s13283_s1 + $0x1a] sm:$0x1] }
  0x28   :  { %9458 = vmatmul.mubr.msk.bf16.vlgmr.msra.gmra.mrb[4].mxu0 %vm446_vm2, %v42_v19  ;;  %9468 = vmatmul.mubr.msk.bf16.vlgmr.msra.gmra.mrb[4].mxu1 %vm446_vm2, %v43_v21  ;;  %v10649_v19 = vld [vmem:[%s13284_s2 + $0x154] sm:$0xff]   ;;  %v10651_v21 = vld [vmem:[%s13284_s2 + $0x15c] sm:$0xff]  }
  0x29   :  { %9472 = vmatpush3.bf16.msra.mxu0 %v10612_v20  ;;  %9482 = vmatpush3.bf16.msra.mxu1 %v10613_v22  ;;  %v10650_v20 = vld [vmem:[%s13284_s2 + $0x148] sm:$0xff]   ;;  %v10652_v22 = vld [vmem:[%s13284_s2 + $0x150] ss:$0 sps:$4 sm:$0x33]  }
  0x2a   :  { %9473 = vmatprep.subr.bf16.mxu0 %v10940_v1  ;;  %9483 = vmatprep.subr.bf16.mxu1 %v10940_v1 }
  0x2b   :  { %9477 = vmatprep.mubr.msk.bf16.mxu0 %vm10941_vm1, %v10940_v1  ;;  %9487 = vmatprep.mubr.msk.bf16.mxu1 %vm10941_vm1, %v10940_v1 }
  0x2d   :  { %9474 = vmatpush3.bf16.msra.mxu0 %v10614_v23  ;;  %9484 = vmatpush3.bf16.msra.mxu1 %v10615_v24  ;;  %v10653_v23 = vld [vmem:[%s13284_s2 + $0x164] ss:$0 sps:$4 sm:$0x33]   ;;  %v1428_v24 = vsel %vm450_vm0, %v10652_v22, 0 }
  0x2e   :  { %9475 = vmatprep.subr.bf16.mxu0 %v10940_v1  ;;  %9485 = vmatprep.subr.bf16.mxu1 %v10940_v1  ;;  %v1489_v25 = vsel %vm450_vm0, %v10653_v23, 0  ;;  %v68_v23 = vld [vmem:[%s13283_s1 + $0x1c] sm:$0x1] }
  0x31   :  { %9476 = vmatpush3.bf16.msra.mxu0 %v696_v27  ;;  %9486 = vmatpush3.bf16.msra.mxu1 %v757_v28  ;;  %v10654_v27 = vld [vmem:[%s13284_s2 + $0x168] sm:$0xff]   ;;  %v57_v28 = vld [vmem:[%s13283_s1 + $0x11] sm:$0x1] }
  0x32   :  { %9491 = vmatprep.subr.bf16.mxu0 %v10940_v1  ;;  %9501 = vmatprep.subr.bf16.mxu1 %v10940_v1 }
  0x34   :  { %9478 = vmatmul.mubr.msk.bf16.vlgmr.msra.gmra.mrb[8].mxu0 %vm446_vm2, %v44_v29  ;;  %9488 = vmatmul.mubr.msk.bf16.vlgmr.msra.gmra.mrb[8].mxu1 %vm446_vm2, %v45_v31  ;;  %v10655_v29 = vld [vmem:[%s13284_s2 + $0x17c] sm:$0xff]   ;;  %v10657_v31 = vld [vmem:[%s13284_s2 + $0x184] sm:$0xff]  }
  0x35   :  { %9492 = vmatpush3.bf16.msra.mxu0 %v10618_v30  ;;  %9502 = vmatpush3.bf16.msra.mxu1 %v10619_v32  ;;  %v10656_v30 = vld [vmem:[%s13284_s2 + $0x170] sm:$0xff]   ;;  %v10658_v32 = vld [vmem:[%s13284_s2 + $0x178] ss:$0 sps:$4 sm:$0x33]  }
  0x36   :  { %9493 = vmatprep.subr.bf16.mxu0 %v10940_v1  ;;  %9503 = vmatprep.subr.bf16.mxu1 %v10940_v1 }
  0x37   :  { %9497 = vmatprep.mubr.msk.bf16.mxu0 %vm10941_vm1, %v10940_v1  ;;  %9507 = vmatprep.mubr.msk.bf16.mxu1 %vm10941_vm1, %v10940_v1 }
  0x39   :  { %9494 = vmatpush3.bf16.msra.mxu0 %v10620_v33  ;;  %9504 = vmatpush3.bf16.msra.mxu1 %v10621_v34  ;;  %v10659_v33 = vld [vmem:[%s13284_s2 + $0x18c] ss:$0 sps:$4 sm:$0x33]   ;;  %v1550_v34 = vsel %vm450_vm0, %v10658_v32, 0 }
  0x3a   :  { %9495 = vmatprep.subr.bf16.mxu0 %v10940_v1  ;;  %9505 = vmatprep.subr.bf16.mxu1 %v10940_v1  ;;  %v1611_v35 = vsel %vm450_vm0, %v10659_v33, 0  ;;  %v70_v33 = vld [vmem:[%s13283_s1 + $0x1e] sm:$0x1] }
  0x3d   :  { %9496 = vmatpush3.bf16.msra.mxu0 %v818_v37  ;;  %9506 = vmatpush3.bf16.msra.mxu1 %v879_v38  ;;  %v58_v37 = vld [vmem:[%s13283_s1 + $0x12] sm:$0x1]  ;;  %v59_v38 = vld [vmem:[%s13283_s1 + $0x13] sm:$0x1] }
  0x3e   :  { %9511 = vmatprep.subr.bf16.mxu0 %v10940_v1  ;;  %9521 = vmatprep.subr.bf16.mxu1 %v10940_v1 }
  0x40   :  { %9498 = vmatmul.mubr.msk.bf16.vlgmr.msra.gmra.mrb[12].mxu0 %vm446_vm2, %v46_v39  ;;  %9508 = vmatmul.mubr.msk.bf16.vlgmr.msra.gmra.mrb[12].mxu1 %vm446_vm2, %v47_v41  ;;  %v10661_v39 = vld [vmem:[%s13284_s2 + $0x1a4] sm:$0xff]   ;;  %v10664_v41 = vld [vmem:[%s13284_s2 + $0x1a0] ss:$0 sps:$4 sm:$0x33]  }
  0x41   :  { %9512 = vmatpush3.bf16.msra.mxu0 %v10624_v40  ;;  %9522 = vmatpush3.bf16.msra.mxu1 %v10625_v42  ;;  %v10662_v40 = vld [vmem:[%s13284_s2 + $0x198] sm:$0xff]   ;;  %v10663_v42 = vld [vmem:[%s13284_s2 + $0x1ac] sm:$0xff]  }
  0x42   :  { %9513 = vmatprep.subr.bf16.mxu0 %v10940_v1  ;;  %9523 = vmatprep.subr.bf16.mxu1 %v10940_v1 }
  0x43   :  { %9517 = vmatprep.mubr.msk.bf16.mxu0 %vm10941_vm1, %v10940_v1  ;;  %9527 = vmatprep.mubr.msk.bf16.mxu1 %vm10941_vm1, %v10940_v1 }
  0x45   :  { %9514 = vmatpush3.bf16.msra.mxu0 %v10626_v43  ;;  %9524 = vmatpush3.bf16.msra.mxu1 %v10627_v44  ;;  %v10665_v43 = vld [vmem:[%s13284_s2 + $0x1b4] ss:$0 sps:$4 sm:$0x33]   ;;  %v1672_v44 = vsel %vm450_vm0, %v10664_v41, 0 }
  0x46   :  { %9515 = vmatprep.subr.bf16.mxu0 %v10940_v1  ;;  %9525 = vmatprep.subr.bf16.mxu1 %v10940_v1  ;;  %v1733_v45 = vsel %vm450_vm0, %v10665_v43, 0  ;;  %v72_v43 = vld [vmem:[%s13283_s1 + $0x20] sm:$0x1] }
  0x49   :  { %9516 = vmatpush3.bf16.msra.mxu0 %v940_v47  ;;  %9526 = vmatpush3.bf16.msra.mxu1 %v1001_v48  ;;  %v10666_v47 = vld [vmem:[%s13284_s2 + $0x1b8] sm:$0xff]   ;;  %v10667_v48 = vld [vmem:[%s13284_s2 + $0x1cc] sm:$0xff]  }
  0x4a   :  { %9531 = vmatprep.subr.bf16.mxu0 %v10940_v1  ;;  %9541 = vmatprep.subr.bf16.mxu1 %v10940_v1 }
  0x4c   :  { %9518 = vmatmul.mubr.msk.bf16.vlgmr.msra.gmra.mrb[16].mxu0 %vm446_vm2, %v48_v49  ;;  %9528 = vmatmul.mubr.msk.bf16.vlgmr.msra.gmra.mrb[16].mxu1 %vm446_vm2, %v49_v51  ;;  %v61_v49 = vld [vmem:[%s13283_s1 + $0x15] sm:$0x1]  ;;  %v10670_v51 = vld [vmem:[%s13284_s2 + $0x1c8] ss:$0 sps:$4 sm:$0x33]  }
  0x4d   :  { %9532 = vmatpush3.bf16.msra.mxu0 %v10630_v50  ;;  %9542 = vmatpush3.bf16.msra.mxu1 %v10631_v52  ;;  %v10668_v50 = vld [vmem:[%s13284_s2 + $0x1c0] sm:$0xff]   ;;  %v10669_v52 = vld [vmem:[%s13284_s2 + $0x1d4] sm:$0xff]  }
  0x4e   :  { %9533 = vmatprep.subr.bf16.mxu0 %v10940_v1  ;;  %9543 = vmatprep.subr.bf16.mxu1 %v10940_v1 }
  0x4f   :  { %9537 = vmatprep.mubr.msk.bf16.mxu0 %vm10941_vm1, %v10940_v1  ;;  %9547 = vmatprep.mubr.msk.bf16.mxu1 %vm10941_vm1, %v10940_v1 }
  0x51   :  { %9534 = vmatpush3.bf16.msra.mxu0 %v10632_v53  ;;  %9544 = vmatpush3.bf16.msra.mxu1 %v10633_v54  ;;  %v10671_v53 = vld [vmem:[%s13284_s2 + $0x1dc] ss:$0 sps:$4 sm:$0x33]   ;;  %v1794_v54 = vsel %vm450_vm0, %v10670_v51, 0 }
  0x52   :  { %9535 = vmatprep.subr.bf16.mxu0 %v10940_v1  ;;  %9545 = vmatprep.subr.bf16.mxu1 %v10940_v1  ;;  %v1855_v55 = vsel %vm450_vm0, %v10671_v53, 0  ;;  %v74_v53 = vld [vmem:[%s13283_s1 + $0x22] sm:$0x1] }
  0x55   :  { %9536 = vmatpush3.bf16.msra.mxu0 %v1062_v57  ;;  %9546 = vmatpush3.bf16.msra.mxu1 %v1123_v58  ;;  %v10672_v57 = vld [vmem:[%s13284_s2 + $0x1e0] sm:$0xff]   ;;  %v63_v58 = vld [vmem:[%s13283_s1 + $0x17] sm:$0x1] }
  0x56   :  { %9551 = vmatprep.subr.bf16.mxu0 %v10940_v1  ;;  %9561 = vmatprep.subr.bf16.mxu1 %v10940_v1 }
  0x58   :  { %9538 = vmatmul.mubr.msk.bf16.vlgmr.msra.gmra.mrb[20].mxu0 %vm446_vm2, %v50_v59  ;;  %9548 = vmatmul.mubr.msk.bf16.vlgmr.msra.gmra.mrb[20].mxu1 %vm446_vm2, %v51_v61  ;;  %v10673_v59 = vld [vmem:[%s13284_s2 + $0x1f4] sm:$0xff]   ;;  %v10676_v61 = vld [vmem:[%s13284_s2 + $0x1f0] ss:$0 sps:$4 sm:$0x33]  }
  0x59   :  { %9552 = vmatpush3.bf16.msra.mxu0 %v10636_v60  ;;  %9562 = vmatpush3.bf16.msra.mxu1 %v10637_v62  ;;  %v10674_v60 = vld [vmem:[%s13284_s2 + $0x1e8] sm:$0xff]   ;;  %v10675_v62 = vld [vmem:[%s13284_s2 + $0x1fc] sm:$0xff]  }
  0x5a   :  { %9553 = vmatprep.subr.bf16.mxu0 %v10940_v1  ;;  %9563 = vmatprep.subr.bf16.mxu1 %v10940_v1 }
  0x5b   :  { %9557 = vmatprep.mubr.msk.bf16.mxu0 %vm10941_vm1, %v10940_v1  ;;  %9567 = vmatprep.mubr.msk.bf16.mxu1 %vm10941_vm1, %v10940_v1 }
  0x5d   :  { %9554 = vmatpush3.bf16.msra.mxu0 %v10638_v63  ;;  %9564 = vmatpush3.bf16.msra.mxu1 %v10639_v0  ;;  %v10677_v63 = vld [vmem:[%s13284_s2 + $0x204] ss:$0 sps:$4 sm:$0x33]   ;;  %v1916_v0 = vsel %vm450_vm0, %v10676_v61, 0 }
  0x5e   :  { %9555 = vmatprep.subr.bf16.mxu0 %v10940_v1  ;;  %9565 = vmatprep.subr.bf16.mxu1 %v10940_v1  ;;  %v1977_v2 = vsel %vm450_vm0, %v10677_v63, 0 }
  0x61   :  { %9556 = vmatpush3.bf16.msra.mxu0 %v1184_v4  ;;  %9566 = vmatpush3.bf16.msra.mxu1 %v1245_v5  ;;  %v10678_v4 = vld [vmem:[%s13284_s2 + $0x208] sm:$0xff]   ;;  %v65_v5 = vld [vmem:[%s13283_s1 + $0x19] sm:$0x1] }
  0x62   :  { %9571 = vmatprep.subr.bf16.mxu0 %v10940_v1  ;;  %9581 = vmatprep.subr.bf16.mxu1 %v10940_v1 }
  0x64   :  { %9558 = vmatmul.mubr.msk.bf16.vlgmr.msra.gmra.mrb[24].mxu0 %vm446_vm2, %v52_v6  ;;  %9568 = vmatmul.mubr.msk.bf16.vlgmr.msra.gmra.mrb[24].mxu1 %vm446_vm2, %v53_v8  ;;  %v10679_v6 = vld [vmem:[%s13284_s2 + $0x21c] sm:$0xff]   ;;  %v10682_v8 = vld [vmem:[%s13284_s2 + $0x218] ss:$0 sps:$4 sm:$0x33]  }
  0x65   :  { %9572 = vmatpush3.bf16.msra.mxu0 %v10642_v7  ;;  %9582 = vmatpush3.bf16.msra.mxu1 %v10643_v9  ;;  %v10680_v7 = vld [vmem:[%s13284_s2 + $0x210] sm:$0xff]   ;;  %v10681_v9 = vld [vmem:[%s13284_s2 + $0x224] sm:$0xff]  }
  0x66   :  { %9573 = vmatprep.subr.bf16.mxu0 %v10940_v1  ;;  %9583 = vmatprep.subr.bf16.mxu1 %v10940_v1 }
  0x67   :  { %9577 = vmatprep.mubr.msk.bf16.mxu0 %vm10941_vm1, %v10940_v1  ;;  %9587 = vmatprep.mubr.msk.bf16.mxu1 %vm10941_vm1, %v10940_v1 }
  0x69   :  { %9574 = vmatpush3.bf16.msra.mxu0 %v10644_v10  ;;  %9584 = vmatpush3.bf16.msra.mxu1 %v10645_v11  ;;  %v10683_v10 = vld [vmem:[%s13284_s2 + $0x22c] ss:$0 sps:$4 sm:$0x33]   ;;  %v2038_v11 = vsel %vm450_vm0, %v10682_v8, 0 }
  0x6a   :  { %9575 = vmatprep.subr.bf16.mxu0 %v10940_v1  ;;  %9585 = vmatprep.subr.bf16.mxu1 %v10940_v1  ;;  %v2099_v12 = vsel %vm450_vm0, %v10683_v10, 0  ;;  %v10715_v10 = vld [vmem:[%s13284_s2 + $0x30c] sm:$0xff]  }
  0x6d   :  { %9576 = vmatpush3.bf16.msra.mxu0 %v1306_v14  ;;  %9586 = vmatpush3.bf16.msra.mxu1 %v1367_v15  ;;  %v10684_v14 = vld [vmem:[%s13284_s2 + $0x230] sm:$0xff]   ;;  %v67_v15 = vld [vmem:[%s13283_s1 + $0x1b] sm:$0x1] }
  0x6e   :  { %9591 = vmatprep.subr.bf16.mxu0 %v10940_v1  ;;  %9601 = vmatprep.subr.bf16.mxu1 %v10940_v1 }
  0x70   :  { %9578 = vmatmul.mubr.msk.bf16.vlgmr.msra.gmra.mrb[28].mxu0 %vm446_vm2, %v54_v16  ;;  %9588 = vmatmul.mubr.msk.bf16.vlgmr.msra.gmra.mrb[28].mxu1 %vm446_vm2, %v55_v18  ;;  %v10685_v16 = vld [vmem:[%s13284_s2 + $0x244] sm:$0xff]   ;;  %v10688_v18 = vld [vmem:[%s13284_s2 + $0x240] ss:$0 sps:$4 sm:$0x33]  }
  0x71   :  { %9592 = vmatpush3.bf16.msra.mxu0 %v10648_v17  ;;  %9602 = vmatpush3.bf16.msra.mxu1 %v10649_v19  ;;  %v10686_v17 = vld [vmem:[%s13284_s2 + $0x238] sm:$0xff]   ;;  %v10687_v19 = vld [vmem:[%s13284_s2 + $0x24c] sm:$0xff]  }
  0x72   :  { %9593 = vmatprep.subr.bf16.mxu0 %v10940_v1  ;;  %9603 = vmatprep.subr.bf16.mxu1 %v10940_v1 }
  0x73   :  { %9597 = vmatprep.mubr.msk.bf16.mxu0 %vm10941_vm1, %v10940_v1  ;;  %9607 = vmatprep.mubr.msk.bf16.mxu1 %vm10941_vm1, %v10940_v1 }
  0x75   :  { %9594 = vmatpush3.bf16.msra.mxu0 %v10650_v20  ;;  %9604 = vmatpush3.bf16.msra.mxu1 %v10651_v21  ;;  %v10689_v20 = vld [vmem:[%s13284_s2 + $0x254] ss:$0 sps:$4 sm:$0x33]   ;;  %v2160_v21 = vsel %vm450_vm0, %v10688_v18, 0 }
  0x76   :  { %9595 = vmatprep.subr.bf16.mxu0 %v10940_v1  ;;  %9605 = vmatprep.subr.bf16.mxu1 %v10940_v1  ;;  %v2221_v22 = vsel %vm450_vm0, %v10689_v20, 0 }
  0x79   :  { %9596 = vmatpush3.bf16.msra.mxu0 %v1428_v24  ;;  %9606 = vmatpush3.bf16.msra.mxu1 %v1489_v25  ;;  %v10690_v24 = vld [vmem:[%s13284_s2 + $0x258] sm:$0xff]  }
  0x7a   :  { %9611 = vmatprep.subr.bf16.mxu0 %v10940_v1  ;;  %9621 = vmatprep.subr.bf16.mxu1 %v10940_v1  ;;  %v69_v25 = vld [vmem:[%s13283_s1 + $0x1d] sm:$0x1] }
  0x7c   :  { %9598 = vmatmul.mubr.msk.bf16.vlgmr.msra.gmra.mrb[32].mxu0 %vm446_vm2, %v56_v26  ;;  %9608 = vmatmul.mubr.msk.bf16.vlgmr.msra.gmra.mrb[32].mxu1 %vm446_vm2, %v57_v28  ;;  %v10691_v26 = vld [vmem:[%s13284_s2 + $0x26c] sm:$0xff]   ;;  %v10694_v28 = vld [vmem:[%s13284_s2 + $0x268] ss:$0 sps:$4 sm:$0x33]  }
  0x7d   :  { %9612 = vmatpush3.bf16.msra.mxu0 %v10654_v27  ;;  %9622 = vmatpush3.bf16.msra.mxu1 %v10655_v29  ;;  %v10692_v27 = vld [vmem:[%s13284_s2 + $0x260] sm:$0xff]   ;;  %v10693_v29 = vld [vmem:[%s13284_s2 + $0x274] sm:$0xff]  }
  0x7e   :  { %9613 = vmatprep.subr.bf16.mxu0 %v10940_v1  ;;  %9623 = vmatprep.subr.bf16.mxu1 %v10940_v1 }
  0x7f   :  { %9617 = vmatprep.mubr.msk.bf16.mxu0 %vm10941_vm1, %v10940_v1  ;;  %9627 = vmatprep.mubr.msk.bf16.mxu1 %vm10941_vm1, %v10940_v1 }
  0x81   :  { %9614 = vmatpush3.bf16.msra.mxu0 %v10656_v30  ;;  %9624 = vmatpush3.bf16.msra.mxu1 %v10657_v31  ;;  %v10695_v30 = vld [vmem:[%s13284_s2 + $0x27c] ss:$0 sps:$4 sm:$0x33]   ;;  %v2282_v31 = vsel %vm450_vm0, %v10694_v28, 0  ;;  %v79_v28 = vld [vmem:[%s13283_s1 + $0x27] sm:$0x1] }
  0x82   :  { %9615 = vmatprep.subr.bf16.mxu0 %v10940_v1  ;;  %9625 = vmatprep.subr.bf16.mxu1 %v10940_v1  ;;  %v2343_v32 = vsel %vm450_vm0, %v10695_v30, 0  ;;  %v10724_v30 = vld [vmem:[%s13284_s2 + $0x330] ss:$0 sps:$4 sm:$0x33]  }
  0x85   :  { %9616 = vmatpush3.bf16.msra.mxu0 %v1550_v34  ;;  %9626 = vmatpush3.bf16.msra.mxu1 %v1611_v35  ;;  %v10696_v34 = vld [vmem:[%s13284_s2 + $0x280] sm:$0xff]   ;;  %v71_v35 = vld [vmem:[%s13283_s1 + $0x1f] sm:$0x1] }
  0x86   :  { %9631 = vmatprep.subr.bf16.mxu0 %v10940_v1  ;;  %9641 = vmatprep.subr.bf16.mxu1 %v10940_v1 }
  0x88   :  { %9618 = vmatmul.mubr.msk.bf16.vlgmr.msra.gmra.mrb[36].mxu0 %vm446_vm2, %v58_v37  ;;  %9628 = vmatmul.mubr.msk.bf16.vlgmr.msra.gmra.mrb[36].mxu1 %vm446_vm2, %v59_v38  ;;  %v10698_v37 = vld [vmem:[%s13284_s2 + $0x288] sm:$0xff]   ;;  %v10700_v38 = vld [vmem:[%s13284_s2 + $0x290] ss:$0 sps:$4 sm:$0x33]  }
  0x89   :  { %9632 = vmatpush3.bf16.msra.mxu0 %v10660_v36  ;;  %9642 = vmatpush3.bf16.msra.mxu1 %v10661_v39  ;;  %v10697_v36 = vld [vmem:[%s13284_s2 + $0x294] sm:$0xff]   ;;  %v10699_v39 = vld [vmem:[%s13284_s2 + $0x29c] sm:$0xff]   ;;  %v2404_v41 = vsel %vm450_vm0, %v10700_v38, 0 }
  0x8a   :  { %9633 = vmatprep.subr.bf16.mxu0 %v10940_v1  ;;  %9643 = vmatprep.subr.bf16.mxu1 %v10940_v1 }
  0x8b   :  { %9637 = vmatprep.mubr.msk.bf16.mxu0 %vm10941_vm1, %v10940_v1  ;;  %9647 = vmatprep.mubr.msk.bf16.mxu1 %vm10941_vm1, %v10940_v1 }
  0x8d   :  { %9634 = vmatpush3.bf16.msra.mxu0 %v10662_v40  ;;  %9644 = vmatpush3.bf16.msra.mxu1 %v10663_v42  ;;  %v10701_v40 = vld [vmem:[%s13284_s2 + $0x2a4] ss:$0 sps:$4 sm:$0x33]  }
  0x8e   :  { %9635 = vmatprep.subr.bf16.mxu0 %v10940_v1  ;;  %9645 = vmatprep.subr.bf16.mxu1 %v10940_v1  ;;  %v2465_v42 = vsel %vm450_vm0, %v10701_v40, 0  ;;  %v10726_v40 = vld [vmem:[%s13284_s2 + $0x348] sm:$0xff]  }
  0x91   :  { %9636 = vmatpush3.bf16.msra.mxu0 %v1672_v44  ;;  %9646 = vmatpush3.bf16.msra.mxu1 %v1733_v45  ;;  %v10702_v44 = vld [vmem:[%s13284_s2 + $0x2a8] sm:$0xff]   ;;  %v73_v45 = vld [vmem:[%s13283_s1 + $0x21] sm:$0x1] }
  0x92   :  { %9651 = vmatprep.subr.bf16.mxu0 %v10940_v1  ;;  %9661 = vmatprep.subr.bf16.mxu1 %v10940_v1 }
  0x94   :  { %9638 = vmatmul.mubr.msk.bf16.vlgmr.msra.gmra.mrb[40].mxu0 %vm446_vm2, %v60_v46  ;;  %9648 = vmatmul.mubr.msk.bf16.vlgmr.msra.gmra.mrb[40].mxu1 %vm446_vm2, %v61_v49  ;;  %v10703_v46 = vld [vmem:[%s13284_s2 + $0x2bc] sm:$0xff]   ;;  %v10705_v49 = vld [vmem:[%s13284_s2 + $0x2c4] sm:$0xff]  }
  0x95   :  { %9652 = vmatpush3.bf16.msra.mxu0 %v10666_v47  ;;  %9662 = vmatpush3.bf16.msra.mxu1 %v10667_v48  ;;  %v10704_v47 = vld [vmem:[%s13284_s2 + $0x2b0] sm:$0xff]   ;;  %v10706_v48 = vld [vmem:[%s13284_s2 + $0x2b8] ss:$0 sps:$4 sm:$0x33]  }
  0x96   :  { %9653 = vmatprep.subr.bf16.mxu0 %v10940_v1  ;;  %9663 = vmatprep.subr.bf16.mxu1 %v10940_v1  ;;  %v2526_v51 = vsel %vm450_vm0, %v10706_v48, 0  ;;  %v10730_v48 = vld [vmem:[%s13284_s2 + $0x358] ss:$0 sps:$4 sm:$0x33]  }
  0x97   :  { %9657 = vmatprep.mubr.msk.bf16.mxu0 %vm10941_vm1, %v10940_v1  ;;  %9667 = vmatprep.mubr.msk.bf16.mxu1 %vm10941_vm1, %v10940_v1 }
  0x99   :  { %9654 = vmatpush3.bf16.msra.mxu0 %v10668_v50  ;;  %9664 = vmatpush3.bf16.msra.mxu1 %v10669_v52  ;;  %v10707_v50 = vld [vmem:[%s13284_s2 + $0x2cc] ss:$0 sps:$4 sm:$0x33]  }
  0x9a   :  { %9655 = vmatprep.subr.bf16.mxu0 %v10940_v1  ;;  %9665 = vmatprep.subr.bf16.mxu1 %v10940_v1  ;;  %v2587_v52 = vsel %vm450_vm0, %v10707_v50, 0  ;;  %v10731_v50 = vld [vmem:[%s13284_s2 + $0x36c] ss:$0 sps:$4 sm:$0x33]  }
  0x9d   :  { %9656 = vmatpush3.bf16.msra.mxu0 %v1794_v54  ;;  %9666 = vmatpush3.bf16.msra.mxu1 %v1855_v55  ;;  %v10708_v54 = vld [vmem:[%s13284_s2 + $0x2d0] sm:$0xff]   ;;  %v75_v55 = vld [vmem:[%s13283_s1 + $0x23] sm:$0x1] }
  0x9e   :  { %9671 = vmatprep.subr.bf16.mxu0 %v10940_v1  ;;  %9681 = vmatprep.subr.bf16.mxu1 %v10940_v1 }
  0xa0   :  { %9658 = vmatmul.mubr.msk.bf16.vlgmr.msra.gmra.mrb[44].mxu0 %vm446_vm2, %v62_v56  ;;  %9668 = vmatmul.mubr.msk.bf16.vlgmr.msra.gmra.mrb[44].mxu1 %vm446_vm2, %v63_v58  ;;  %v10709_v56 = vld [vmem:[%s13284_s2 + $0x2e4] sm:$0xff]   ;;  %v10712_v58 = vld [vmem:[%s13284_s2 + $0x2e0] ss:$0 sps:$4 sm:$0x33]  }
  0xa1   :  { %9672 = vmatpush3.bf16.msra.mxu0 %v10672_v57  ;;  %9682 = vmatpush3.bf16.msra.mxu1 %v10673_v59  ;;  %v10710_v57 = vld [vmem:[%s13284_s2 + $0x2d8] sm:$0xff]   ;;  %v10711_v59 = vld [vmem:[%s13284_s2 + $0x2ec] sm:$0xff]   ;;  %v2648_v61 = vsel %vm450_vm0, %v10712_v58, 0  ;;  %v83_v58 = vld [vmem:[%s13283_s1 + $0x2b] sm:$0x1] }
  0xa2   :  { %9673 = vmatprep.subr.bf16.mxu0 %v10940_v1  ;;  %9683 = vmatprep.subr.bf16.mxu1 %v10940_v1 }
  0xa3   :  { %9677 = vmatprep.mubr.msk.bf16.mxu0 %vm10941_vm1, %v10940_v1  ;;  %9687 = vmatprep.mubr.msk.bf16.mxu1 %vm10941_vm1, %v10940_v1 }
  0xa5   :  { %9674 = vmatpush3.bf16.msra.mxu0 %v10674_v60  ;;  %9684 = vmatpush3.bf16.msra.mxu1 %v10675_v62  ;;  %v10713_v60 = vld [vmem:[%s13284_s2 + $0x2f4] ss:$0 sps:$4 sm:$0x33]  }
  0xa6   :  { %9675 = vmatprep.subr.bf16.mxu0 %v10940_v1  ;;  %9685 = vmatprep.subr.bf16.mxu1 %v10940_v1  ;;  %v2709_v63 = vsel %vm450_vm0, %v10713_v60, 0 }
  0xa9   :  { %9676 = vmatpush3.bf16.msra.mxu0 %v1916_v0  ;;  %9686 = vmatpush3.bf16.msra.mxu1 %v1977_v2  ;;  %v76_v0 = vld [vmem:[%s13283_s1 + $0x24] sm:$0x1] }
  0xaa   :  { %9691 = vmatprep.subr.bf16.mxu0 %v10940_v1  ;;  %9701 = vmatprep.subr.bf16.mxu1 %v10940_v1 }
  0xac   :  { %9678 = vmatmul.mubr.msk.bf16.vlgmr.msra.gmra.mrb[48].mxu0 %vm446_vm2, %v64_v3  ;;  %9688 = vmatmul.mubr.msk.bf16.vlgmr.msra.gmra.mrb[48].mxu1 %vm446_vm2, %v65_v5  ;;  %v10714_v5 = vld [vmem:[%s13284_s2 + $0x2f8] sm:$0xff]  }
  0xad   :  { %9692 = vmatpush3.bf16.msra.mxu0 %v10678_v4  ;;  %9702 = vmatpush3.bf16.msra.mxu1 %v10679_v6  ;;  %v77_v4 = vld [vmem:[%s13283_s1 + $0x25] sm:$0x1] }
  0xae   :  { %9693 = vmatprep.subr.bf16.mxu0 %v10940_v1  ;;  %9703 = vmatprep.subr.bf16.mxu1 %v10940_v1 }
  0xaf   :  { %9697 = vmatprep.mubr.msk.bf16.mxu0 %vm10941_vm1, %v10940_v1  ;;  %9707 = vmatprep.mubr.msk.bf16.mxu1 %vm10941_vm1, %v10940_v1 }
  0xb1   :  { %9694 = vmatpush3.bf16.msra.mxu0 %v10680_v7  ;;  %9704 = vmatpush3.bf16.msra.mxu1 %v10681_v9 }
  0xb2   :  { %9695 = vmatprep.subr.bf16.mxu0 %v10940_v1  ;;  %9705 = vmatprep.subr.bf16.mxu1 %v10940_v1 }
  0xb5   :  { %9696 = vmatpush3.bf16.msra.mxu0 %v2038_v11  ;;  %9706 = vmatpush3.bf16.msra.mxu1 %v2099_v12  ;;  %v10718_v12 = vld [vmem:[%s13284_s2 + $0x308] ss:$0 sps:$4 sm:$0x33]  }
  0xb6   :  { %9711 = vmatprep.subr.bf16.mxu0 %v10940_v1  ;;  %9721 = vmatprep.subr.bf16.mxu1 %v10940_v1 }
  0xb8   :  { %9698 = vmatmul.mubr.msk.bf16.vlgmr.msra.gmra.mrb[52].mxu0 %vm446_vm2, %v66_v13  ;;  %9708 = vmatmul.mubr.msk.bf16.vlgmr.msra.gmra.mrb[52].mxu1 %vm446_vm2, %v67_v15  ;;  %v10716_v13 = vld [vmem:[%s13284_s2 + $0x300] sm:$0xff]   ;;  %v10717_v15 = vld [vmem:[%s13284_s2 + $0x314] sm:$0xff]  }
  0xb9   :  { %9712 = vmatpush3.bf16.msra.mxu0 %v10684_v14  ;;  %9722 = vmatpush3.bf16.msra.mxu1 %v10685_v16  ;;  %v10719_v14 = vld [vmem:[%s13284_s2 + $0x31c] ss:$0 sps:$4 sm:$0x33]   ;;  %v2770_v16 = vsel %vm450_vm0, %v10718_v12, 0  ;;  %v84_v12 = vld [vmem:[%s13283_s1 + $0x2c] sm:$0x1] }
  0xba   :  { %9713 = vmatprep.subr.bf16.mxu0 %v10940_v1  ;;  %9723 = vmatprep.subr.bf16.mxu1 %v10940_v1  ;;  %v2831_v18 = vsel %vm450_vm0, %v10719_v14, 0 }
  0xbb   :  { %9717 = vmatprep.mubr.msk.bf16.mxu0 %vm10941_vm1, %v10940_v1  ;;  %9727 = vmatprep.mubr.msk.bf16.mxu1 %vm10941_vm1, %v10940_v1 }
  0xbd   :  { %9714 = vmatpush3.bf16.msra.mxu0 %v10686_v17  ;;  %9724 = vmatpush3.bf16.msra.mxu1 %v10687_v19  ;;  %v78_v19 = vld [vmem:[%s13283_s1 + $0x26] sm:$0x1] }
  0xbe   :  { %9715 = vmatprep.subr.bf16.mxu0 %v10940_v1  ;;  %9725 = vmatprep.subr.bf16.mxu1 %v10940_v1 }
  0xc1   :  { %9716 = vmatpush3.bf16.msra.mxu0 %v2160_v21  ;;  %9726 = vmatpush3.bf16.msra.mxu1 %v2221_v22  ;;  %v10720_v22 = vld [vmem:[%s13284_s2 + $0x320] sm:$0xff]  }
  0xc2   :  { %9731 = vmatprep.subr.bf16.mxu0 %v10940_v1  ;;  %9741 = vmatprep.subr.bf16.mxu1 %v10940_v1 }
  0xc4   :  { %9718 = vmatmul.mubr.msk.bf16.vlgmr.msra.gmra.mrb[56].mxu0 %vm446_vm2, %v68_v23  ;;  %9728 = vmatmul.mubr.msk.bf16.vlgmr.msra.gmra.mrb[56].mxu1 %vm446_vm2, %v69_v25  ;;  %v10721_v23 = vld [vmem:[%s13284_s2 + $0x334] sm:$0xff]  }
  0xc5   :  { %9732 = vmatpush3.bf16.msra.mxu0 %v10690_v24  ;;  %9742 = vmatpush3.bf16.msra.mxu1 %v10691_v26 }
  0xc6   :  { %9733 = vmatprep.subr.bf16.mxu0 %v10940_v1  ;;  %9743 = vmatprep.subr.bf16.mxu1 %v10940_v1 }
  0xc7   :  { %9737 = vmatprep.mubr.msk.bf16.mxu0 %vm10941_vm1, %v10940_v1  ;;  %9747 = vmatprep.mubr.msk.bf16.mxu1 %vm10941_vm1, %v10940_v1 }
  0xc9   :  { %9734 = vmatpush3.bf16.msra.mxu0 %v10692_v27  ;;  %9744 = vmatpush3.bf16.msra.mxu1 %v10693_v29 }
  0xca   :  { %9735 = vmatprep.subr.bf16.mxu0 %v10940_v1  ;;  %9745 = vmatprep.subr.bf16.mxu1 %v10940_v1 }
  0xcd   :  { %9736 = vmatpush3.bf16.msra.mxu0 %v2282_v31  ;;  %9746 = vmatpush3.bf16.msra.mxu1 %v2343_v32  ;;  %v10722_v31 = vld [vmem:[%s13284_s2 + $0x328] sm:$0xff]   ;;  %v10725_v32 = vld [vmem:[%s13284_s2 + $0x344] ss:$0 sps:$4 sm:$0x33]  }
  0xce   :  { %9751 = vmatprep.subr.bf16.mxu0 %v10940_v1  ;;  %9761 = vmatprep.subr.bf16.mxu1 %v10940_v1 }
  0xd0   :  { %9738 = vmatmul.mubr.msk.bf16.vlgmr.msra.gmra.mrb[60].mxu0 %vm446_vm2, %v70_v33  ;;  %9748 = vmatmul.mubr.msk.bf16.vlgmr.msra.gmra.mrb[60].mxu1 %vm446_vm2, %v71_v35  ;;  %v10723_v33 = vld [vmem:[%s13284_s2 + $0x33c] sm:$0xff]  }
  0xd1   :  { %9752 = vmatpush3.bf16.msra.mxu0 %v10696_v34  ;;  %9762 = vmatpush3.bf16.msra.mxu1 %v10697_v36  ;;  %v2892_v34 = vsel %vm450_vm0, %v10724_v30, 0  ;;  %v2953_v36 = vsel %vm450_vm0, %v10725_v32, 0  ;;  %v86_v32 = vld [vmem:[%s13283_s1 + $0x2e] sm:$0x1] }
  0xd2   :  { %9753 = vmatprep.subr.bf16.mxu0 %v10940_v1  ;;  %9763 = vmatprep.subr.bf16.mxu1 %v10940_v1 }
  0xd3   :  { %9757 = vmatprep.mubr.msk.bf16.mxu0 %vm10941_vm1, %v10940_v1  ;;  %9767 = vmatprep.mubr.msk.bf16.mxu1 %vm10941_vm1, %v10940_v1 }
  0xd5   :  { %9754 = vmatpush3.bf16.msra.mxu0 %v10698_v37  ;;  %9764 = vmatpush3.bf16.msra.mxu1 %v10699_v39  ;;  %v80_v37 = vld [vmem:[%s13283_s1 + $0x28] sm:$0x1] }
  0xd6   :  { %9755 = vmatprep.subr.bf16.mxu0 %v10940_v1  ;;  %9765 = vmatprep.subr.bf16.mxu1 %v10940_v1 }
  0xd9   :  { %9756 = vmatpush3.bf16.msra.mxu0 %v2404_v41  ;;  %9766 = vmatpush3.bf16.msra.mxu1 %v2465_v42  ;;  %v10727_v41 = vld [vmem:[%s13284_s2 + $0x35c] sm:$0xff]  }
  0xda   :  { %9771 = vmatprep.subr.bf16.mxu0 %v10940_v1  ;;  %9781 = vmatprep.subr.bf16.mxu1 %v10940_v1 }
  0xdc   :  { %9758 = vmatmul.mubr.msk.bf16.vlgmr.msra.gmra.mrb[64].mxu0 %vm446_vm2, %v72_v43  ;;  %9768 = vmatmul.mubr.msk.bf16.vlgmr.msra.gmra.mrb[64].mxu1 %vm446_vm2, %v73_v45 }
  0xdd   :  { %9772 = vmatpush3.bf16.msra.mxu0 %v10702_v44  ;;  %9782 = vmatpush3.bf16.msra.mxu1 %v10703_v46  ;;  %v81_v46 = vld [vmem:[%s13283_s1 + $0x29] sm:$0x1] }
  0xde   :  { %9773 = vmatprep.subr.bf16.mxu0 %v10940_v1  ;;  %9783 = vmatprep.subr.bf16.mxu1 %v10940_v1 }
  0xdf   :  { %9777 = vmatprep.mubr.msk.bf16.mxu0 %vm10941_vm1, %v10940_v1  ;;  %9787 = vmatprep.mubr.msk.bf16.mxu1 %vm10941_vm1, %v10940_v1 }
  0xe1   :  { %9774 = vmatpush3.bf16.msra.mxu0 %v10704_v47  ;;  %9784 = vmatpush3.bf16.msra.mxu1 %v10705_v49  ;;  %v10728_v49 = vld [vmem:[%s13284_s2 + $0x350] sm:$0xff]  }
  0xe2   :  { %9775 = vmatprep.subr.bf16.mxu0 %v10940_v1  ;;  %9785 = vmatprep.subr.bf16.mxu1 %v10940_v1 }
  0xe5   :  { %9776 = vmatpush3.bf16.msra.mxu0 %v2526_v51  ;;  %9786 = vmatpush3.bf16.msra.mxu1 %v2587_v52  ;;  %v10729_v51 = vld [vmem:[%s13284_s2 + $0x364] sm:$0xff]   ;;  %v3014_v52 = vsel %vm450_vm0, %v10730_v48, 0 }
  0xe6   :  { %9791 = vmatprep.subr.bf16.mxu0 %v10940_v1  ;;  %9801 = vmatprep.subr.bf16.mxu1 %v10940_v1  ;;  %v10749_v48 = vld [vmem:[%s13284_s2 + $0x3e4] ss:$0 sps:$4 sm:$0x33]  }
  0xe8   :  { %9778 = vmatmul.mubr.msk.bf16.vlgmr.msra.gmra.mrb[68].mxu0 %vm446_vm2, %v74_v53  ;;  %9788 = vmatmul.mubr.msk.bf16.vlgmr.msra.gmra.mrb[68].mxu1 %vm446_vm2, %v75_v55  ;;  %v82_v55 = vld [vmem:[%s13283_s1 + $0x2a] sm:$0x1] }
  0xe9   :  { %9792 = vmatpush3.bf16.msra.mxu0 %v10708_v54  ;;  %9802 = vmatpush3.bf16.msra.mxu1 %v10709_v56  ;;  %v3075_v54 = vsel %vm450_vm0, %v10731_v50, 0 }
  0xea   :  { %9793 = vmatprep.subr.bf16.mxu0 %v10940_v1  ;;  %9803 = vmatprep.subr.bf16.mxu1 %v10940_v1 }
  0xeb   :  { %9797 = vmatprep.mubr.msk.bf16.mxu0 %vm10941_vm1, %v10940_v1  ;;  %9807 = vmatprep.mubr.msk.bf16.mxu1 %vm10941_vm1, %v10940_v1 }
  0xed   :  { %9794 = vmatpush3.bf16.msra.mxu0 %v10710_v57  ;;  %9804 = vmatpush3.bf16.msra.mxu1 %v10711_v59  ;;  %v10732_v59 = vld [vmem:[%s13284_s2 + $0x370] sm:$0xff]  }
  0xee   :  { %9795 = vmatprep.subr.bf16.mxu0 %v10940_v1  ;;  %9805 = vmatprep.subr.bf16.mxu1 %v10940_v1 }
  0xef   :  { %v11712_v62 = vpop.f32.mrb[0].mxu0  ;;  %v11719_v2 = vpop.f32.mrb[0].mxu1 }
  0xf0   :  { %v9439_v3 = vpop.f32.mrb[1].mxu0  ;;  %v9449_v6 = vpop.f32.mrb[1].mxu1 }
  0xf1   :  { %v491_v7 = vpop.f32.mrb[2].mxu0  ;;  %9796 = vmatpush3.bf16.msra.mxu0 %v2648_v61  ;;  %v552_v8 = vpop.f32.mrb[2].mxu1  ;;  %9806 = vmatpush3.bf16.msra.mxu1 %v2709_v63  ;;  %v10733_v3 = vld [vmem:[%s13284_s2 + $0x384] sm:$0xff]   ;;  %v10735_v6 = vld [vmem:[%s13284_s2 + $0x38c] sm:$0xff]  }
  0xf2   :  { %v9440_v9 = vpop.f32.mrb[3].mxu0  ;;  %9811 = vmatprep.subr.bf16.mxu0 %v10940_v1  ;;  %v9450_v11 = vpop.f32.mrb[3].mxu1  ;;  %9821 = vmatprep.subr.bf16.mxu1 %v10940_v1  ;;  %v10736_v7 = vld [vmem:[%s13284_s2 + $0x380] ss:$0 sps:$4 sm:$0x33]  }
  0xf3   :  { %v10737_v8 = vld [vmem:[%s13284_s2 + $0x394] ss:$0 sps:$4 sm:$0x33]   ;;  %v3136_v9 = vsel %vm450_vm0, %v10736_v7, 0 }
  0xf4   :  { %9798 = vmatmul.mubr.msk.bf16.vlgmr.msra.gmra.mrb[72].mxu0 %vm446_vm2, %v76_v0  ;;  %9808 = vmatmul.mubr.msk.bf16.vlgmr.msra.gmra.mrb[72].mxu1 %vm446_vm2, %v77_v4  ;;  %v3197_v11 = vsel %vm450_vm0, %v10737_v8, 0  ;;  %v10755_v7 = vld [vmem:[%s13284_s2 + $0x40c] ss:$0 sps:$4 sm:$0x33]  }
  0xf5   :  { %9812 = vmatpush3.bf16.msra.mxu0 %v10714_v5  ;;  %9822 = vmatpush3.bf16.msra.mxu1 %v10715_v10  ;;  %v10734_v5 = vld [vmem:[%s13284_s2 + $0x378] sm:$0xff]  }
  0xf6   :  { %9813 = vmatprep.subr.bf16.mxu0 %v10940_v1  ;;  %9823 = vmatprep.subr.bf16.mxu1 %v10940_v1 }
  0xf7   :  { %9817 = vmatprep.mubr.msk.bf16.mxu0 %vm10941_vm1, %v10940_v1  ;;  %9827 = vmatprep.mubr.msk.bf16.mxu1 %vm10941_vm1, %v10940_v1 }
  0xf9   :  { %9814 = vmatpush3.bf16.msra.mxu0 %v10716_v13  ;;  %9824 = vmatpush3.bf16.msra.mxu1 %v10717_v15  ;;  %v85_v15 = vld [vmem:[%s13283_s1 + $0x2d] sm:$0x1] }
  0xfa   :  { %9815 = vmatprep.subr.bf16.mxu0 %v10940_v1  ;;  %9825 = vmatprep.subr.bf16.mxu1 %v10940_v1 }
  0xfb   :  { %v11754_v17 = vpop.f32.mrb[4].mxu0  ;;  %v11761_v20 = vpop.f32.mrb[4].mxu1 }
  0xfc   :  { %v9459_v21 = vpop.f32.mrb[5].mxu0  ;;  %v9469_v24 = vpop.f32.mrb[5].mxu1 }
  0xfd   :  { %v613_v25 = vpop.f32.mrb[6].mxu0  ;;  %9816 = vmatpush3.bf16.msra.mxu0 %v2770_v16  ;;  %v674_v26 = vpop.f32.mrb[6].mxu1  ;;  %9826 = vmatpush3.bf16.msra.mxu1 %v2831_v18  ;;  %v10738_v16 = vld [vmem:[%s13284_s2 + $0x398] sm:$0xff]  }
  0xfe   :  { %v9460_v27 = vpop.f32.mrb[7].mxu0  ;;  %9831 = vmatprep.subr.bf16.mxu0 %v10940_v1  ;;  %v9470_v29 = vpop.f32.mrb[7].mxu1  ;;  %9841 = vmatprep.subr.bf16.mxu1 %v10940_v1  ;;  %v10740_v25 = vld [vmem:[%s13284_s2 + $0x3a0] sm:$0xff]   ;;  %v10741_v26 = vld [vmem:[%s13284_s2 + $0x3b4] sm:$0xff]  }
  0xff   :  { %v10742_v27 = vld [vmem:[%s13284_s2 + $0x3a8] ss:$0 sps:$4 sm:$0x33]  }
 0x100   :  { %9818 = vmatmul.mubr.msk.bf16.vlgmr.msra.gmra.mrb[76].mxu0 %vm446_vm2, %v78_v19  ;;  %9828 = vmatmul.mubr.msk.bf16.vlgmr.msra.gmra.mrb[76].mxu1 %vm446_vm2, %v79_v28  ;;  %v10743_v28 = vld [vmem:[%s13284_s2 + $0x3bc] ss:$0 sps:$4 sm:$0x33]   ;;  %v3258_v29 = vsel %vm450_vm0, %v10742_v27, 0  ;;  %v10759_v27 = vld [vmem:[%s13284_s2 + $0x42c] sm:$0xff]  }
 0x101   :  { %9832 = vmatpush3.bf16.msra.mxu0 %v10720_v22  ;;  %9842 = vmatpush3.bf16.msra.mxu1 %v10721_v23  ;;  %v10739_v23 = vld [vmem:[%s13284_s2 + $0x3ac] sm:$0xff]  }
 0x102   :  { %9833 = vmatprep.subr.bf16.mxu0 %v10940_v1  ;;  %9843 = vmatprep.subr.bf16.mxu1 %v10940_v1 }
 0x103   :  { %9837 = vmatprep.mubr.msk.bf16.mxu0 %vm10941_vm1, %v10940_v1  ;;  %9847 = vmatprep.mubr.msk.bf16.mxu1 %vm10941_vm1, %v10940_v1 }
 0x105   :  { %9834 = vmatpush3.bf16.msra.mxu0 %v10722_v31  ;;  %9844 = vmatpush3.bf16.msra.mxu1 %v10723_v33  ;;  %v3319_v31 = vsel %vm450_vm0, %v10743_v28, 0  ;;  %v10760_v28 = vld [vmem:[%s13284_s2 + $0x420] ss:$0 sps:$4 sm:$0x33]  }
 0x106   :  { %9835 = vmatprep.subr.bf16.mxu0 %v10940_v1  ;;  %9845 = vmatprep.subr.bf16.mxu1 %v10940_v1 }
 0x107   :  { %v11796_v35 = vpop.f32.mrb[8].mxu0  ;;  %v11803_v38 = vpop.f32.mrb[8].mxu1 }
 0x108   :  { %v9479_v39 = vpop.f32.mrb[9].mxu0  ;;  %v9489_v42 = vpop.f32.mrb[9].mxu1 }
 0x109   :  { %v735_v43 = vpop.f32.mrb[10].mxu0  ;;  %9836 = vmatpush3.bf16.msra.mxu0 %v2892_v34  ;;  %v796_v44 = vpop.f32.mrb[10].mxu1  ;;  %9846 = vmatpush3.bf16.msra.mxu1 %v2953_v36  ;;  %v87_v36 = vld [vmem:[%s13283_s1 + $0x2f] sm:$0x1] }
 0x10a   :  { %v9480_v45 = vpop.f32.mrb[11].mxu0  ;;  %9851 = vmatprep.subr.bf16.mxu0 %v10940_v1  ;;  %v9490_v47 = vpop.f32.mrb[11].mxu1  ;;  %9861 = vmatprep.subr.bf16.mxu1 %v10940_v1  ;;  %v10745_v43 = vld [vmem:[%s13284_s2 + $0x3d4] sm:$0xff]  }
 0x10b   :  { %v10746_v45 = vld [vmem:[%s13284_s2 + $0x3c8] sm:$0xff]   ;;  %v10748_v47 = vld [vmem:[%s13284_s2 + $0x3d0] ss:$0 sps:$4 sm:$0x33]  }
 0x10c   :  { %9838 = vmatmul.mubr.msk.bf16.vlgmr.msra.gmra.mrb[80].mxu0 %vm446_vm2, %v80_v37  ;;  %9848 = vmatmul.mubr.msk.bf16.vlgmr.msra.gmra.mrb[80].mxu1 %vm446_vm2, %v81_v46  ;;  %v10744_v37 = vld [vmem:[%s13284_s2 + $0x3c0] sm:$0xff]  }
 0x10d   :  { %9852 = vmatpush3.bf16.msra.mxu0 %v10726_v40  ;;  %9862 = vmatpush3.bf16.msra.mxu1 %v10727_v41  ;;  %v10747_v46 = vld [vmem:[%s13284_s2 + $0x3dc] sm:$0xff]  }
 0x10e   :  { %9853 = vmatprep.subr.bf16.mxu0 %v10940_v1  ;;  %9863 = vmatprep.subr.bf16.mxu1 %v10940_v1 }
 0x10f   :  { %9857 = vmatprep.mubr.msk.bf16.mxu0 %vm10941_vm1, %v10940_v1  ;;  %9867 = vmatprep.mubr.msk.bf16.mxu1 %vm10941_vm1, %v10940_v1 }
 0x111   :  { %9854 = vmatpush3.bf16.msra.mxu0 %v10728_v49  ;;  %9864 = vmatpush3.bf16.msra.mxu1 %v10729_v51  ;;  %v3380_v49 = vsel %vm450_vm0, %v10748_v47, 0  ;;  %v3441_v51 = vsel %vm450_vm0, %v10749_v48, 0  ;;  %v10764_v48 = vld [vmem:[%s13284_s2 + $0x440] sm:$0xff]  }
 0x112   :  { %9855 = vmatprep.subr.bf16.mxu0 %v10940_v1  ;;  %9865 = vmatprep.subr.bf16.mxu1 %v10940_v1 }
 0x113   :  { %v11838_v53 = vpop.f32.mrb[12].mxu0  ;;  %v11845_v56 = vpop.f32.mrb[12].mxu1 }
 0x114   :  { %v9499_v57 = vpop.f32.mrb[13].mxu0  ;;  %v9509_v60 = vpop.f32.mrb[13].mxu1 }
 0x115   :  { %v857_v61 = vpop.f32.mrb[14].mxu0  ;;  %9856 = vmatpush3.bf16.msra.mxu0 %v3014_v52  ;;  %v918_v63 = vpop.f32.mrb[14].mxu1  ;;  %9866 = vmatpush3.bf16.msra.mxu1 %v3075_v54  ;;  %v88_v52 = vld [vmem:[%s13283_s1 + $0x30] sm:$0x1]  ;;  %v89_v57 = vld [vmem:[%s13283_s1 + $0x31] sm:$0x1] }
 0x116   :  { %v9500_v0 = vpop.f32.mrb[15].mxu0  ;;  %9871 = vmatprep.subr.bf16.mxu0 %v10940_v1  ;;  %v9510_v4 = vpop.f32.mrb[15].mxu1  ;;  %9881 = vmatprep.subr.bf16.mxu1 %v10940_v1 }
 0x117   :  { %v10751_v0 = vld [vmem:[%s13284_s2 + $0x3fc] sm:$0xff]   ;;  %v10752_v4 = vld [vmem:[%s13284_s2 + $0x3f0] sm:$0xff]  }
 0x118   :  { %9858 = vmatmul.mubr.msk.bf16.vlgmr.msra.gmra.mrb[84].mxu0 %vm446_vm2, %v82_v55  ;;  %9868 = vmatmul.mubr.msk.bf16.vlgmr.msra.gmra.mrb[84].mxu1 %vm446_vm2, %v83_v58  ;;  %v10750_v58 = vld [vmem:[%s13284_s2 + $0x3e8] sm:$0xff]  }
 0x119   :  { %9872 = vmatpush3.bf16.msra.mxu0 %v10732_v59  ;;  %9882 = vmatpush3.bf16.msra.mxu1 %v10733_v3 }
 0x11a   :  { %9873 = vmatprep.subr.bf16.mxu0 %v10940_v1  ;;  %9883 = vmatprep.subr.bf16.mxu1 %v10940_v1 }
 0x11b   :  { %9877 = vmatprep.mubr.msk.bf16.mxu0 %vm10941_vm1, %v10940_v1  ;;  %9887 = vmatprep.mubr.msk.bf16.mxu1 %vm10941_vm1, %v10940_v1 }
 0x11d   :  { %9874 = vmatpush3.bf16.msra.mxu0 %v10734_v5  ;;  %9884 = vmatpush3.bf16.msra.mxu1 %v10735_v6  ;;  %v10753_v5 = vld [vmem:[%s13284_s2 + $0x404] sm:$0xff]   ;;  %v10754_v6 = vld [vmem:[%s13284_s2 + $0x3f8] ss:$0 sps:$4 sm:$0x33]  }
 0x11e   :  { %9875 = vmatprep.subr.bf16.mxu0 %v10940_v1  ;;  %9885 = vmatprep.subr.bf16.mxu1 %v10940_v1  ;;  %v3502_v8 = vsel %vm450_vm0, %v10754_v6, 0  ;;  %v95_v6 = vld [vmem:[%s13283_s1 + $0x37] sm:$0x1] }
 0x11f   :  { %v11880_v10 = vpop.f32.mrb[16].mxu0  ;;  %v11887_v13 = vpop.f32.mrb[16].mxu1 }
 0x120   :  { %v9519_v14 = vpop.f32.mrb[17].mxu0  ;;  %v9529_v18 = vpop.f32.mrb[17].mxu1 }
 0x121   :  { %v979_v19 = vpop.f32.mrb[18].mxu0  ;;  %9876 = vmatpush3.bf16.msra.mxu0 %v3136_v9  ;;  %v1040_v21 = vpop.f32.mrb[18].mxu1  ;;  %9886 = vmatpush3.bf16.msra.mxu1 %v3197_v11  ;;  %v3563_v11 = vsel %vm450_vm0, %v10755_v7, 0  ;;  %v10769_v7 = vld [vmem:[%s13284_s2 + $0x474] sm:$0xff]  }
 0x122   :  { %v9520_v22 = vpop.f32.mrb[19].mxu0  ;;  %9891 = vmatprep.subr.bf16.mxu0 %v10940_v1  ;;  %v9530_v24 = vpop.f32.mrb[19].mxu1  ;;  %9901 = vmatprep.subr.bf16.mxu1 %v10940_v1  ;;  %v10756_v19 = vld [vmem:[%s13284_s2 + $0x410] sm:$0xff]  }
 0x123   :  { %v10757_v24 = vld [vmem:[%s13284_s2 + $0x424] sm:$0xff]  }
 0x124   :  { %9878 = vmatmul.mubr.msk.bf16.vlgmr.msra.gmra.mrb[88].mxu0 %vm446_vm2, %v84_v12  ;;  %9888 = vmatmul.mubr.msk.bf16.vlgmr.msra.gmra.mrb[88].mxu1 %vm446_vm2, %v85_v15  ;;  %v90_v15 = vld [vmem:[%s13283_s1 + $0x32] sm:$0x1] }
 0x125   :  { %9892 = vmatpush3.bf16.msra.mxu0 %v10738_v16  ;;  %9902 = vmatpush3.bf16.msra.mxu1 %v10739_v23  ;;  %v91_v23 = vld [vmem:[%s13283_s1 + $0x33] sm:$0x1] }
 0x126   :  { %9893 = vmatprep.subr.bf16.mxu0 %v10940_v1  ;;  %9903 = vmatprep.subr.bf16.mxu1 %v10940_v1 }
 0x127   :  { %9897 = vmatprep.mubr.msk.bf16.mxu0 %vm10941_vm1, %v10940_v1  ;;  %9907 = vmatprep.mubr.msk.bf16.mxu1 %vm10941_vm1, %v10940_v1 }
 0x129   :  { %9894 = vmatpush3.bf16.msra.mxu0 %v10740_v25  ;;  %9904 = vmatpush3.bf16.msra.mxu1 %v10741_v26  ;;  %v10758_v26 = vld [vmem:[%s13284_s2 + $0x418] sm:$0xff]  }
 0x12a   :  { %9895 = vmatprep.subr.bf16.mxu0 %v10940_v1  ;;  %9905 = vmatprep.subr.bf16.mxu1 %v10940_v1 }
 0x12b   :  { %v11922_v30 = vpop.f32.mrb[20].mxu0  ;;  %v11929_v33 = vpop.f32.mrb[20].mxu1 }
 0x12c   :  { %v9539_v34 = vpop.f32.mrb[21].mxu0  ;;  %v9549_v39 = vpop.f32.mrb[21].mxu1 }
 0x12d   :  { %v1101_v40 = vpop.f32.mrb[22].mxu0  ;;  %9896 = vmatpush3.bf16.msra.mxu0 %v3258_v29  ;;  %v1162_v41 = vpop.f32.mrb[22].mxu1  ;;  %9906 = vmatpush3.bf16.msra.mxu1 %v3319_v31  ;;  %v10761_v29 = vld [vmem:[%s13284_s2 + $0x434] ss:$0 sps:$4 sm:$0x33]   ;;  %v3624_v31 = vsel %vm450_vm0, %v10760_v28, 0 }
 0x12e   :  { %v9540_v42 = vpop.f32.mrb[23].mxu0  ;;  %9911 = vmatprep.subr.bf16.mxu0 %v10940_v1  ;;  %v9550_v44 = vpop.f32.mrb[23].mxu1  ;;  %9921 = vmatprep.subr.bf16.mxu1 %v10940_v1  ;;  %v3685_v34 = vsel %vm450_vm0, %v10761_v29, 0  ;;  %v92_v41 = vld [vmem:[%s13283_s1 + $0x34] sm:$0x1] }
 0x12f   :  { %v10762_v42 = vld [vmem:[%s13284_s2 + $0x438] sm:$0xff]  }
 0x130   :  { %9898 = vmatmul.mubr.msk.bf16.vlgmr.msra.gmra.mrb[92].mxu0 %vm446_vm2, %v86_v32  ;;  %9908 = vmatmul.mubr.msk.bf16.vlgmr.msra.gmra.mrb[92].mxu1 %vm446_vm2, %v87_v36 }
 0x131   :  { %9912 = vmatpush3.bf16.msra.mxu0 %v10744_v37  ;;  %9922 = vmatpush3.bf16.msra.mxu1 %v10745_v43 }
 0x132   :  { %9913 = vmatprep.subr.bf16.mxu0 %v10940_v1  ;;  %9923 = vmatprep.subr.bf16.mxu1 %v10940_v1 }
 0x133   :  { %9917 = vmatprep.mubr.msk.bf16.mxu0 %vm10941_vm1, %v10940_v1  ;;  %9927 = vmatprep.mubr.msk.bf16.mxu1 %vm10941_vm1, %v10940_v1 }
 0x135   :  { %9914 = vmatpush3.bf16.msra.mxu0 %v10746_v45  ;;  %9924 = vmatpush3.bf16.msra.mxu1 %v10747_v46  ;;  %v93_v45 = vld [vmem:[%s13283_s1 + $0x35] sm:$0x1]  ;;  %v10763_v46 = vld [vmem:[%s13284_s2 + $0x44c] sm:$0xff]  }
 0x136   :  { %9915 = vmatprep.subr.bf16.mxu0 %v10940_v1  ;;  %9925 = vmatprep.subr.bf16.mxu1 %v10940_v1 }
 0x137   :  { %v11964_v50 = vpop.f32.mrb[24].mxu0  ;;  %v11971_v54 = vpop.f32.mrb[24].mxu1 }
 0x138   :  { %v9559_v55 = vpop.f32.mrb[25].mxu0  ;;  %v9569_v59 = vpop.f32.mrb[25].mxu1 }
 0x139   :  { %v1223_v60 = vpop.f32.mrb[26].mxu0  ;;  %9916 = vmatpush3.bf16.msra.mxu0 %v3380_v49  ;;  %v1284_v61 = vpop.f32.mrb[26].mxu1  ;;  %9926 = vmatpush3.bf16.msra.mxu1 %v3441_v51  ;;  %v10765_v49 = vld [vmem:[%s13284_s2 + $0x454] sm:$0xff]   ;;  %v10766_v51 = vld [vmem:[%s13284_s2 + $0x448] ss:$0 sps:$4 sm:$0x33]  }
 0x13a   :  { %v9560_v63 = vpop.f32.mrb[27].mxu0  ;;  %9931 = vmatprep.subr.bf16.mxu0 %v10940_v1  ;;  %v9570_v3 = vpop.f32.mrb[27].mxu1  ;;  %9941 = vmatprep.subr.bf16.mxu1 %v10940_v1  ;;  %v3746_v55 = vsel %vm450_vm0, %v10766_v51, 0  ;;  %v98_v51 = vld [vmem:[%s13283_s1 + $0x3a] sm:$0x1] }
 0x13b   :  { %v10768_v3 = vld [vmem:[%s13284_s2 + $0x460] sm:$0xff]  }
 0x13c   :  { %9918 = vmatmul.mubr.msk.bf16.vlgmr.msra.gmra.mrb[96].mxu0 %vm446_vm2, %v88_v52  ;;  %9928 = vmatmul.mubr.msk.bf16.vlgmr.msra.gmra.mrb[96].mxu1 %vm446_vm2, %v89_v57  ;;  %v10767_v52 = vld [vmem:[%s13284_s2 + $0x45c] ss:$0 sps:$4 sm:$0x33]  }
 0x13d   :  { %9932 = vmatpush3.bf16.msra.mxu0 %v10750_v58  ;;  %9942 = vmatpush3.bf16.msra.mxu1 %v10751_v0  ;;  %v3807_v58 = vsel %vm450_vm0, %v10767_v52, 0  ;;  %v94_v0 = vld [vmem:[%s13283_s1 + $0x36] sm:$0x1] }
 0x13e   :  { %9933 = vmatprep.subr.bf16.mxu0 %v10940_v1  ;;  %9943 = vmatprep.subr.bf16.mxu1 %v10940_v1  ;;  %v10780_v52 = vld [vmem:[%s13284_s2 + $0x4b0] sm:$0xff]  }
 0x13f   :  { %9937 = vmatprep.mubr.msk.bf16.mxu0 %vm10941_vm1, %v10940_v1  ;;  %9947 = vmatprep.mubr.msk.bf16.mxu1 %vm10941_vm1, %v10940_v1 }
 0x141   :  { %9934 = vmatpush3.bf16.msra.mxu0 %v10752_v4  ;;  %9944 = vmatpush3.bf16.msra.mxu1 %v10753_v5 }
 0x142   :  { %9935 = vmatprep.subr.bf16.mxu0 %v10940_v1  ;;  %9945 = vmatprep.subr.bf16.mxu1 %v10940_v1 }
 0x143   :  { %v12006_v9 = vpop.f32.mrb[28].mxu0  ;;  %v12010_v12 = vpop.f32.mrb[28].mxu1 }
 0x144   :  { %v9579_v14 = vpop.f32.mrb[29].mxu0  ;;  %v9589_v16 = vpop.f32.mrb[29].mxu1 }
 0x145   :  { %v1345_v18 = vpop.f32.mrb[30].mxu0  ;;  %9936 = vmatpush3.bf16.msra.mxu0 %v3502_v8  ;;  %v1406_v21 = vpop.f32.mrb[30].mxu1  ;;  %9946 = vmatpush3.bf16.msra.mxu1 %v3563_v11  ;;  %v10770_v11 = vld [vmem:[%s13284_s2 + $0x468] sm:$0xff]   ;;  %v10771_v14 = vld [vmem:[%s13284_s2 + $0x47c] sm:$0xff]  }
 0x146   :  { %v9580_v22 = vpop.f32.mrb[31].mxu0  ;;  %9951 = vmatprep.subr.bf16.mxu0 %v10940_v1  ;;  %v9590_v25 = vpop.f32.mrb[31].mxu1  ;;  %9961 = vmatprep.subr.bf16.mxu1 %v10940_v1  ;;  %v10773_v16 = vld [vmem:[%s13284_s2 + $0x484] ss:$0 sps:$4 sm:$0x33]  }
 0x147   :  { %v3929_v21 = vsel %vm450_vm0, %v10773_v16, 0 }
 0x148   :  { %9938 = vmatmul.mubr.msk.bf16.vlgmr.msra.gmra.mrb[100].mxu0 %vm446_vm2, %v90_v15  ;;  %9948 = vmatmul.mubr.msk.bf16.vlgmr.msra.gmra.mrb[100].mxu1 %vm446_vm2, %v91_v23  ;;  %v10772_v15 = vld [vmem:[%s13284_s2 + $0x470] ss:$0 sps:$4 sm:$0x33]  }
 0x149   :  { %9952 = vmatpush3.bf16.msra.mxu0 %v10756_v19  ;;  %9962 = vmatpush3.bf16.msra.mxu1 %v10757_v24  ;;  %v3868_v18 = vsel %vm450_vm0, %v10772_v15, 0 }
 0x14a   :  { %9953 = vmatprep.subr.bf16.mxu0 %v10940_v1  ;;  %9963 = vmatprep.subr.bf16.mxu1 %v10940_v1 }
 0x14b   :  { %9957 = vmatprep.mubr.msk.bf16.mxu0 %vm10941_vm1, %v10940_v1  ;;  %9967 = vmatprep.mubr.msk.bf16.mxu1 %vm10941_vm1, %v10940_v1 }
 0x14d   :  { %9954 = vmatpush3.bf16.msra.mxu0 %v10758_v26  ;;  %9964 = vmatpush3.bf16.msra.mxu1 %v10759_v27  ;;  %v96_v26 = vld [vmem:[%s13283_s1 + $0x38] sm:$0x1]  ;;  %v10774_v27 = vld [vmem:[%s13284_s2 + $0x488] sm:$0xff]  }
 0x14e   :  { %9955 = vmatprep.subr.bf16.mxu0 %v10940_v1  ;;  %9965 = vmatprep.subr.bf16.mxu1 %v10940_v1 }
 0x14f   :  { %v12048_v32 = vpop.f32.mrb[32].mxu0  ;;  %v12052_v36 = vpop.f32.mrb[32].mxu1 }
 0x150   :  { %v9599_v37 = vpop.f32.mrb[33].mxu0  ;;  %v9609_v39 = vpop.f32.mrb[33].mxu1 }
 0x151   :  { %v1467_v40 = vpop.f32.mrb[34].mxu0  ;;  %9956 = vmatpush3.bf16.msra.mxu0 %v3624_v31  ;;  %v1528_v43 = vpop.f32.mrb[34].mxu1  ;;  %9966 = vmatpush3.bf16.msra.mxu1 %v3685_v34  ;;  %v97_v31 = vld [vmem:[%s13283_s1 + $0x39] sm:$0x1]  ;;  %v10775_v34 = vld [vmem:[%s13284_s2 + $0x49c] sm:$0xff]   ;;  %v10776_v39 = vld [vmem:[%s13284_s2 + $0x490] sm:$0xff]  }
 0x152   :  { %v9600_v44 = vpop.f32.mrb[35].mxu0  ;;  %9971 = vmatprep.subr.bf16.mxu0 %v10940_v1  ;;  %v9610_v47 = vpop.f32.mrb[35].mxu1  ;;  %9981 = vmatprep.subr.bf16.mxu1 %v10940_v1  ;;  %v10777_v40 = vld [vmem:[%s13284_s2 + $0x4a4] sm:$0xff]  }
 0x154   :  { %9958 = vmatmul.mubr.msk.bf16.vlgmr.msra.gmra.mrb[104].mxu0 %vm446_vm2, %v92_v41  ;;  %9968 = vmatmul.mubr.msk.bf16.vlgmr.msra.gmra.mrb[104].mxu1 %vm446_vm2, %v93_v45  ;;  %v10778_v41 = vld [vmem:[%s13284_s2 + $0x498] ss:$0 sps:$4 sm:$0x33]  }
 0x155   :  { %9972 = vmatpush3.bf16.msra.mxu0 %v10762_v42  ;;  %9982 = vmatpush3.bf16.msra.mxu1 %v10763_v46  ;;  %v10779_v42 = vld [vmem:[%s13284_s2 + $0x4ac] ss:$0 sps:$4 sm:$0x33]   ;;  %v3990_v43 = vsel %vm450_vm0, %v10778_v41, 0 }
 0x156   :  { %9973 = vmatprep.subr.bf16.mxu0 %v10940_v1  ;;  %9983 = vmatprep.subr.bf16.mxu1 %v10940_v1  ;;  %v4051_v45 = vsel %vm450_vm0, %v10779_v42, 0 }
 0x157   :  { %9977 = vmatprep.mubr.msk.bf16.mxu0 %vm10941_vm1, %v10940_v1  ;;  %9987 = vmatprep.mubr.msk.bf16.mxu1 %vm10941_vm1, %v10940_v1 }
 0x159   :  { %9974 = vmatpush3.bf16.msra.mxu0 %v10764_v48  ;;  %9984 = vmatpush3.bf16.msra.mxu1 %v10765_v49 }
 0x15a   :  { %9975 = vmatprep.subr.bf16.mxu0 %v10940_v1  ;;  %9985 = vmatprep.subr.bf16.mxu1 %v10940_v1 }
 0x15b   :  { %v12090_v57 = vpop.f32.mrb[36].mxu0  ;;  %v12094_v59 = vpop.f32.mrb[36].mxu1 }
 0x15c   :  { %v9619_v60 = vpop.f32.mrb[37].mxu0  ;;  %v9629_v61 = vpop.f32.mrb[37].mxu1 }
 0x15d   :  { %v1589_v63 = vpop.f32.mrb[38].mxu0  ;;  %9976 = vmatpush3.bf16.msra.mxu0 %v3746_v55  ;;  %v1650_v4 = vpop.f32.mrb[38].mxu1  ;;  %9986 = vmatpush3.bf16.msra.mxu1 %v3807_v58  ;;  %v99_v60 = vld [vmem:[%s13283_s1 + $0x3b] sm:$0x1]  ;;  %v10781_v61 = vld [vmem:[%s13284_s2 + $0x4c4] sm:$0xff]  }
 0x15e   :  { %v9620_v5 = vpop.f32.mrb[39].mxu0  ;;  %9991 = vmatprep.subr.bf16.mxu0 %v10940_v1  ;;  %v9630_v8 = vpop.f32.mrb[39].mxu1  ;;  %10001 = vmatprep.subr.bf16.mxu1 %v10940_v1  ;;  %v10784_v4 = vld [vmem:[%s13284_s2 + $0x4c0] ss:$0 sps:$4 sm:$0x33]  }
 0x15f   :  { %v10785_v5 = vld [vmem:[%s13284_s2 + $0x4d4] ss:$0 sps:$4 sm:$0x33]  }
 0x160   :  { %9978 = vmatmul.mubr.msk.bf16.vlgmr.msra.gmra.mrb[108].mxu0 %vm446_vm2, %v94_v0  ;;  %9988 = vmatmul.mubr.msk.bf16.vlgmr.msra.gmra.mrb[108].mxu1 %vm446_vm2, %v95_v6  ;;  %v10782_v0 = vld [vmem:[%s13284_s2 + $0x4b8] sm:$0xff]   ;;  %v4112_v6 = vsel %vm450_vm0, %v10784_v4, 0  ;;  %v4173_v8 = vsel %vm450_vm0, %v10785_v5, 0  ;;  %v10796_v4 = vld [vmem:[%s13286_s4 + $0x20] sm:$0xff]  }
 0x161   :  { %9992 = vmatpush3.bf16.msra.mxu0 %v10768_v3  ;;  %10002 = vmatpush3.bf16.msra.mxu1 %v10769_v7  ;;  %v10783_v3 = vld [vmem:[%s13284_s2 + $0x4cc] sm:$0xff]  }
 0x162   :  { %9993 = vmatprep.subr.bf16.mxu0 %v10940_v1  ;;  %10003 = vmatprep.subr.bf16.mxu1 %v10940_v1 }
 0x163   :  { %9997 = vmatprep.mubr.msk.bf16.mxu0 %vm10941_vm1, %v10940_v1  ;;  %10007 = vmatprep.mubr.msk.bf16.mxu1 %vm10941_vm1, %v10940_v1 }
 0x165   :  { %9994 = vmatpush3.bf16.msra.mxu0 %v10770_v11  ;;  %10004 = vmatpush3.bf16.msra.mxu1 %v10771_v14 }
 0x166   :  { %9995 = vmatprep.subr.bf16.mxu0 %v10940_v1  ;;  %10005 = vmatprep.subr.bf16.mxu1 %v10940_v1 }
 0x167   :  { %v12132_v19 = vpop.f32.mrb[40].mxu0  ;;  %v12136_v22 = vpop.f32.mrb[40].mxu1 }
 0x168   :  { %v9639_v23 = vpop.f32.mrb[41].mxu0  ;;  %v9649_v24 = vpop.f32.mrb[41].mxu1 }
 0x169   :  { %v1711_v25 = vpop.f32.mrb[42].mxu0  ;;  %9996 = vmatpush3.bf16.msra.mxu0 %v3868_v18  ;;  %v1772_v28 = vpop.f32.mrb[42].mxu1  ;;  %10006 = vmatpush3.bf16.msra.mxu1 %v3929_v21  ;;  %v100_v18 = vld [vmem:[%s13283_s1 + $0x3c] sm:$0x1] }
 0x16a   :  { %v9640_v29 = vpop.f32.mrb[43].mxu0  ;;  %10011 = vmatprep.subr.bf16.mxu0 %v10940_v1  ;;  %v9650_v37 = vpop.f32.mrb[43].mxu1  ;;  %10021 = vmatprep.subr.bf16.mxu1 %v10940_v1  ;;  %v10786_v21 = vld [vmem:[%s13284_s2 + $0x4d8] sm:$0xff]   ;;  %v10788_v28 = vld [vmem:[%s13284_s2 + $0x4e0] sm:$0xff]  }
 0x16b   :  { %v101_v25 = vld [vmem:[%s13283_s1 + $0x3d] sm:$0x1]  ;;  %v10789_v29 = vld [vmem:[%s13284_s2 + $0x4f4] sm:$0xff]  }
 0x16c   :  { %9998 = vmatmul.mubr.msk.bf16.vlgmr.msra.gmra.mrb[112].mxu0 %vm446_vm2, %v96_v26  ;;  %10008 = vmatmul.mubr.msk.bf16.vlgmr.msra.gmra.mrb[112].mxu1 %vm446_vm2, %v97_v31  ;;  %v10787_v26 = vld [vmem:[%s13284_s2 + $0x4ec] sm:$0xff]   ;;  %v10790_v31 = vld [vmem:[%s13284_s2 + $0x4e8] ss:$0 sps:$4 sm:$0x33]  }
 0x16d   :  { %10012 = vmatpush3.bf16.msra.mxu0 %v10774_v27  ;;  %10022 = vmatpush3.bf16.msra.mxu1 %v10775_v34  ;;  %v10791_v34 = vld [vmem:[%s13284_s2 + $0x4fc] ss:$0 sps:$4 sm:$0x33]   ;;  %v4234_v37 = vsel %vm450_vm0, %v10790_v31, 0  ;;  %v10800_v31 = vld [vmem:[%s13286_s4 + $0x40] sm:$0xff]  }
 0x16e   :  { %10013 = vmatprep.subr.bf16.mxu0 %v10940_v1  ;;  %10023 = vmatprep.subr.bf16.mxu1 %v10940_v1  ;;  %v4295_v41 = vsel %vm450_vm0, %v10791_v34, 0 }
 0x16f   :  { %10017 = vmatprep.mubr.msk.bf16.mxu0 %vm10941_vm1, %v10940_v1  ;;  %10027 = vmatprep.mubr.msk.bf16.mxu1 %vm10941_vm1, %v10940_v1 }
 0x171   :  { %10014 = vmatpush3.bf16.msra.mxu0 %v10776_v39  ;;  %10024 = vmatpush3.bf16.msra.mxu1 %v10777_v40  ;;  %v12261_v39 = vld [vmem:[%s13285_s3] ss:$0 sm:$0xff] }
 0x172   :  { %10015 = vmatprep.subr.bf16.mxu0 %v10940_v1  ;;  %10025 = vmatprep.subr.bf16.mxu1 %v10940_v1 }
 0x173   :  { %v12174_v44 = vpop.f32.mrb[44].mxu0  ;;  %v12178_v46 = vpop.f32.mrb[44].mxu1 }
 0x174   :  { %v9659_v47 = vpop.f32.mrb[45].mxu0  ;;  %v9669_v48 = vpop.f32.mrb[45].mxu1 }
 0x175   :  { %v1833_v49 = vpop.f32.mrb[46].mxu0  ;;  %10016 = vmatpush3.bf16.msra.mxu0 %v3990_v43  ;;  %v1894_v55 = vpop.f32.mrb[46].mxu1  ;;  %10026 = vmatpush3.bf16.msra.mxu1 %v4051_v45  ;;  %v102_v48 = vld [vmem:[%s13283_s1 + $0x3e] sm:$0x1] }
 0x176   :  { %v9660_v58 = vpop.f32.mrb[47].mxu0  ;;  %10031 = vmatprep.subr.bf16.mxu0 %v10940_v1  ;;  %v9670_v63 = vpop.f32.mrb[47].mxu1  ;;  %10041 = vmatprep.subr.bf16.mxu1 %v10940_v1  ;;  %v10792_v49 = vld [vmem:[%s13286_s4] sm:$0xff]  }
 0x177   :  { %v103_v58 = vld [vmem:[%s13283_s1 + $0x3f] sm:$0x1] }
 0x178   :  { %10018 = vmatmul.mubr.msk.bf16.vlgmr.msra.gmra.mrb[116].mxu0 %vm446_vm2, %v98_v51  ;;  %10028 = vmatmul.mubr.msk.bf16.vlgmr.msra.gmra.mrb[116].mxu1 %vm446_vm2, %v99_v60  ;;  %v489_v51 = vadd.f32 %v12261_v39, %v11712_v62  ;;  %v10793_v60 = vld [vmem:[%s13286_s4 + $0x10] sm:$0xff]   ;;  %v10794_v62 = vld [vmem:[%s13286_s4 + $0x8] sm:$0xff]  }
 0x179   :  { %10032 = vmatpush3.bf16.msra.mxu0 %v10780_v52  ;;  %10042 = vmatpush3.bf16.msra.mxu1 %v10781_v61  ;;  %v550_v61 = vadd.f32 %v12261_v39, %v11719_v2  ;;  %v10795_v2 = vld [vmem:[%s13286_s4 + $0x18] sm:$0xff]  }
 0x17a   :  { %10033 = vmatprep.subr.bf16.mxu0 %v10940_v1  ;;  %10043 = vmatprep.subr.bf16.mxu1 %v10940_v1 }
 0x17b   :  { %10037 = vmatprep.mubr.msk.bf16.mxu0 %vm10941_vm1, %v10940_v1  ;;  %10047 = vmatprep.mubr.msk.bf16.mxu1 %vm10941_vm1, %v10940_v1 }
 0x17d   :  { %10034 = vmatpush3.bf16.msra.mxu0 %v10782_v0  ;;  %10044 = vmatpush3.bf16.msra.mxu1 %v10783_v3  ;;  %v4337_v0 = vmax.f32 %v489_v51, 0.0  ;;  %v4338_v3 = vmax.f32 %v550_v61, 0.0 }
 0x17e   :  { %10035 = vmatprep.subr.bf16.mxu0 %v10940_v1  ;;  %10045 = vmatprep.subr.bf16.mxu1 %v10940_v1 }
 0x17f   :  { %v12216_v7 = vpop.f32.mrb[48].mxu0  ;;  %v12220_v11 = vpop.f32.mrb[48].mxu1  ;;  %v4401_v5 = vpack.c.bf16 %v4337_v0, %v4337_v0 }
 0x180   :  { %v9679_v14 = vpop.f32.mrb[49].mxu0  ;;  %v9689_v15 = vpop.f32.mrb[49].mxu1 }
 0x181   :  { %v1955_v16 = vpop.f32.mrb[50].mxu0  ;;  %10036 = vmatpush3.bf16.msra.mxu0 %v4112_v6  ;;  %v2016_v23 = vpop.f32.mrb[50].mxu1  ;;  %10046 = vmatpush3.bf16.msra.mxu1 %v4173_v8  ;;  %v611_v6 = vadd.f32 %v12261_v39, %v11754_v17  ;;  %v10797_v8 = vld [vmem:[%s13286_s4 + $0x30] sm:$0xff]   ;;  %v4402_v14 = vpack.c.bf16 %v4338_v3, %v4338_v3  ;;  %v672_v15 = vadd.f32 %v12261_v39, %v11761_v20 }
 0x182   :  { %v9680_v24 = vpop.f32.mrb[51].mxu0  ;;  %10051 = vmatprep.subr.bf16.mxu0 %v10940_v1  ;;  %v9690_v27 = vpop.f32.mrb[51].mxu1  ;;  %10061 = vmatprep.subr.bf16.mxu1 %v10940_v1 }
 0x183   :  { %v10798_v24 = vld [vmem:[%s13286_s4 + $0x28] sm:$0xff]   ;;  %v10799_v27 = vld [vmem:[%s13286_s4 + $0x38] sm:$0xff]  }
 0x184   :  { %10038 = vmatmul.mubr.msk.bf16.vlgmr.msra.gmra.mrb[120].mxu0 %vm446_vm2, %v100_v18  ;;  %10048 = vmatmul.mubr.msk.bf16.vlgmr.msra.gmra.mrb[120].mxu1 %vm446_vm2, %v101_v25  ;;  %v4339_v25 = vmax.f32 %v611_v6, 0.0 }
 0x185   :  { %10052 = vmatpush3.bf16.msra.mxu0 %v10786_v21  ;;  %10062 = vmatpush3.bf16.msra.mxu1 %v10787_v26 }
 0x186   :  { %10053 = vmatprep.subr.bf16.mxu0 %v10940_v1  ;;  %10063 = vmatprep.subr.bf16.mxu1 %v10940_v1  ;;  %v4403_v34 = vpack.c.bf16 %v4339_v25, %v4339_v25 }
 0x187   :  { %10057 = vmatprep.mubr.msk.bf16.mxu0 %vm10941_vm1, %v10940_v1  ;;  %10067 = vmatprep.mubr.msk.bf16.mxu1 %vm10941_vm1, %v10940_v1 }
 0x189   :  { %10054 = vmatpush3.bf16.msra.mxu0 %v10788_v28  ;;  %10064 = vmatpush3.bf16.msra.mxu1 %v10789_v29  ;;  %v4340_v28 = vmax.f32 %v672_v15, 0.0 }
 0x18a   :  { %10055 = vmatprep.subr.bf16.mxu0 %v10940_v1  ;;  %10065 = vmatprep.subr.bf16.mxu1 %v10940_v1 }
 0x18b   :  { %v12263_v40 = vpop.f32.mrb[52].mxu0  ;;  %v12267_v42 = vpop.f32.mrb[52].mxu1 }
 0x18c   :  { %v9699_v43 = vpop.f32.mrb[53].mxu0  ;;  %v9709_v45 = vpop.f32.mrb[53].mxu1 }
 0x18d   :  { %v2077_v47 = vpop.f32.mrb[54].mxu0  ;;  %10056 = vmatpush3.bf16.msra.mxu0 %v4234_v37  ;;  %v2138_v52 = vpop.f32.mrb[54].mxu1  ;;  %10066 = vmatpush3.bf16.msra.mxu1 %v4295_v41  ;;  %v733_v37 = vadd.f32 %v12261_v39, %v11796_v35  ;;  %v10801_v41 = vld [vmem:[%s13286_s4 + $0x50] sm:$0xff]   ;;  %v4404_v43 = vpack.c.bf16 %v4340_v28, %v4340_v28  ;;  %v794_v45 = vadd.f32 %v12261_v39, %v11803_v38  ;;  %v10802_v35 = vld [vmem:[%s13286_s4 + $0x48] sm:$0xff]  }
 0x18e   :  { %v9700_v55 = vpop.f32.mrb[55].mxu0  ;;  %10071 = vmatprep.subr.bf16.mxu0 %v10940_v1  ;;  %v9710_v63 = vpop.f32.mrb[55].mxu1  ;;  %10079 = vmatprep.subr.bf16.mxu1 %v10940_v1  ;;  %v10810_v28 = vld [vmem:[%s13286_s4 + $0x88] sm:$0xff]  }
 0x18f   :  { %v4341_v47 = vmax.f32 %v733_v37, 0.0  ;;  %v4342_v38 = vmax.f32 %v794_v45, 0.0  ;;  %v855_v63 = vadd.f32 %v12261_v39, %v11838_v53  ;;  %v10806_v53 = vld [vmem:[%s13286_s4 + $0x68] sm:$0xff]  }
 0x190   :  { %10058 = vmatmul.mubr.msk.bf16.vlgmr.msra.gmra.mrb[124].mxu0 %vm446_vm2, %v102_v48  ;;  %10068 = vmatmul.mubr.msk.bf16.vlgmr.msra.gmra.mrb[124].mxu1 %vm446_vm2, %v103_v58  ;;  %v10803_v48 = vld [vmem:[%s13286_s4 + $0x58] sm:$0xff]  }
 0x191   :  { %10072 = vmatpush3.bf16.msra.mxu0 %v10792_v49  ;;  %10080 = vmatpush3.bf16.msra.mxu1 %v10793_v60  ;;  %v10804_v60 = vld [vmem:[%s13286_s4 + $0x60] sm:$0xff]   ;;  %v4405_v61 = vpack.c.bf16 %v4341_v47, %v4341_v47  ;;  %v4406_v3 = vpack.c.bf16 %v4342_v38, %v4342_v38  ;;  %v4343_v6 = vmax.f32 %v855_v63, 0.0  ;;  %v10813_v47 = vld [vmem:[%s13286_s4 + $0xb0] sm:$0xff]   ;;  %v1160_v38 = vadd.f32 %v12261_v39, %v11929_v33 }
 0x192   :  { %10073 = vmatprep.subr.bf16.mxu0 %v10940_v1  ;;  %10081 = vmatprep.subr.bf16.mxu1 %v10940_v1 }
 0x193   :  { %10075 = vmatprep.mubr.msk.bf16.mxu0 %vm10941_vm1, %v10940_v1  ;;  %10083 = vmatprep.mubr.msk.bf16.mxu1 %vm10941_vm1, %v10940_v1  ;;  %v4407_v15 = vpack.c.bf16 %v4343_v6, %v4343_v6  ;;  %v4348_v33 = vmax.f32 %v1160_v38, 0.0  ;;  %v10825_v38 = vld [vmem:[%s13286_s4 + $0x110] sm:$0xff]  }
 0x195   :  { %10074 = vmatpush3.bf16.msra.mxu0 %v10794_v62  ;;  %10082 = vmatpush3.bf16.msra.mxu1 %v10795_v2  ;;  %v10805_v2 = vld [vmem:[%s13286_s4 + $0x70] sm:$0xff]   ;;  %v4412_v6 = vpack.c.bf16 %v4348_v33, %v4348_v33  ;;  %v10827_v33 = vld [vmem:[%s13286_s4 + $0x118] sm:$0xff]  }
 0x196   :  { %10087 = vmatprep.subr.bf16.mxu0 %v10940_v1  ;;  %10095 = vmatprep.subr.bf16.mxu1 %v10940_v1 }
 0x197   :  { %v12312_v16 = vpop.f32.mrb[56].mxu0  ;;  %v12315_v18 = vpop.f32.mrb[56].mxu1 }
 0x198   :  { %v9719_v21 = vpop.f32.mrb[57].mxu0  ;;  %10076 = vmatmul.mubr.msk.bf16.vlgmr.msra.gmra.mrb[128].mxu0 %vm4733_vm3, %v4401_v5  ;;  %v9729_v17 = vpop.f32.mrb[57].mxu1  ;;  %10084 = vmatmul.mubr.msk.bf16.vlgmr.msra.gmra.mrb[128].mxu1 %vm4733_vm3, %v4402_v14  ;;  %v10808_v14 = vld [vmem:[%s13286_s4 + $0x80] sm:$0xff]  }
 0x199   :  { %v2199_v23 = vpop.f32.mrb[58].mxu0  ;;  %10088 = vmatpush3.bf16.msra.mxu0 %v10796_v4  ;;  %v2260_v20 = vpop.f32.mrb[58].mxu1  ;;  %10096 = vmatpush3.bf16.msra.mxu1 %v10797_v8  ;;  %v916_v4 = vadd.f32 %v12261_v39, %v11845_v56  ;;  %v10807_v56 = vld [vmem:[%s13286_s4 + $0x78] sm:$0xff]   ;;  %v977_v21 = vadd.f32 %v12261_v39, %v11880_v10  ;;  %v10809_v17 = vld [vmem:[%s13286_s4 + $0x90] sm:$0xff]  }
 0x19a   :  { %v9720_v26 = vpop.f32.mrb[59].mxu0  ;;  %10089 = vmatprep.subr.bf16.mxu0 %v10940_v1  ;;  %v9730_v29 = vpop.f32.mrb[59].mxu1  ;;  %10097 = vmatprep.subr.bf16.mxu1 %v10940_v1 }
 0x19b   :  { %10091 = vmatprep.mubr.msk.bf16.mxu0 %vm10941_vm1, %v10940_v1  ;;  %10099 = vmatprep.mubr.msk.bf16.mxu1 %vm10941_vm1, %v10940_v1  ;;  %v4344_v8 = vmax.f32 %v916_v4, 0.0  ;;  %v4345_v29 = vmax.f32 %v977_v21, 0.0  ;;  %v10820_v21 = vld [vmem:[%s13286_s4 + $0xe0] sm:$0xff]  }
 0x19d   :  { %10090 = vmatpush3.bf16.msra.mxu0 %v10798_v24  ;;  %10098 = vmatpush3.bf16.msra.mxu1 %v10799_v27  ;;  %v4408_v23 = vpack.c.bf16 %v4344_v8, %v4344_v8  ;;  %v1038_v24 = vadd.f32 %v12261_v39, %v11887_v13  ;;  %v4409_v45 = vpack.c.bf16 %v4345_v29, %v4345_v29 }
 0x19e   :  { %10103 = vmatprep.subr.bf16.mxu0 %v10940_v1  ;;  %10111 = vmatprep.subr.bf16.mxu1 %v10940_v1 }
 0x19f   :  { %v4346_v37 = vmax.f32 %v1038_v24, 0.0  ;;  %v10821_v24 = vld [vmem:[%s13286_s4 + $0xf0] sm:$0xff]  }
 0x1a0   :  { %10092 = vmatmul.mubr.msk.bf16.vlgmr.msra.gmra.mrb[132].mxu0 %vm4733_vm3, %v4403_v34  ;;  %10100 = vmatmul.mubr.msk.bf16.vlgmr.msra.gmra.mrb[132].mxu1 %vm4733_vm3, %v4404_v43  ;;  %v10811_v34 = vld [vmem:[%s13286_s4 + $0x98] sm:$0xff]   ;;  %v10812_v43 = vld [vmem:[%s13286_s4 + $0xa0] sm:$0xff]  }
 0x1a1   :  { %10104 = vmatpush3.bf16.msra.mxu0 %v10800_v31  ;;  %10112 = vmatpush3.bf16.msra.mxu1 %v10801_v41 }
 0x1a2   :  { %10105 = vmatprep.subr.bf16.mxu0 %v10940_v1  ;;  %10113 = vmatprep.subr.bf16.mxu1 %v10940_v1 }
 0x1a3   :  { %v12352_v49 = vpop.f32.mrb[60].mxu0  ;;  %10107 = vmatprep.mubr.msk.bf16.mxu0 %vm10941_vm1, %v10940_v1  ;;  %v12357_v51 = vpop.f32.mrb[60].mxu1  ;;  %10115 = vmatprep.mubr.msk.bf16.mxu1 %vm10941_vm1, %v10940_v1 }
 0x1a4   :  { %v9739_v52 = vpop.f32.mrb[61].mxu0  ;;  %v9749_v55 = vpop.f32.mrb[61].mxu1 }
 0x1a5   :  { %v2321_v58 = vpop.f32.mrb[62].mxu0  ;;  %10106 = vmatpush3.bf16.msra.mxu0 %v10802_v35  ;;  %v2382_v62 = vpop.f32.mrb[62].mxu1  ;;  %10114 = vmatpush3.bf16.msra.mxu1 %v10803_v48  ;;  %v1099_v35 = vadd.f32 %v12261_v39, %v11922_v30  ;;  %v4410_v48 = vpack.c.bf16 %v4346_v37, %v4346_v37  ;;  %v10814_v30 = vld [vmem:[%s13286_s4 + $0xa8] sm:$0xff]   ;;  %v10815_v55 = vld [vmem:[%s13286_s4 + $0xb8] sm:$0xff]  }
 0x1a6   :  { %v9740_v0 = vpop.f32.mrb[63].mxu0  ;;  %10119 = vmatprep.subr.bf16.mxu0 %v10940_v1  ;;  %v9750_v5 = vpop.f32.mrb[63].mxu1  ;;  %10127 = vmatprep.subr.bf16.mxu1 %v10940_v1 }
 0x1a7   :  { %v4347_v52 = vmax.f32 %v1099_v35, 0.0  ;;  %v10816_v0 = vld [vmem:[%s13286_s4 + $0xc0] sm:$0xff]  }
 0x1a8   :  { %10108 = vmatmul.mubr.msk.bf16.vlgmr.msra.gmra.mrb[136].mxu0 %vm4733_vm3, %v4405_v61  ;;  %10116 = vmatmul.mubr.msk.bf16.vlgmr.msra.gmra.mrb[136].mxu1 %vm4733_vm3, %v4406_v3  ;;  %v1221_v3 = vadd.f32 %v12261_v39, %v11964_v50  ;;  %v10818_v50 = vld [vmem:[%s13286_s4 + $0xc8] sm:$0xff]   ;;  %v10824_v35 = vld [vmem:[%s13286_s4 + $0x100] sm:$0xff]  }
 0x1a9   :  { %10120 = vmatpush3.bf16.msra.mxu0 %v10804_v60  ;;  %10128 = vmatpush3.bf16.msra.mxu1 %v10805_v2  ;;  %v4411_v2 = vpack.c.bf16 %v4347_v52, %v4347_v52  ;;  %v1526_v52 = vadd.f32 %v12261_v39, %v12052_v36 }
 0x1aa   :  { %10121 = vmatprep.subr.bf16.mxu0 %v10940_v1  ;;  %10129 = vmatprep.subr.bf16.mxu1 %v10940_v1 }
 0x1ab   :  { %10123 = vmatprep.mubr.msk.bf16.mxu0 %vm10941_vm1, %v10940_v1  ;;  %10131 = vmatprep.mubr.msk.bf16.mxu1 %vm10941_vm1, %v10940_v1  ;;  %v4354_v36 = vmax.f32 %v1526_v52, 0.0  ;;  %v1892_v52 = vadd.f32 %v12261_v39, %v12178_v46 }
 0x1ad   :  { %10122 = vmatpush3.bf16.msra.mxu0 %v10806_v53  ;;  %10130 = vmatpush3.bf16.msra.mxu1 %v10807_v56  ;;  %v10817_v53 = vld [vmem:[%s13286_s4 + $0xd0] sm:$0xff]   ;;  %v1282_v56 = vadd.f32 %v12261_v39, %v11971_v54  ;;  %v10819_v54 = vld [vmem:[%s13286_s4 + $0xd8] sm:$0xff]   ;;  %v4360_v46 = vmax.f32 %v1892_v52, 0.0 }
 0x1ae   :  { %10135 = vmatprep.subr.bf16.mxu0 %v10940_v1  ;;  %10143 = vmatprep.subr.bf16.mxu1 %v10940_v1  ;;  %v10851_v52 = vld [vmem:[%s13286_s4 + $0x1d8] sm:$0xff]  }
 0x1af   :  { %v12398_v25 = vpop.f32.mrb[64].mxu0  ;;  %v12401_v20 = vpop.f32.mrb[64].mxu1 }
 0x1b0   :  { %v9759_v26 = vpop.f32.mrb[65].mxu0  ;;  %10124 = vmatmul.mubr.msk.bf16.vlgmr.msra.gmra.mrb[140].mxu0 %vm4733_vm3, %v4407_v15  ;;  %v9769_v10 = vpop.f32.mrb[65].mxu1  ;;  %10132 = vmatmul.mubr.msk.bf16.vlgmr.msra.gmra.mrb[140].mxu1 %vm4733_vm3, %v4408_v23  ;;  %v4350_v15 = vmax.f32 %v1282_v56, 0.0  ;;  %v1343_v23 = vadd.f32 %v12261_v39, %v12006_v9  ;;  %v10829_v56 = vld [vmem:[%s13286_s4 + $0x130] sm:$0xff]  }
 0x1b1   :  { %v2443_v27 = vpop.f32.mrb[66].mxu0  ;;  %10136 = vmatpush3.bf16.msra.mxu0 %v10808_v14  ;;  %v2504_v13 = vpop.f32.mrb[66].mxu1  ;;  %10144 = vmatpush3.bf16.msra.mxu1 %v10809_v17  ;;  %v4349_v14 = vmax.f32 %v1221_v3, 0.0  ;;  %v1404_v10 = vadd.f32 %v12261_v39, %v12010_v12  ;;  %v10828_v3 = vld [vmem:[%s13286_s4 + $0x120] sm:$0xff]  }
 0x1b2   :  { %v9760_v31 = vpop.f32.mrb[67].mxu0  ;;  %10137 = vmatprep.subr.bf16.mxu0 %v10940_v1  ;;  %v9770_v41 = vpop.f32.mrb[67].mxu1  ;;  %10145 = vmatprep.subr.bf16.mxu1 %v10940_v1  ;;  %v4414_v26 = vpack.c.bf16 %v4350_v15, %v4350_v15 }
 0x1b3   :  { %10139 = vmatprep.mubr.msk.bf16.mxu0 %vm10941_vm1, %v10940_v1  ;;  %10147 = vmatprep.mubr.msk.bf16.mxu1 %vm10941_vm1, %v10940_v1  ;;  %v4413_v17 = vpack.c.bf16 %v4349_v14, %v4349_v14  ;;  %v10822_v31 = vld [vmem:[%s13286_s4 + $0xe8] sm:$0xff]   ;;  %v10823_v41 = vld [vmem:[%s13286_s4 + $0xf8] sm:$0xff]  }
 0x1b5   :  { %10138 = vmatpush3.bf16.msra.mxu0 %v10810_v28  ;;  %10146 = vmatpush3.bf16.msra.mxu1 %v10811_v34  ;;  %v4351_v34 = vmax.f32 %v1343_v23, 0.0  ;;  %v1709_v23 = vadd.f32 %v12261_v39, %v12132_v19 }
 0x1b6   :  { %10151 = vmatprep.subr.bf16.mxu0 %v10940_v1  ;;  %10159 = vmatprep.subr.bf16.mxu1 %v10940_v1 }
 0x1b8   :  { %10140 = vmatmul.mubr.msk.bf16.vlgmr.msra.gmra.mrb[144].mxu0 %vm4733_vm3, %v4409_v45  ;;  %10148 = vmatmul.mubr.msk.bf16.vlgmr.msra.gmra.mrb[144].mxu1 %vm4733_vm3, %v4410_v48  ;;  %v1465_v48 = vadd.f32 %v12261_v39, %v12048_v32  ;;  %v10826_v32 = vld [vmem:[%s13286_s4 + $0x108] sm:$0xff]  }
 0x1b9   :  { %10152 = vmatpush3.bf16.msra.mxu0 %v10812_v43  ;;  %10160 = vmatpush3.bf16.msra.mxu1 %v10813_v47  ;;  %v4352_v43 = vmax.f32 %v1404_v10, 0.0  ;;  %v4415_v47 = vpack.c.bf16 %v4351_v34, %v4351_v34  ;;  %v1770_v10 = vadd.f32 %v12261_v39, %v12136_v22  ;;  %v10834_v34 = vld [vmem:[%s13286_s4 + $0x148] sm:$0xff]  }
 0x1ba   :  { %10153 = vmatprep.subr.bf16.mxu0 %v10940_v1  ;;  %10161 = vmatprep.subr.bf16.mxu1 %v10940_v1 }
 0x1bb   :  { %v12438_v58 = vpop.f32.mrb[68].mxu0  ;;  %10155 = vmatprep.mubr.msk.bf16.mxu0 %vm10941_vm1, %v10940_v1  ;;  %v12443_v60 = vpop.f32.mrb[68].mxu1  ;;  %10163 = vmatprep.mubr.msk.bf16.mxu1 %vm10941_vm1, %v10940_v1 }
 0x1bc   :  { %v9779_v61 = vpop.f32.mrb[69].mxu0  ;;  %v9789_v63 = vpop.f32.mrb[69].mxu1 }
 0x1bd   :  { %v2565_v62 = vpop.f32.mrb[70].mxu0  ;;  %10154 = vmatpush3.bf16.msra.mxu0 %v10814_v30  ;;  %v2626_v4 = vpop.f32.mrb[70].mxu1  ;;  %10162 = vmatpush3.bf16.msra.mxu1 %v10815_v55  ;;  %v4416_v30 = vpack.c.bf16 %v4352_v43, %v4352_v43  ;;  %v4353_v55 = vmax.f32 %v1465_v48, 0.0  ;;  %v4358_v43 = vmax.f32 %v1770_v10, 0.0  ;;  %v1831_v48 = vadd.f32 %v12261_v39, %v12174_v44  ;;  %v10838_v44 = vld [vmem:[%s13286_s4 + $0x168] sm:$0xff]  }
 0x1be   :  { %v9780_v5 = vpop.f32.mrb[71].mxu0  ;;  %10167 = vmatprep.subr.bf16.mxu0 %v10940_v1  ;;  %v9790_v8 = vpop.f32.mrb[71].mxu1  ;;  %10175 = vmatprep.subr.bf16.mxu1 %v10940_v1 }
 0x1bf   :  { %v4417_v4 = vpack.c.bf16 %v4353_v55, %v4353_v55  ;;  %v1587_v5 = vadd.f32 %v12261_v39, %v12090_v57  ;;  %v4418_v8 = vpack.c.bf16 %v4354_v36, %v4354_v36  ;;  %v10830_v57 = vld [vmem:[%s13286_s4 + $0x128] sm:$0xff]   ;;  %v10839_v55 = vld [vmem:[%s13286_s4 + $0x178] sm:$0xff]  }
 0x1c0   :  { %10156 = vmatmul.mubr.msk.bf16.vlgmr.msra.gmra.mrb[148].mxu0 %vm4733_vm3, %v4411_v2  ;;  %10164 = vmatmul.mubr.msk.bf16.vlgmr.msra.gmra.mrb[148].mxu1 %vm4733_vm3, %v4412_v6 }
 0x1c1   :  { %10168 = vmatpush3.bf16.msra.mxu0 %v10816_v0  ;;  %10176 = vmatpush3.bf16.msra.mxu1 %v10817_v53 }
 0x1c2   :  { %10169 = vmatprep.subr.bf16.mxu0 %v10940_v1  ;;  %10177 = vmatprep.subr.bf16.mxu1 %v10940_v1 }
 0x1c3   :  { %10171 = vmatprep.mubr.msk.bf16.mxu0 %vm10941_vm1, %v10940_v1  ;;  %10179 = vmatprep.mubr.msk.bf16.mxu1 %vm10941_vm1, %v10940_v1 }
 0x1c5   :  { %10170 = vmatpush3.bf16.msra.mxu0 %v10818_v50  ;;  %10178 = vmatpush3.bf16.msra.mxu1 %v10819_v54  ;;  %v1648_v50 = vadd.f32 %v12261_v39, %v12094_v59  ;;  %v4355_v54 = vmax.f32 %v1587_v5, 0.0  ;;  %v10831_v59 = vld [vmem:[%s13286_s4 + $0x138] sm:$0xff]   ;;  %v1953_v5 = vadd.f32 %v12261_v39, %v12216_v7  ;;  %v10842_v7 = vld [vmem:[%s13286_s4 + $0x188] sm:$0xff]  }
 0x1c6   :  { %10183 = vmatprep.subr.bf16.mxu0 %v10940_v1  ;;  %10191 = vmatprep.subr.bf16.mxu1 %v10940_v1 }
 0x1c7   :  { %v12484_v27 = vpop.f32.mrb[72].mxu0  ;;  %v12487_v28 = vpop.f32.mrb[72].mxu1  ;;  %v4356_v15 = vmax.f32 %v1648_v50, 0.0  ;;  %v2014_v50 = vadd.f32 %v12261_v39, %v12220_v11  ;;  %v10843_v11 = vld [vmem:[%s13286_s4 + $0x198] sm:$0xff]  }
 0x1c8   :  { %v9799_v29 = vpop.f32.mrb[73].mxu0  ;;  %10172 = vmatmul.mubr.msk.bf16.vlgmr.msra.gmra.mrb[152].mxu0 %vm4733_vm3, %v4413_v17  ;;  %v9809_v9 = vpop.f32.mrb[73].mxu1  ;;  %10180 = vmatmul.mubr.msk.bf16.vlgmr.msra.gmra.mrb[152].mxu1 %vm4733_vm3, %v4414_v26  ;;  %v4419_v17 = vpack.c.bf16 %v4355_v54, %v4355_v54 }
 0x1c9   :  { %v2687_v13 = vpop.f32.mrb[74].mxu0  ;;  %10184 = vmatpush3.bf16.msra.mxu0 %v10820_v21  ;;  %v2748_v12 = vpop.f32.mrb[74].mxu1  ;;  %10192 = vmatpush3.bf16.msra.mxu1 %v10821_v24  ;;  %v10832_v21 = vld [vmem:[%s13286_s4 + $0x140] sm:$0xff]   ;;  %v10833_v24 = vld [vmem:[%s13286_s4 + $0x150] sm:$0xff]   ;;  %v4420_v26 = vpack.c.bf16 %v4356_v15, %v4356_v15  ;;  %v4362_v54 = vmax.f32 %v2014_v50, 0.0 }
 0x1ca   :  { %v9800_v37 = vpop.f32.mrb[75].mxu0  ;;  %10185 = vmatprep.subr.bf16.mxu0 %v10940_v1  ;;  %v9810_v45 = vpop.f32.mrb[75].mxu1  ;;  %10193 = vmatprep.subr.bf16.mxu1 %v10940_v1  ;;  %v4357_v12 = vmax.f32 %v1709_v23, 0.0 }
 0x1cb   :  { %10187 = vmatprep.mubr.msk.bf16.mxu0 %vm10941_vm1, %v10940_v1  ;;  %10195 = vmatprep.mubr.msk.bf16.mxu1 %vm10941_vm1, %v10940_v1  ;;  %v4426_v23 = vpack.c.bf16 %v4362_v54, %v4362_v54  ;;  %v10857_v54 = vld [vmem:[%s13286_s4 + $0x210] sm:$0xff]  }
 0x1cd   :  { %10186 = vmatpush3.bf16.msra.mxu0 %v10822_v31  ;;  %10194 = vmatpush3.bf16.msra.mxu1 %v10823_v41  ;;  %v10835_v41 = vld [vmem:[%s13286_s4 + $0x158] sm:$0xff]  }
 0x1ce   :  { %10199 = vmatprep.subr.bf16.mxu0 %v10940_v1  ;;  %10207 = vmatprep.subr.bf16.mxu1 %v10940_v1 }
 0x1d0   :  { %10188 = vmatmul.mubr.msk.bf16.vlgmr.msra.gmra.mrb[156].mxu0 %vm4733_vm3, %v4415_v47  ;;  %10196 = vmatmul.mubr.msk.bf16.vlgmr.msra.gmra.mrb[156].mxu1 %vm4733_vm3, %v4416_v30  ;;  %v4421_v47 = vpack.c.bf16 %v4357_v12, %v4357_v12  ;;  %v4422_v30 = vpack.c.bf16 %v4358_v43, %v4358_v43  ;;  %v10848_v43 = vld [vmem:[%s13286_s4 + $0x1c0] sm:$0xff]  }
 0x1d1   :  { %10200 = vmatpush3.bf16.msra.mxu0 %v10824_v35  ;;  %10208 = vmatpush3.bf16.msra.mxu1 %v10825_v38  ;;  %v10836_v35 = vld [vmem:[%s13286_s4 + $0x160] sm:$0xff]   ;;  %v10837_v38 = vld [vmem:[%s13286_s4 + $0x170] sm:$0xff]  }
 0x1d2   :  { %10201 = vmatprep.subr.bf16.mxu0 %v10940_v1  ;;  %10209 = vmatprep.subr.bf16.mxu1 %v10940_v1 }
 0x1d3   :  { %v12524_v61 = vpop.f32.mrb[76].mxu0  ;;  %10203 = vmatprep.mubr.msk.bf16.mxu0 %vm10941_vm1, %v10940_v1  ;;  %v12529_v63 = vpop.f32.mrb[76].mxu1  ;;  %10211 = vmatprep.mubr.msk.bf16.mxu1 %vm10941_vm1, %v10940_v1 }
 0x1d4   :  { %v9819_v62 = vpop.f32.mrb[77].mxu0  ;;  %v9829_v0 = vpop.f32.mrb[77].mxu1 }
 0x1d5   :  { %v2809_v2 = vpop.f32.mrb[78].mxu0  ;;  %10202 = vmatpush3.bf16.msra.mxu0 %v10826_v32  ;;  %v2870_v53 = vpop.f32.mrb[78].mxu1  ;;  %10210 = vmatpush3.bf16.msra.mxu1 %v10827_v33  ;;  %v4359_v32 = vmax.f32 %v1831_v48, 0.0 }
 0x1d6   :  { %v9820_v6 = vpop.f32.mrb[79].mxu0  ;;  %10215 = vmatprep.subr.bf16.mxu0 %v10940_v1  ;;  %v9830_v14 = vpop.f32.mrb[79].mxu1  ;;  %10223 = vmatprep.subr.bf16.mxu1 %v10940_v1 }
 0x1d8   :  { %10204 = vmatmul.mubr.msk.bf16.vlgmr.msra.gmra.mrb[160].mxu0 %vm4733_vm3, %v4417_v4  ;;  %10212 = vmatmul.mubr.msk.bf16.vlgmr.msra.gmra.mrb[160].mxu1 %vm4733_vm3, %v4418_v8  ;;  %v4423_v4 = vpack.c.bf16 %v4359_v32, %v4359_v32  ;;  %v4424_v8 = vpack.c.bf16 %v4360_v46, %v4360_v46 }
 0x1d9   :  { %10216 = vmatpush3.bf16.msra.mxu0 %v10828_v3  ;;  %10224 = vmatpush3.bf16.msra.mxu1 %v10829_v56  ;;  %v10840_v3 = vld [vmem:[%s13286_s4 + $0x180] sm:$0xff]   ;;  %v10841_v56 = vld [vmem:[%s13286_s4 + $0x190] sm:$0xff]  }
 0x1da   :  { %10217 = vmatprep.subr.bf16.mxu0 %v10940_v1  ;;  %10225 = vmatprep.subr.bf16.mxu1 %v10940_v1 }
 0x1db   :  { %10219 = vmatprep.mubr.msk.bf16.mxu0 %vm10941_vm1, %v10940_v1  ;;  %10227 = vmatprep.mubr.msk.bf16.mxu1 %vm10941_vm1, %v10940_v1 }
 0x1dd   :  { %10218 = vmatpush3.bf16.msra.mxu0 %v10830_v57  ;;  %10226 = vmatpush3.bf16.msra.mxu1 %v10831_v59  ;;  %v4361_v57 = vmax.f32 %v1953_v5, 0.0  ;;  %v10844_v59 = vld [vmem:[%s13286_s4 + $0x1a0] sm:$0xff]  }
 0x1de   :  { %10231 = vmatprep.subr.bf16.mxu0 %v10940_v1  ;;  %10239 = vmatprep.subr.bf16.mxu1 %v10940_v1 }
 0x1df   :  { %v12570_v29 = vpop.f32.mrb[80].mxu0  ;;  %v12573_v9 = vpop.f32.mrb[80].mxu1  ;;  %v4425_v15 = vpack.c.bf16 %v4361_v57, %v4361_v57 }
 0x1e0   :  { %v9839_v13 = vpop.f32.mrb[81].mxu0  ;;  %10220 = vmatmul.mubr.msk.bf16.vlgmr.msra.gmra.mrb[164].mxu0 %vm4733_vm3, %v4419_v17  ;;  %v9849_v19 = vpop.f32.mrb[81].mxu1  ;;  %10228 = vmatmul.mubr.msk.bf16.vlgmr.msra.gmra.mrb[164].mxu1 %vm4733_vm3, %v4420_v26  ;;  %v10845_v17 = vld [vmem:[%s13286_s4 + $0x1b0] sm:$0xff]  }
 0x1e1   :  { %v2931_v31 = vpop.f32.mrb[82].mxu0  ;;  %10232 = vmatpush3.bf16.msra.mxu0 %v10832_v21  ;;  %v2992_v22 = vpop.f32.mrb[82].mxu1  ;;  %10240 = vmatpush3.bf16.msra.mxu1 %v10833_v24  ;;  %v2075_v21 = vadd.f32 %v12261_v39, %v12263_v40  ;;  %v2136_v24 = vadd.f32 %v12261_v39, %v12267_v42 }
 0x1e2   :  { %v9840_v37 = vpop.f32.mrb[83].mxu0  ;;  %10233 = vmatprep.subr.bf16.mxu0 %v10940_v1  ;;  %v9850_v45 = vpop.f32.mrb[83].mxu1  ;;  %10241 = vmatprep.subr.bf16.mxu1 %v10940_v1  ;;  %v10846_v31 = vld [vmem:[%s13286_s4 + $0x1a8] sm:$0xff]   ;;  %v10847_v22 = vld [vmem:[%s13286_s4 + $0x1b8] sm:$0xff]  }
 0x1e3   :  { %10235 = vmatprep.mubr.msk.bf16.mxu0 %vm10941_vm1, %v10940_v1  ;;  %10243 = vmatprep.mubr.msk.bf16.mxu1 %vm10941_vm1, %v10940_v1  ;;  %v4364_v37 = vmax.f32 %v2136_v24, 0.0 }
 0x1e5   :  { %10234 = vmatpush3.bf16.msra.mxu0 %v10834_v34  ;;  %10242 = vmatpush3.bf16.msra.mxu1 %v10835_v41  ;;  %v4363_v34 = vmax.f32 %v2075_v21, 0.0  ;;  %v4428_v48 = vpack.c.bf16 %v4364_v37, %v4364_v37  ;;  %v2563_v37 = vadd.f32 %v12261_v39, %v12438_v58  ;;  %v10862_v58 = vld [vmem:[%s13286_s4 + $0x228] sm:$0xff]  }
 0x1e6   :  { %10247 = vmatprep.subr.bf16.mxu0 %v10940_v1  ;;  %10255 = vmatprep.subr.bf16.mxu1 %v10940_v1 }
 0x1e7   :  { %v4427_v45 = vpack.c.bf16 %v4363_v34, %v4363_v34 }
 0x1e8   :  { %10236 = vmatmul.mubr.msk.bf16.vlgmr.msra.gmra.mrb[168].mxu0 %vm4733_vm3, %v4421_v47  ;;  %10244 = vmatmul.mubr.msk.bf16.vlgmr.msra.gmra.mrb[168].mxu1 %vm4733_vm3, %v4422_v30  ;;  %v10849_v47 = vld [vmem:[%s13286_s4 + $0x1d0] sm:$0xff]  }
 0x1e9   :  { %10248 = vmatpush3.bf16.msra.mxu0 %v10836_v35  ;;  %10256 = vmatpush3.bf16.msra.mxu1 %v10837_v38  ;;  %v2197_v35 = vadd.f32 %v12261_v39, %v12312_v16  ;;  %v2258_v38 = vadd.f32 %v12261_v39, %v12315_v18  ;;  %v10850_v16 = vld [vmem:[%s13286_s4 + $0x1c8] sm:$0xff]  }
 0x1ea   :  { %10249 = vmatprep.subr.bf16.mxu0 %v10940_v1  ;;  %10257 = vmatprep.subr.bf16.mxu1 %v10940_v1 }
 0x1eb   :  { %v12610_v33 = vpop.f32.mrb[84].mxu0  ;;  %10251 = vmatprep.mubr.msk.bf16.mxu0 %vm10941_vm1, %v10940_v1  ;;  %v12615_v36 = vpop.f32.mrb[84].mxu1  ;;  %10259 = vmatprep.mubr.msk.bf16.mxu1 %vm10941_vm1, %v10940_v1  ;;  %v4365_v30 = vmax.f32 %v2197_v35, 0.0  ;;  %v4366_v18 = vmax.f32 %v2258_v38, 0.0  ;;  %v4371_v35 = vmax.f32 %v2563_v37, 0.0 }
 0x1ec   :  { %v9859_v62 = vpop.f32.mrb[85].mxu0  ;;  %v9869_v0 = vpop.f32.mrb[85].mxu1 }
 0x1ed   :  { %v3053_v2 = vpop.f32.mrb[86].mxu0  ;;  %10250 = vmatpush3.bf16.msra.mxu0 %v10838_v44  ;;  %v3114_v53 = vpop.f32.mrb[86].mxu1  ;;  %10258 = vmatpush3.bf16.msra.mxu1 %v10839_v55  ;;  %v10852_v0 = vld [vmem:[%s13286_s4 + $0x1e0] sm:$0xff]  }
 0x1ee   :  { %v9860_v6 = vpop.f32.mrb[87].mxu0  ;;  %10263 = vmatprep.subr.bf16.mxu0 %v10940_v1  ;;  %v9870_v14 = vpop.f32.mrb[87].mxu1  ;;  %10271 = vmatprep.subr.bf16.mxu1 %v10940_v1  ;;  %v4429_v2 = vpack.c.bf16 %v4365_v30, %v4365_v30  ;;  %v10853_v53 = vld [vmem:[%s13286_s4 + $0x1f0] sm:$0xff]  }
 0x1ef   :  { %v4430_v6 = vpack.c.bf16 %v4366_v18, %v4366_v18  ;;  %v10864_v18 = vld [vmem:[%s13286_s4 + $0x240] sm:$0xff]  }
 0x1f0   :  { %10252 = vmatmul.mubr.msk.bf16.vlgmr.msra.gmra.mrb[172].mxu0 %vm4733_vm3, %v4423_v4  ;;  %10260 = vmatmul.mubr.msk.bf16.vlgmr.msra.gmra.mrb[172].mxu1 %vm4733_vm3, %v4424_v8 }
 0x1f1   :  { %10264 = vmatpush3.bf16.msra.mxu0 %v10840_v3  ;;  %10272 = vmatpush3.bf16.msra.mxu1 %v10841_v56  ;;  %v2319_v3 = vadd.f32 %v12261_v39, %v12352_v49  ;;  %v2380_v56 = vadd.f32 %v12261_v39, %v12357_v51  ;;  %v10854_v49 = vld [vmem:[%s13286_s4 + $0x1e8] sm:$0xff]   ;;  %v10855_v51 = vld [vmem:[%s13286_s4 + $0x1f8] sm:$0xff]  }
 0x1f2   :  { %10265 = vmatprep.subr.bf16.mxu0 %v10940_v1  ;;  %10273 = vmatprep.subr.bf16.mxu1 %v10940_v1 }
 0x1f3   :  { %10267 = vmatprep.mubr.msk.bf16.mxu0 %vm10941_vm1, %v10940_v1  ;;  %10275 = vmatprep.mubr.msk.bf16.mxu1 %vm10941_vm1, %v10940_v1  ;;  %v4367_v50 = vmax.f32 %v2319_v3, 0.0  ;;  %v4368_v14 = vmax.f32 %v2380_v56, 0.0 }
 0x1f5   :  { %10266 = vmatpush3.bf16.msra.mxu0 %v10842_v7  ;;  %10274 = vmatpush3.bf16.msra.mxu1 %v10843_v11  ;;  %v10856_v7 = vld [vmem:[%s13286_s4 + $0x200] sm:$0xff]   ;;  %v4431_v57 = vpack.c.bf16 %v4367_v50, %v4367_v50  ;;  %v2441_v11 = vadd.f32 %v12261_v39, %v12398_v25  ;;  %v10869_v50 = vld [vmem:[%s13286_s4 + $0x270] sm:$0xff]  }
 0x1f6   :  { %10279 = vmatprep.subr.bf16.mxu0 %v10940_v1  ;;  %10287 = vmatprep.subr.bf16.mxu1 %v10940_v1 }
 0x1f7   :  { %v12656_v26 = vpop.f32.mrb[88].mxu0  ;;  %v12659_v10 = vpop.f32.mrb[88].mxu1 }
 0x1f8   :  { %v9879_v13 = vpop.f32.mrb[89].mxu0  ;;  %10268 = vmatmul.mubr.msk.bf16.vlgmr.msra.gmra.mrb[176].mxu0 %vm4733_vm3, %v4425_v15  ;;  %v9889_v40 = vpop.f32.mrb[89].mxu1  ;;  %10276 = vmatmul.mubr.msk.bf16.vlgmr.msra.gmra.mrb[176].mxu1 %vm4733_vm3, %v4426_v23  ;;  %v2502_v15 = vadd.f32 %v12261_v39, %v12401_v20 }
 0x1f9   :  { %v3175_v19 = vpop.f32.mrb[90].mxu0  ;;  %10280 = vmatpush3.bf16.msra.mxu0 %v10844_v59  ;;  %v3236_v42 = vpop.f32.mrb[90].mxu1  ;;  %10288 = vmatpush3.bf16.msra.mxu1 %v10845_v17  ;;  %v4432_v59 = vpack.c.bf16 %v4368_v14, %v4368_v14  ;;  %v10858_v13 = vld [vmem:[%s13286_s4 + $0x208] sm:$0xff]   ;;  %v4369_v40 = vmax.f32 %v2441_v11, 0.0 }
 0x1fa   :  { %v9880_v12 = vpop.f32.mrb[91].mxu0  ;;  %10281 = vmatprep.subr.bf16.mxu0 %v10940_v1  ;;  %v9890_v41 = vpop.f32.mrb[91].mxu1  ;;  %10289 = vmatprep.subr.bf16.mxu1 %v10940_v1  ;;  %v4370_v34 = vmax.f32 %v2502_v15, 0.0 }
 0x1fb   :  { %10283 = vmatprep.mubr.msk.bf16.mxu0 %vm10941_vm1, %v10940_v1  ;;  %10291 = vmatprep.mubr.msk.bf16.mxu1 %vm10941_vm1, %v10940_v1  ;;  %v10860_v12 = vld [vmem:[%s13286_s4 + $0x220] sm:$0xff]   ;;  %v10861_v41 = vld [vmem:[%s13286_s4 + $0x230] sm:$0xff]  }
 0x1fd   :  { %10282 = vmatpush3.bf16.msra.mxu0 %v10846_v31  ;;  %10290 = vmatpush3.bf16.msra.mxu1 %v10847_v22  ;;  %v10859_v31 = vld [vmem:[%s13286_s4 + $0x218] sm:$0xff]   ;;  %v4433_v22 = vpack.c.bf16 %v4369_v40, %v4369_v40  ;;  %v10872_v40 = vld [vmem:[%s13286_s4 + $0x280] sm:$0xff]  }
 0x1fe   :  { %10295 = vmatprep.subr.bf16.mxu0 %v10940_v1  ;;  %10303 = vmatprep.subr.bf16.mxu1 %v10940_v1 }
 0x200   :  { %10284 = vmatmul.mubr.msk.bf16.vlgmr.msra.gmra.mrb[180].mxu0 %vm4733_vm3, %v4427_v45  ;;  %10292 = vmatmul.mubr.msk.bf16.vlgmr.msra.gmra.mrb[180].mxu1 %vm4733_vm3, %v4428_v48  ;;  %v2624_v45 = vadd.f32 %v12261_v39, %v12443_v60 }
 0x201   :  { %10296 = vmatpush3.bf16.msra.mxu0 %v10848_v43  ;;  %10304 = vmatpush3.bf16.msra.mxu1 %v10849_v47  ;;  %v4434_v43 = vpack.c.bf16 %v4370_v34, %v4370_v34  ;;  %v10863_v47 = vld [vmem:[%s13286_s4 + $0x238] sm:$0xff]  }
 0x202   :  { %10297 = vmatprep.subr.bf16.mxu0 %v10940_v1  ;;  %10305 = vmatprep.subr.bf16.mxu1 %v10940_v1  ;;  %v4372_v60 = vmax.f32 %v2624_v45, 0.0 }
 0x203   :  { %v12696_v44 = vpop.f32.mrb[92].mxu0  ;;  %10299 = vmatprep.mubr.msk.bf16.mxu0 %vm10941_vm1, %v10940_v1  ;;  %v12701_v32 = vpop.f32.mrb[92].mxu1  ;;  %10307 = vmatprep.mubr.msk.bf16.mxu1 %vm10941_vm1, %v10940_v1 }
 0x204   :  { %v9899_v55 = vpop.f32.mrb[93].mxu0  ;;  %v9909_v46 = vpop.f32.mrb[93].mxu1  ;;  %v4436_v3 = vpack.c.bf16 %v4372_v60, %v4372_v60 }
 0x205   :  { %v3297_v62 = vpop.f32.mrb[94].mxu0  ;;  %10298 = vmatpush3.bf16.msra.mxu0 %v10850_v16  ;;  %v3358_v4 = vpop.f32.mrb[94].mxu1  ;;  %10306 = vmatpush3.bf16.msra.mxu1 %v10851_v52  ;;  %v4435_v55 = vpack.c.bf16 %v4371_v35, %v4371_v35  ;;  %v2685_v46 = vadd.f32 %v12261_v39, %v12484_v27  ;;  %v10866_v27 = vld [vmem:[%s13286_s4 + $0x248] sm:$0xff]   ;;  %v10876_v35 = vld [vmem:[%s13286_s4 + $0x2a0] sm:$0xff]  }
 0x206   :  { %v9900_v5 = vpop.f32.mrb[95].mxu0  ;;  %10311 = vmatprep.subr.bf16.mxu0 %v10940_v1  ;;  %v9910_v8 = vpop.f32.mrb[95].mxu1  ;;  %10319 = vmatprep.subr.bf16.mxu1 %v10940_v1  ;;  %v2746_v4 = vadd.f32 %v12261_v39, %v12487_v28  ;;  %v10867_v39 = vld [vmem:[%s13286_s4 + $0x258] sm:$0xff]  }
 0x207   :  { %v12823_v8 = vld [vmem:[%s13285_s3] ss:$0 sm:$0xff] }
 0x208   :  { %10300 = vmatmul.mubr.msk.bf16.vlgmr.msra.gmra.mrb[184].mxu0 %vm4733_vm3, %v4429_v2  ;;  %10308 = vmatmul.mubr.msk.bf16.vlgmr.msra.gmra.mrb[184].mxu1 %vm4733_vm3, %v4430_v6  ;;  %v10865_v2 = vld [vmem:[%s13286_s4 + $0x250] sm:$0xff]   ;;  %v4374_v28 = vmax.f32 %v2746_v4, 0.0  ;;  %v10868_v6 = vld [vmem:[%s13286_s4 + $0x260] sm:$0xff]   ;;  %v2868_v14 = vadd.f32 %v12823_v8, %v12529_v63  ;;  %v3051_v60 = vadd.f32 %v12823_v8, %v12610_v33  ;;  %v10878_v33 = vld [vmem:[%s13286_s4 + $0x2a8] sm:$0xff]   ;;  %v3173_v4 = vadd.f32 %v12823_v8, %v12656_v26 }
 0x209   :  { %10312 = vmatpush3.bf16.msra.mxu0 %v10852_v0  ;;  %10320 = vmatpush3.bf16.msra.mxu1 %v10853_v53  ;;  %v4373_v53 = vmax.f32 %v2685_v46, 0.0 }
 0x20a   :  { %10313 = vmatprep.subr.bf16.mxu0 %v10940_v1  ;;  %10321 = vmatprep.subr.bf16.mxu1 %v10940_v1 }
 0x20b   :  { %10315 = vmatprep.mubr.msk.bf16.mxu0 %vm10941_vm1, %v10940_v1  ;;  %10323 = vmatprep.mubr.msk.bf16.mxu1 %vm10941_vm1, %v10940_v1  ;;  %v4437_v56 = vpack.c.bf16 %v4373_v53, %v4373_v53  ;;  %v3234_v53 = vadd.f32 %v12823_v8, %v12659_v10 }
 0x20d   :  { %10314 = vmatpush3.bf16.msra.mxu0 %v10854_v49  ;;  %10322 = vmatpush3.bf16.msra.mxu1 %v10855_v51  ;;  %v2807_v49 = vadd.f32 %v12823_v8, %v12524_v61  ;;  %v4438_v51 = vpack.c.bf16 %v4374_v28, %v4374_v28 }
 0x20e   :  { %10327 = vmatprep.subr.bf16.mxu0 %v10940_v1  ;;  %10335 = vmatprep.subr.bf16.mxu1 %v10940_v1 }
 0x20f   :  { %v12742_v21 = vpop.f32.mrb[96].mxu0  ;;  %v12745_v17 = vpop.f32.mrb[96].mxu1  ;;  %v4375_v15 = vmax.f32 %v2807_v49, 0.0  ;;  %v10882_v49 = vld [vmem:[%s13286_s4 + $0x2c8] sm:$0xff]  }
 0x210   :  { %v9919_v23 = vpop.f32.mrb[97].mxu0  ;;  %10316 = vmatmul.mubr.msk.bf16.vlgmr.msra.gmra.mrb[188].mxu0 %vm4733_vm3, %v4431_v57  ;;  %v9929_v25 = vpop.f32.mrb[97].mxu1  ;;  %10324 = vmatmul.mubr.msk.bf16.vlgmr.msra.gmra.mrb[188].mxu1 %vm4733_vm3, %v4432_v59  ;;  %v10870_v59 = vld [vmem:[%s13286_s4 + $0x268] sm:$0xff]  }
 0x211   :  { %v3419_v24 = vpop.f32.mrb[98].mxu0  ;;  %10328 = vmatpush3.bf16.msra.mxu0 %v10856_v7  ;;  %v3480_v20 = vpop.f32.mrb[98].mxu1  ;;  %10336 = vmatpush3.bf16.msra.mxu1 %v10857_v54  ;;  %v10871_v25 = vld [vmem:[%s13286_s4 + $0x278] sm:$0xff]  }
 0x212   :  { %v9920_v19 = vpop.f32.mrb[99].mxu0  ;;  %10329 = vmatprep.subr.bf16.mxu0 %v10940_v1  ;;  %v9930_v42 = vpop.f32.mrb[99].mxu1  ;;  %10337 = vmatprep.subr.bf16.mxu1 %v10940_v1  ;;  %v4376_v24 = vmax.f32 %v2868_v14, 0.0  ;;  %v4439_v20 = vpack.c.bf16 %v4375_v15, %v4375_v15  ;;  %v10883_v14 = vld [vmem:[%s13286_s4 + $0x2d8] sm:$0xff]   ;;  %v3295_v15 = vadd.f32 %v12823_v8, %v12696_v44  ;;  %v10886_v44 = vld [vmem:[%s13286_s4 + $0x2e8] sm:$0xff]  }
 0x213   :  { %10331 = vmatprep.mubr.msk.bf16.mxu0 %vm10941_vm1, %v10940_v1  ;;  %10339 = vmatprep.mubr.msk.bf16.mxu1 %vm10941_vm1, %v10940_v1  ;;  %v2929_v19 = vadd.f32 %v12823_v8, %v12570_v29  ;;  %v2990_v42 = vadd.f32 %v12823_v8, %v12573_v9  ;;  %v10874_v29 = vld [vmem:[%s13286_s4 + $0x288] sm:$0xff]  }
 0x214   :  { %v4440_v34 = vpack.c.bf16 %v4376_v24, %v4376_v24  ;;  %v4383_v24 = vmax.f32 %v3295_v15, 0.0 }
 0x215   :  { %10330 = vmatpush3.bf16.msra.mxu0 %v10858_v13  ;;  %10338 = vmatpush3.bf16.msra.mxu1 %v10859_v31  ;;  %v10873_v31 = vld [vmem:[%s13286_s4 + $0x290] sm:$0xff]   ;;  %v4378_v9 = vmax.f32 %v2990_v42, 0.0  ;;  %v10888_v42 = vld [vmem:[%s13286_s4 + $0x300] sm:$0xff]  }
 0x216   :  { %10343 = vmatprep.subr.bf16.mxu0 %v10940_v1  ;;  %10351 = vmatprep.subr.bf16.mxu1 %v10940_v1 }
 0x218   :  { %10332 = vmatmul.mubr.msk.bf16.vlgmr.msra.gmra.mrb[192].mxu0 %vm4733_vm3, %v4433_v22  ;;  %10340 = vmatmul.mubr.msk.bf16.vlgmr.msra.gmra.mrb[192].mxu1 %vm4733_vm3, %v4434_v43  ;;  %v10875_v22 = vld [vmem:[%s13286_s4 + $0x298] sm:$0xff]  }
 0x219   :  { %10344 = vmatpush3.bf16.msra.mxu0 %v10860_v12  ;;  %10352 = vmatpush3.bf16.msra.mxu1 %v10861_v41  ;;  %v4377_v12 = vmax.f32 %v2929_v19, 0.0 }
 0x21a   :  { %10345 = vmatprep.subr.bf16.mxu0 %v10940_v1  ;;  %10353 = vmatprep.subr.bf16.mxu1 %v10940_v1 }
 0x21b   :  { %v12782_v48 = vpop.f32.mrb[100].mxu0  ;;  %10347 = vmatprep.mubr.msk.bf16.mxu0 %vm10941_vm1, %v10940_v1  ;;  %v12787_v38 = vpop.f32.mrb[100].mxu1  ;;  %10355 = vmatprep.mubr.msk.bf16.mxu1 %vm10941_vm1, %v10940_v1 }
 0x21c   :  { %v9939_v16 = vpop.f32.mrb[101].mxu0  ;;  %v9949_v30 = vpop.f32.mrb[101].mxu1 }
 0x21d   :  { %v3541_v52 = vpop.f32.mrb[102].mxu0  ;;  %10346 = vmatpush3.bf16.msra.mxu0 %v10862_v58  ;;  %v3602_v62 = vpop.f32.mrb[102].mxu1  ;;  %10354 = vmatpush3.bf16.msra.mxu1 %v10863_v47  ;;  %v4441_v47 = vpack.c.bf16 %v4377_v12, %v4377_v12  ;;  %v3417_v12 = vadd.f32 %v12823_v8, %v12742_v21  ;;  %v10890_v21 = vld [vmem:[%s13286_s4 + $0x308] sm:$0xff]  }
 0x21e   :  { %v9940_v0 = vpop.f32.mrb[103].mxu0  ;;  %10359 = vmatprep.subr.bf16.mxu0 %v10940_v1  ;;  %v9950_v5 = vpop.f32.mrb[103].mxu1  ;;  %10367 = vmatprep.subr.bf16.mxu1 %v10940_v1  ;;  %v10877_v52 = vld [vmem:[%s13286_s4 + $0x2b0] sm:$0xff]   ;;  %v4379_v62 = vmax.f32 %v3051_v60, 0.0 }
 0x21f   :  { %v10881_v5 = vld [vmem:[%s13286_s4 + $0x2d0] sm:$0xff]  }
 0x220   :  { %10348 = vmatmul.mubr.msk.bf16.vlgmr.msra.gmra.mrb[196].mxu0 %vm4733_vm3, %v4435_v55  ;;  %10356 = vmatmul.mubr.msk.bf16.vlgmr.msra.gmra.mrb[196].mxu1 %vm4733_vm3, %v4436_v3  ;;  %v3112_v55 = vadd.f32 %v12823_v8, %v12615_v36  ;;  %v10879_v36 = vld [vmem:[%s13286_s4 + $0x2b8] sm:$0xff]   ;;  %v4443_v3 = vpack.c.bf16 %v4379_v62, %v4379_v62 }
 0x221   :  { %10360 = vmatpush3.bf16.msra.mxu0 %v10864_v18  ;;  %10368 = vmatpush3.bf16.msra.mxu1 %v10865_v2  ;;  %v4442_v18 = vpack.c.bf16 %v4378_v9, %v4378_v9  ;;  %v10880_v2 = vld [vmem:[%s13286_s4 + $0x2c0] sm:$0xff]  }
 0x222   :  { %10361 = vmatprep.subr.bf16.mxu0 %v10940_v1  ;;  %10369 = vmatprep.subr.bf16.mxu1 %v10940_v1  ;;  %v4380_v0 = vmax.f32 %v3112_v55, 0.0 }
 0x223   :  { %10363 = vmatprep.mubr.msk.bf16.mxu0 %vm10941_vm1, %v10940_v1  ;;  %10371 = vmatprep.mubr.msk.bf16.mxu1 %vm10941_vm1, %v10940_v1 }
 0x225   :  { %10362 = vmatpush3.bf16.msra.mxu0 %v10866_v27  ;;  %10370 = vmatpush3.bf16.msra.mxu1 %v10867_v39  ;;  %v4444_v27 = vpack.c.bf16 %v4380_v0, %v4380_v0 }
 0x226   :  { %10375 = vmatprep.subr.bf16.mxu0 %v10940_v1  ;;  %10383 = vmatprep.subr.bf16.mxu1 %v10940_v1 }
 0x227   :  { %v12833_v7 = vpop.f32.mrb[104].mxu0  ;;  %v12836_v57 = vpop.f32.mrb[104].mxu1 }
 0x228   :  { %v9959_v11 = vpop.f32.mrb[105].mxu0  ;;  %10364 = vmatmul.mubr.msk.bf16.vlgmr.msra.gmra.mrb[200].mxu0 %vm4733_vm3, %v4437_v56  ;;  %v9969_v61 = vpop.f32.mrb[105].mxu1  ;;  %10372 = vmatmul.mubr.msk.bf16.vlgmr.msra.gmra.mrb[200].mxu1 %vm4733_vm3, %v4438_v51 }
 0x229   :  { %v3663_v54 = vpop.f32.mrb[106].mxu0  ;;  %10376 = vmatpush3.bf16.msra.mxu0 %v10868_v6  ;;  %v3724_v63 = vpop.f32.mrb[106].mxu1  ;;  %10384 = vmatpush3.bf16.msra.mxu1 %v10869_v50  ;;  %v4381_v50 = vmax.f32 %v3173_v4, 0.0  ;;  %v4382_v11 = vmax.f32 %v3234_v53, 0.0 }
 0x22a   :  { %v9960_v23 = vpop.f32.mrb[107].mxu0  ;;  %10377 = vmatprep.subr.bf16.mxu0 %v10940_v1  ;;  %v9970_v13 = vpop.f32.mrb[107].mxu1  ;;  %10385 = vmatprep.subr.bf16.mxu1 %v10940_v1  ;;  %v10884_v54 = vld [vmem:[%s13286_s4 + $0x2e0] sm:$0xff]   ;;  %v10885_v63 = vld [vmem:[%s13286_s4 + $0x2f0] sm:$0xff]  }
 0x22b   :  { %10379 = vmatprep.mubr.msk.bf16.mxu0 %vm10941_vm1, %v10940_v1  ;;  %10387 = vmatprep.mubr.msk.bf16.mxu1 %vm10941_vm1, %v10940_v1  ;;  %v4446_v23 = vpack.c.bf16 %v4382_v11, %v4382_v11  ;;  %v10887_v13 = vld [vmem:[%s13286_s4 + $0x2f8] sm:$0xff]  }
 0x22d   :  { %10378 = vmatpush3.bf16.msra.mxu0 %v10870_v59  ;;  %10386 = vmatpush3.bf16.msra.mxu1 %v10871_v25  ;;  %v4445_v59 = vpack.c.bf16 %v4381_v50, %v4381_v50  ;;  %v3356_v25 = vadd.f32 %v12823_v8, %v12701_v32 }
 0x22e   :  { %10391 = vmatprep.subr.bf16.mxu0 %v10940_v1  ;;  %10399 = vmatprep.subr.bf16.mxu1 %v10940_v1 }
 0x22f   :  { %v4384_v32 = vmax.f32 %v3356_v25, 0.0 }
 0x230   :  { %10380 = vmatmul.mubr.msk.bf16.vlgmr.msra.gmra.mrb[204].mxu0 %vm4733_vm3, %v4439_v20  ;;  %10388 = vmatmul.mubr.msk.bf16.vlgmr.msra.gmra.mrb[204].mxu1 %vm4733_vm3, %v4440_v34 }
 0x231   :  { %10392 = vmatpush3.bf16.msra.mxu0 %v10872_v40  ;;  %10400 = vmatpush3.bf16.msra.mxu1 %v10873_v31 }
 0x232   :  { %10393 = vmatprep.subr.bf16.mxu0 %v10940_v1  ;;  %10401 = vmatprep.subr.bf16.mxu1 %v10940_v1 }
 0x233   :  { %v12873_v37 = vpop.f32.mrb[108].mxu0  ;;  %10395 = vmatprep.mubr.msk.bf16.mxu0 %vm10941_vm1, %v10940_v1  ;;  %v12878_v41 = vpop.f32.mrb[108].mxu1  ;;  %10403 = vmatprep.mubr.msk.bf16.mxu1 %vm10941_vm1, %v10940_v1 }
 0x234   :  { %v9979_v43 = vpop.f32.mrb[109].mxu0  ;;  %v9989_v45 = vpop.f32.mrb[109].mxu1  ;;  %v3783_v25 = vadd.f32 %v12823_v8, %v12873_v37  ;;  %v10902_v37 = vld [vmem:[%s13286_s4 + $0x368] sm:$0xff]  }
 0x235   :  { %v3785_v58 = vpop.f32.mrb[110].mxu0  ;;  %10394 = vmatpush3.bf16.msra.mxu0 %v10874_v29  ;;  %v3846_v16 = vpop.f32.mrb[110].mxu1  ;;  %10402 = vmatpush3.bf16.msra.mxu1 %v10875_v22  ;;  %v4447_v29 = vpack.c.bf16 %v4383_v24, %v4383_v24  ;;  %v10889_v43 = vld [vmem:[%s13286_s4 + $0x310] sm:$0xff]   ;;  %v4448_v45 = vpack.c.bf16 %v4384_v32, %v4384_v32 }
 0x236   :  { %v9980_v30 = vpop.f32.mrb[111].mxu0  ;;  %10407 = vmatprep.subr.bf16.mxu0 %v10940_v1  ;;  %v9990_v46 = vpop.f32.mrb[111].mxu1  ;;  %10415 = vmatprep.subr.bf16.mxu1 %v10940_v1  ;;  %v3478_v58 = vadd.f32 %v12823_v8, %v12745_v17  ;;  %v10891_v17 = vld [vmem:[%s13286_s4 + $0x318] sm:$0xff]   ;;  %v10892_v16 = vld [vmem:[%s13286_s4 + $0x320] sm:$0xff]  }
 0x237   :  { %v3600_v46 = vadd.f32 %v12823_v8, %v12787_v38 }
 0x238   :  { %10396 = vmatmul.mubr.msk.bf16.vlgmr.msra.gmra.mrb[208].mxu0 %vm4733_vm3, %v4441_v47  ;;  %10404 = vmatmul.mubr.msk.bf16.vlgmr.msra.gmra.mrb[208].mxu1 %vm4733_vm3, %v4442_v18  ;;  %v4385_v47 = vmax.f32 %v3417_v12, 0.0  ;;  %v4386_v60 = vmax.f32 %v3478_v58, 0.0  ;;  %v10893_v18 = vld [vmem:[%s13286_s4 + $0x330] sm:$0xff]  }
 0x239   :  { %10408 = vmatpush3.bf16.msra.mxu0 %v10876_v35  ;;  %10416 = vmatpush3.bf16.msra.mxu1 %v10877_v52  ;;  %v3539_v52 = vadd.f32 %v12823_v8, %v12782_v48 }
 0x23a   :  { %10409 = vmatprep.subr.bf16.mxu0 %v10940_v1  ;;  %10417 = vmatprep.subr.bf16.mxu1 %v10940_v1  ;;  %v4449_v30 = vpack.c.bf16 %v4385_v47, %v4385_v47  ;;  %v4450_v55 = vpack.c.bf16 %v4386_v60, %v4386_v60 }
 0x23b   :  { %10411 = vmatprep.mubr.msk.bf16.mxu0 %vm10941_vm1, %v10940_v1  ;;  %10419 = vmatprep.mubr.msk.bf16.mxu1 %vm10941_vm1, %v10940_v1 }
 0x23d   :  { %10410 = vmatpush3.bf16.msra.mxu0 %v10878_v33  ;;  %10418 = vmatpush3.bf16.msra.mxu1 %v10879_v36 }
 0x23e   :  { %10423 = vmatprep.subr.bf16.mxu0 %v10940_v1  ;;  %10431 = vmatprep.subr.bf16.mxu1 %v10940_v1 }
 0x23f   :  { %v12919_v39 = vpop.f32.mrb[112].mxu0  ;;  %v12922_v28 = vpop.f32.mrb[112].mxu1 }
 0x240   :  { %v9999_v6 = vpop.f32.mrb[113].mxu0  ;;  %10412 = vmatmul.mubr.msk.bf16.vlgmr.msra.gmra.mrb[212].mxu0 %vm4733_vm3, %v4443_v3  ;;  %v10009_v26 = vpop.f32.mrb[113].mxu1  ;;  %10420 = vmatmul.mubr.msk.bf16.vlgmr.msra.gmra.mrb[212].mxu1 %vm4733_vm3, %v4444_v27  ;;  %v4387_v3 = vmax.f32 %v3539_v52, 0.0  ;;  %v4388_v27 = vmax.f32 %v3600_v46, 0.0  ;;  %v3905_v47 = vadd.f32 %v12823_v8, %v12919_v39  ;;  %v10906_v39 = vld [vmem:[%s13286_s4 + $0x388] sm:$0xff]  }
 0x241   :  { %v3907_v56 = vpop.f32.mrb[114].mxu0  ;;  %10424 = vmatpush3.bf16.msra.mxu0 %v10880_v2  ;;  %v3968_v10 = vpop.f32.mrb[114].mxu1  ;;  %10432 = vmatpush3.bf16.msra.mxu1 %v10881_v5  ;;  %v10894_v2 = vld [vmem:[%s13286_s4 + $0x328] sm:$0xff]   ;;  %v10895_v5 = vld [vmem:[%s13286_s4 + $0x338] sm:$0xff]   ;;  %v10896_v6 = vld [vmem:[%s13286_s4 + $0x340] sm:$0xff]  }
 0x242   :  { %v10000_v51 = vpop.f32.mrb[115].mxu0  ;;  %10425 = vmatprep.subr.bf16.mxu0 %v10940_v1  ;;  %v10010_v61 = vpop.f32.mrb[115].mxu1  ;;  %10433 = vmatprep.subr.bf16.mxu1 %v10940_v1  ;;  %v4451_v26 = vpack.c.bf16 %v4387_v3, %v4387_v3  ;;  %v3661_v56 = vadd.f32 %v12823_v8, %v12833_v7  ;;  %v4452_v50 = vpack.c.bf16 %v4388_v27, %v4388_v27  ;;  %v10898_v7 = vld [vmem:[%s13286_s4 + $0x348] sm:$0xff]   ;;  %v4393_v46 = vmax.f32 %v3905_v47, 0.0  ;;  %v10908_v27 = vld [vmem:[%s13286_s4 + $0x3a0] sm:$0xff]  }
 0x243   :  { %10427 = vmatprep.mubr.msk.bf16.mxu0 %vm10941_vm1, %v10940_v1  ;;  %10435 = vmatprep.mubr.msk.bf16.mxu1 %vm10941_vm1, %v10940_v1  ;;  %v3722_v10 = vadd.f32 %v12823_v8, %v12836_v57 }
 0x244   :  { %v4389_v51 = vmax.f32 %v3661_v56, 0.0 }
 0x245   :  { %10426 = vmatpush3.bf16.msra.mxu0 %v10882_v49  ;;  %10434 = vmatpush3.bf16.msra.mxu1 %v10883_v14  ;;  %v10897_v49 = vld [vmem:[%s13286_s4 + $0x350] sm:$0xff]   ;;  %v10899_v14 = vld [vmem:[%s13286_s4 + $0x358] sm:$0xff]   ;;  %v4390_v57 = vmax.f32 %v3722_v10, 0.0 }
 0x246   :  { %10439 = vmatprep.subr.bf16.mxu0 %v10940_v1  ;;  %10447 = vmatprep.subr.bf16.mxu1 %v10940_v1 }
 0x247   :  { %v4454_v32 = vpack.c.bf16 %v4390_v57, %v4390_v57 }
 0x248   :  { %10428 = vmatmul.mubr.msk.bf16.vlgmr.msra.gmra.mrb[216].mxu0 %vm4733_vm3, %v4445_v59  ;;  %10436 = vmatmul.mubr.msk.bf16.vlgmr.msra.gmra.mrb[216].mxu1 %vm4733_vm3, %v4446_v23  ;;  %v4453_v23 = vpack.c.bf16 %v4389_v51, %v4389_v51 }
 0x249   :  { %10440 = vmatpush3.bf16.msra.mxu0 %v10884_v54  ;;  %10448 = vmatpush3.bf16.msra.mxu1 %v10885_v63  ;;  %v10900_v63 = vld [vmem:[%s13286_s4 + $0x360] sm:$0xff]  }
 0x24a   :  { %10441 = vmatprep.subr.bf16.mxu0 %v10940_v1  ;;  %10449 = vmatprep.subr.bf16.mxu1 %v10940_v1 }
 0x24b   :  { %v12959_v40 = vpop.f32.mrb[116].mxu0  ;;  %10443 = vmatprep.mubr.msk.bf16.mxu0 %vm10941_vm1, %v10940_v1  ;;  %v12964_v20 = vpop.f32.mrb[116].mxu1  ;;  %10451 = vmatprep.mubr.msk.bf16.mxu1 %vm10941_vm1, %v10940_v1 }
 0x24c   :  { %v10019_v19 = vpop.f32.mrb[117].mxu0  ;;  %v10029_v31 = vpop.f32.mrb[117].mxu1 }
 0x24d   :  { %v4029_v34 = vpop.f32.mrb[118].mxu0  ;;  %10442 = vmatpush3.bf16.msra.mxu0 %v10886_v44  ;;  %v4090_v22 = vpop.f32.mrb[118].mxu1  ;;  %10450 = vmatpush3.bf16.msra.mxu1 %v10887_v13  ;;  %v10901_v13 = vld [vmem:[%s13286_s4 + $0x370] sm:$0xff]   ;;  %v3844_v19 = vadd.f32 %v12823_v8, %v12878_v41  ;;  %v10903_v41 = vld [vmem:[%s13286_s4 + $0x378] sm:$0xff]  }
 0x24e   :  { %v10020_v9 = vpop.f32.mrb[119].mxu0  ;;  %10455 = vmatprep.subr.bf16.mxu0 %v10940_v1  ;;  %v10030_v35 = vpop.f32.mrb[119].mxu1  ;;  %10463 = vmatprep.subr.bf16.mxu1 %v10940_v1  ;;  %v4391_v34 = vmax.f32 %v3783_v25, 0.0 }
 0x24f   :  { %v10904_v35 = vld [vmem:[%s13286_s4 + $0x380] sm:$0xff]  }
 0x250   :  { %10444 = vmatmul.mubr.msk.bf16.vlgmr.msra.gmra.mrb[220].mxu0 %vm4733_vm3, %v4447_v29  ;;  %10452 = vmatmul.mubr.msk.bf16.vlgmr.msra.gmra.mrb[220].mxu1 %vm4733_vm3, %v4448_v45 }
 0x251   :  { %10456 = vmatpush3.bf16.msra.mxu0 %v10888_v42  ;;  %10464 = vmatpush3.bf16.msra.mxu1 %v10889_v43  ;;  %v4392_v42 = vmax.f32 %v3844_v19, 0.0 }
 0x252   :  { %10457 = vmatprep.subr.bf16.mxu0 %v10940_v1  ;;  %10465 = vmatprep.subr.bf16.mxu1 %v10940_v1 }
 0x253   :  { %10459 = vmatprep.mubr.msk.bf16.mxu0 %vm10941_vm1, %v10940_v1  ;;  %10467 = vmatprep.mubr.msk.bf16.mxu1 %vm10941_vm1, %v10940_v1  ;;  %v4456_v52 = vpack.c.bf16 %v4392_v42, %v4392_v42 }
 0x255   :  { %10458 = vmatpush3.bf16.msra.mxu0 %v10890_v21  ;;  %10466 = vmatpush3.bf16.msra.mxu1 %v10891_v17  ;;  %v4455_v21 = vpack.c.bf16 %v4391_v34, %v4391_v34 }
 0x256   :  { %10471 = vmatprep.subr.bf16.mxu0 %v10940_v1  ;;  %10479 = vmatprep.subr.bf16.mxu1 %v10940_v1 }
 0x257   :  { %v13005_v33 = vpop.f32.mrb[120].mxu0  ;;  %v13008_v62 = vpop.f32.mrb[120].mxu1 }
 0x258   :  { %v10039_v36 = vpop.f32.mrb[121].mxu0  ;;  %10460 = vmatmul.mubr.msk.bf16.vlgmr.msra.gmra.mrb[224].mxu0 %vm4733_vm3, %v4449_v30  ;;  %v10049_v48 = vpop.f32.mrb[121].mxu1  ;;  %10468 = vmatmul.mubr.msk.bf16.vlgmr.msra.gmra.mrb[224].mxu1 %vm4733_vm3, %v4450_v55  ;;  %v10905_v30 = vld [vmem:[%s13286_s4 + $0x390] sm:$0xff]   ;;  %v4149_v19 = vadd.f32 %v12823_v8, %v13005_v33  ;;  %v10914_v33 = vld [vmem:[%s13286_s4 + $0x3c8] sm:$0xff]  }
 0x259   :  { %v4151_v0 = vpop.f32.mrb[122].mxu0  ;;  %10472 = vmatpush3.bf16.msra.mxu0 %v10892_v16  ;;  %v4212_v38 = vpop.f32.mrb[122].mxu1  ;;  %10480 = vmatpush3.bf16.msra.mxu1 %v10893_v18  ;;  %v3966_v18 = vadd.f32 %v12823_v8, %v12922_v28  ;;  %v10907_v28 = vld [vmem:[%s13286_s4 + $0x398] sm:$0xff]  }
 0x25a   :  { %v10040_v4 = vpop.f32.mrb[123].mxu0  ;;  %10473 = vmatprep.subr.bf16.mxu0 %v10940_v1  ;;  %v10050_v53 = vpop.f32.mrb[123].mxu1  ;;  %10481 = vmatprep.subr.bf16.mxu1 %v10940_v1 }
 0x25b   :  { %10475 = vmatprep.mubr.msk.bf16.mxu0 %vm10941_vm1, %v10940_v1  ;;  %10483 = vmatprep.mubr.msk.bf16.mxu1 %vm10941_vm1, %v10940_v1  ;;  %v4394_v36 = vmax.f32 %v3966_v18, 0.0  ;;  %v4457_v53 = vpack.c.bf16 %v4393_v46, %v4393_v46  ;;  %v10917_v46 = vld [vmem:[%s13286_s4 + $0x3f0] sm:$0xff]  }
 0x25d   :  { %10474 = vmatpush3.bf16.msra.mxu0 %v10894_v2  ;;  %10482 = vmatpush3.bf16.msra.mxu1 %v10895_v5  ;;  %v4458_v10 = vpack.c.bf16 %v4394_v36, %v4394_v36 }
 0x25e   :  { %10487 = vmatprep.subr.bf16.mxu0 %v10940_v1  ;;  %10495 = vmatprep.subr.bf16.mxu1 %v10940_v1 }
 0x260   :  { %10476 = vmatmul.mubr.msk.bf16.vlgmr.msra.gmra.mrb[228].mxu0 %vm4733_vm3, %v4451_v26  ;;  %10484 = vmatmul.mubr.msk.bf16.vlgmr.msra.gmra.mrb[228].mxu1 %vm4733_vm3, %v4452_v50  ;;  %v10909_v50 = vld [vmem:[%s13286_s4 + $0x3b0] sm:$0xff]  }
 0x261   :  { %10488 = vmatpush3.bf16.msra.mxu0 %v10896_v6  ;;  %10496 = vmatpush3.bf16.msra.mxu1 %v10897_v49  ;;  %v4027_v6 = vadd.f32 %v12823_v8, %v12959_v40  ;;  %v10910_v40 = vld [vmem:[%s13286_s4 + $0x3a8] sm:$0xff]  }
 0x262   :  { %10489 = vmatprep.subr.bf16.mxu0 %v10940_v1  ;;  %10497 = vmatprep.subr.bf16.mxu1 %v10940_v1 }
 0x263   :  { %v13045_v11 = vpop.f32.mrb[124].mxu0  ;;  %10491 = vmatprep.mubr.msk.bf16.mxu0 %vm10941_vm1, %v10940_v1  ;;  %v13050_v61 = vpop.f32.mrb[124].mxu1  ;;  %10499 = vmatprep.mubr.msk.bf16.mxu1 %vm10941_vm1, %v10940_v1  ;;  %v4395_v57 = vmax.f32 %v4027_v6, 0.0 }
 0x264   :  { %v10059_v54 = vpop.f32.mrb[125].mxu0  ;;  %v10069_v59 = vpop.f32.mrb[125].mxu1  ;;  %v4332_v36 = vadd.f32 %v12823_v8, %v13050_v61 }
 0x265   :  { %v4273_v15 = vpop.f32.mrb[126].mxu0  ;;  %10490 = vmatpush3.bf16.msra.mxu0 %v10898_v7  ;;  %v4334_v44 = vpop.f32.mrb[126].mxu1  ;;  %10498 = vmatpush3.bf16.msra.mxu1 %v10899_v14  ;;  %v4088_v7 = vadd.f32 %v12823_v8, %v12964_v20  ;;  %v10911_v20 = vld [vmem:[%s13286_s4 + $0x3b8] sm:$0xff]  }
 0x266   :  { %v10060_v24 = vpop.f32.mrb[127].mxu0  ;;  %10503 = vmatprep.subr.bf16.mxu0 %v10940_v1  ;;  %v10070_v31 = vpop.f32.mrb[127].mxu1  ;;  %10511 = vmatprep.subr.bf16.mxu1 %v10940_v1  ;;  %v4400_v61 = vmax.f32 %v4332_v36, 0.0 }
 0x267   :  { %v4396_v54 = vmax.f32 %v4088_v7, 0.0 }
 0x268   :  { %10492 = vmatmul.mubr.msk.bf16.vlgmr.msra.gmra.mrb[232].mxu0 %vm4733_vm3, %v4453_v23  ;;  %10500 = vmatmul.mubr.msk.bf16.vlgmr.msra.gmra.mrb[232].mxu1 %vm4733_vm3, %v4454_v32  ;;  %v4459_v32 = vpack.c.bf16 %v4395_v57, %v4395_v57 }
 0x269   :  { %10504 = vmatpush3.bf16.msra.mxu0 %v10900_v63  ;;  %10512 = vmatpush3.bf16.msra.mxu1 %v10901_v13  ;;  %v10912_v13 = vld [vmem:[%s13286_s4 + $0x3c0] sm:$0xff]   ;;  %v4460_v42 = vpack.c.bf16 %v4396_v54, %v4396_v54 }
 0x26a   :  { %10505 = vmatprep.subr.bf16.mxu0 %v10940_v1  ;;  %10513 = vmatprep.subr.bf16.mxu1 %v10940_v1 }
 0x26b   :  { %v4771_v29 = vpop.f32.mrb[128].mxu0  ;;  %10507 = vmatprep.mubr.msk.bf16.mxu0 %vm10941_vm1, %v10940_v1  ;;  %v4826_v22 = vpop.f32.mrb[128].mxu1  ;;  %10515 = vmatprep.mubr.msk.bf16.mxu1 %vm10941_vm1, %v10940_v1 }
 0x26c   :  { %v8243_v12 = vsel %vm8242_vm4, %v4771_v29, 0.0  ;;  %v10077_v9 = vpop.f32.mrb[129].mxu0  ;;  %v8244_v43 = vsel %vm8242_vm4, %v4826_v22, 0.0  ;;  %v10085_v45 = vpop.f32.mrb[129].mxu1  ;;  %v4210_v29 = vadd.f32 %v12823_v8, %v13008_v62  ;;  %v10915_v62 = vld [vmem:[%s13286_s4 + $0x3d8] sm:$0xff]  }
 0x26d   :  { %v4774_v58 = vpop.f32.mrb[130].mxu0  ;;  %10506 = vmatpush3.bf16.msra.mxu0 %v10902_v37  ;;  %v8245_v17 = vadd.f32 %v8244_v43, %v8243_v12  ;;  %v4829_v60 = vpop.f32.mrb[130].mxu1  ;;  %10514 = vmatpush3.bf16.msra.mxu1 %v10903_v41  ;;  %v10913_v41 = vld [vmem:[%s13286_s4 + $0x3d0] sm:$0xff]   ;;  %v4397_v9 = vmax.f32 %v4149_v19, 0.0 }
 0x26e   :  { %v10078_v16 = vpop.f32.mrb[131].mxu0  ;;  %10519 = vmatprep.subr.bf16.mxu0 %v10940_v1  ;;  %v10086_v55 = vpop.f32.mrb[131].mxu1  ;;  %10527 = vmatprep.subr.bf16.mxu1 %v10940_v1  ;;  %v4398_v43 = vmax.f32 %v4210_v29, 0.0 }
 0x26f   :  { %v10916_v16 = vld [vmem:[%s13286_s4 + $0x3e0] sm:$0xff]  }
 0x270   :  { %10508 = vmatmul.mubr.msk.bf16.vlgmr.msra.gmra.mrb[236].mxu0 %vm4733_vm3, %v4455_v21  ;;  %10516 = vmatmul.mubr.msk.bf16.vlgmr.msra.gmra.mrb[236].mxu1 %vm4733_vm3, %v4456_v52  ;;  %v4271_v52 = vadd.f32 %v12823_v8, %v13045_v11  ;;  %v10918_v11 = vld [vmem:[%s13286_s4 + $0x3e8] sm:$0xff]   ;;  %v10919_v8 = vld [vmem:[%s13286_s4 + $0x3f8] sm:$0xff]   ;;  %s8972_s4 = sld [smem:[#allocation3 + $0x1]] }
 0x271   :  { %10520 = vmatpush3.bf16.msra.mxu0 %v10904_v35  ;;  %10528 = vmatpush3.bf16.msra.mxu1 %v10905_v30  ;;  %v4461_v30 = vpack.c.bf16 %v4397_v9, %v4397_v9 }
 0x272   :  { %10521 = vmatprep.subr.bf16.mxu0 %v10940_v1  ;;  %10529 = vmatprep.subr.bf16.mxu1 %v10940_v1 }
 0x273   :  { %v4881_v48 = vpop.f32.mrb[132].mxu0  ;;  %10523 = vmatprep.mubr.msk.bf16.mxu0 %vm10941_vm1, %v10940_v1  ;;  %v4936_v2 = vpop.f32.mrb[132].mxu1  ;;  %10531 = vmatprep.mubr.msk.bf16.mxu1 %vm10941_vm1, %v10940_v1 }
 0x274   :  { %v8246_v0 = vsel %vm8242_vm4, %v4881_v48, 0.0  ;;  %v10093_v3 = vpop.f32.mrb[133].mxu0  ;;  %v10101_v4 = vpop.f32.mrb[133].mxu1  ;;  %v8248_v26 = vsel %vm8242_vm4, %v4936_v2, 0.0  ;;  %v4399_v2 = vmax.f32 %v4271_v52, 0.0 }
 0x275   :  { %v8247_v38 = vadd.f32 %v8246_v0, %v8245_v17  ;;  %v4884_v5 = vpop.f32.mrb[134].mxu0  ;;  %10522 = vmatpush3.bf16.msra.mxu0 %v10906_v39  ;;  %v4939_v56 = vpop.f32.mrb[134].mxu1  ;;  %10530 = vmatpush3.bf16.msra.mxu1 %v10907_v28  ;;  %v4462_v28 = vpack.c.bf16 %v4398_v43, %v4398_v43 }
 0x276   :  { %v10094_v49 = vpop.f32.mrb[135].mxu0  ;;  %10535 = vmatprep.subr.bf16.mxu0 %v10940_v1  ;;  %v10102_v14 = vpop.f32.mrb[135].mxu1  ;;  %10543 = vmatprep.subr.bf16.mxu1 %v10940_v1  ;;  %s8383_s29 = scalar_lea.vmem %s13288_s6, %s8972_s4 }
 0x277   :  { %v8249_v51 = vadd.f32 %v8248_v26, %v8247_v38  ;;  %v4463_v26 = vpack.c.bf16 %v4399_v2, %v4399_v2 }
 0x278   :  { %10524 = vmatmul.mubr.msk.bf16.vlgmr.msra.gmra.mrb[240].mxu0 %vm4733_vm3, %v4457_v53  ;;  %10532 = vmatmul.mubr.msk.bf16.vlgmr.msra.gmra.mrb[240].mxu1 %vm4733_vm3, %v4458_v10  ;;  %v4464_v10 = vpack.c.bf16 %v4400_v61, %v4400_v61 }
 0x279   :  { %10536 = vmatpush3.bf16.msra.mxu0 %v10908_v27  ;;  %10544 = vmatpush3.bf16.msra.mxu1 %v10909_v50 }
 0x27a   :  { %10537 = vmatprep.subr.bf16.mxu0 %v10940_v1  ;;  %10545 = vmatprep.subr.bf16.mxu1 %v10940_v1 }
 0x27b   :  { %v4991_v59 = vpop.f32.mrb[136].mxu0  ;;  %10539 = vmatprep.mubr.msk.bf16.mxu0 %vm10941_vm1, %v10940_v1  ;;  %v5046_v63 = vpop.f32.mrb[136].mxu1  ;;  %10547 = vmatprep.mubr.msk.bf16.mxu1 %vm10941_vm1, %v10940_v1 }
 0x27c   :  { %v8250_v15 = vsel %vm8242_vm4, %v4991_v59, 0.0  ;;  %v10109_v23 = vpop.f32.mrb[137].mxu0  ;;  %v10117_v44 = vpop.f32.mrb[137].mxu1  ;;  %v8252_v31 = vsel %vm8242_vm4, %v5046_v63, 0.0 }
 0x27d   :  { %v8251_v25 = vadd.f32 %v8250_v15, %v8249_v51  ;;  %v4994_v24 = vpop.f32.mrb[138].mxu0  ;;  %10538 = vmatpush3.bf16.msra.mxu0 %v10910_v40  ;;  %v5049_v37 = vpop.f32.mrb[138].mxu1  ;;  %10546 = vmatpush3.bf16.msra.mxu1 %v10911_v20 }
 0x27e   :  { %v10110_v34 = vpop.f32.mrb[139].mxu0  ;;  %10551 = vmatprep.subr.bf16.mxu0 %v10940_v1  ;;  %v10118_v22 = vpop.f32.mrb[139].mxu1  ;;  %10559 = vmatprep.subr.bf16.mxu1 %v10940_v1 }
 0x27f   :  { %v8253_v12 = vadd.f32 %v8252_v31, %v8251_v25 }
 0x280   :  { %10540 = vmatmul.mubr.msk.bf16.vlgmr.msra.gmra.mrb[244].mxu0 %vm4733_vm3, %v4459_v32  ;;  %10548 = vmatmul.mubr.msk.bf16.vlgmr.msra.gmra.mrb[244].mxu1 %vm4733_vm3, %v4460_v42 }
 0x281   :  { %10552 = vmatpush3.bf16.msra.mxu0 %v10912_v13  ;;  %10560 = vmatpush3.bf16.msra.mxu1 %v10913_v41 }
 0x282   :  { %10553 = vmatprep.subr.bf16.mxu0 %v10940_v1  ;;  %10561 = vmatprep.subr.bf16.mxu1 %v10940_v1 }
 0x283   :  { %v5101_v45 = vpop.f32.mrb[140].mxu0  ;;  %10555 = vmatprep.mubr.msk.bf16.mxu0 %vm10941_vm1, %v10940_v1  ;;  %v5156_v35 = vpop.f32.mrb[140].mxu1  ;;  %10563 = vmatprep.mubr.msk.bf16.mxu1 %vm10941_vm1, %v10940_v1 }
 0x284   :  { %v8254_v58 = vsel %vm8242_vm4, %v5101_v45, 0.0  ;;  %v10125_v21 = vpop.f32.mrb[141].mxu0  ;;  %v10133_v17 = vpop.f32.mrb[141].mxu1  ;;  %v8256_v18 = vsel %vm8242_vm4, %v5156_v35, 0.0 }
 0x285   :  { %v8255_v47 = vadd.f32 %v8254_v58, %v8253_v12  ;;  %v5104_v60 = vpop.f32.mrb[142].mxu0  ;;  %10554 = vmatpush3.bf16.msra.mxu0 %v10914_v33  ;;  %v5159_v55 = vpop.f32.mrb[142].mxu1  ;;  %10562 = vmatpush3.bf16.msra.mxu1 %v10915_v62 }
 0x286   :  { %v10126_v39 = vpop.f32.mrb[143].mxu0  ;;  %10567 = vmatprep.subr.bf16.mxu0 %v10940_v1  ;;  %v10134_v0 = vpop.f32.mrb[143].mxu1  ;;  %10575 = vmatprep.subr.bf16.mxu1 %v10940_v1 }
 0x287   :  { %v8257_v48 = vadd.f32 %v8256_v18, %v8255_v47 }
 0x288   :  { %10556 = vmatmul.mubr.msk.bf16.vlgmr.msra.gmra.mrb[248].mxu0 %vm4733_vm3, %v4461_v30  ;;  %10564 = vmatmul.mubr.msk.bf16.vlgmr.msra.gmra.mrb[248].mxu1 %vm4733_vm3, %v4462_v28 }
 0x289   :  { %10568 = vmatpush3.bf16.msra.mxu0 %v10916_v16  ;;  %10576 = vmatpush3.bf16.msra.mxu1 %v10917_v46 }
 0x28a   :  { %10569 = vmatprep.subr.bf16.mxu0 %v10940_v1  ;;  %10577 = vmatprep.subr.bf16.mxu1 %v10940_v1 }
 0x28b   :  { %v5211_v3 = vpop.f32.mrb[144].mxu0  ;;  %10571 = vmatprep.mubr.msk.bf16.mxu0 %vm10941_vm1, %v10940_v1  ;;  %v5266_v4 = vpop.f32.mrb[144].mxu1  ;;  %10579 = vmatprep.mubr.msk.bf16.mxu1 %vm10941_vm1, %v10940_v1 }
 0x28c   :  { %v8258_v38 = vsel %vm8242_vm4, %v5211_v3, 0.0  ;;  %v10141_v5 = vpop.f32.mrb[145].mxu0  ;;  %v10149_v53 = vpop.f32.mrb[145].mxu1  ;;  %v8260_v56 = vsel %vm8242_vm4, %v5266_v4, 0.0 }
 0x28d   :  { %v8259_v27 = vadd.f32 %v8258_v38, %v8257_v48  ;;  %v5214_v6 = vpop.f32.mrb[146].mxu0  ;;  %10570 = vmatpush3.bf16.msra.mxu0 %v10918_v11  ;;  %v5269_v49 = vpop.f32.mrb[146].mxu1  ;;  %10578 = vmatpush3.bf16.msra.mxu1 %v10919_v8 }
 0x28e   :  { %v10142_v50 = vpop.f32.mrb[147].mxu0  ;;  %10583 = vmatprep.subr.bf16.mxu0 %v10940_v1  ;;  %v10150_v51 = vpop.f32.mrb[147].mxu1  ;;  %10589 = vmatprep.subr.bf16.mxu1 %v10940_v1 }
 0x28f   :  { %v8261_v7 = vadd.f32 %v8260_v56, %v8259_v27 }
 0x290   :  { %10572 = vmatmul.mubr.msk.bf16.vlgmr.msra.gmra.mrb[252].mxu0 %vm4733_vm3, %v4463_v26  ;;  %10580 = vmatmul.mubr.msk.bf16.vlgmr.msra.gmra.mrb[252].mxu1 %vm4733_vm3, %v4464_v10 }
 0x291   :  { %10585 = vmatprep.mubr.msk.bf16.mxu0 %vm10941_vm1, %v10940_v1  ;;  %10593 = vmatprep.mubr.msk.bf16.mxu1 %vm10941_vm1, %v10940_v1 }
 0x293   :  { %v5321_v14 = vpop.f32.mrb[148].mxu0  ;;  %v5376_v57 = vpop.f32.mrb[148].mxu1 }
 0x294   :  { %v8262_v40 = vsel %vm8242_vm4, %v5321_v14, 0.0  ;;  %v10157_v20 = vpop.f32.mrb[149].mxu0  ;;  %v10165_v59 = vpop.f32.mrb[149].mxu1  ;;  %v8264_v63 = vsel %vm8242_vm4, %v5376_v57, 0.0 }
 0x295   :  { %v8263_v54 = vadd.f32 %v8262_v40, %v8261_v7  ;;  %v5324_v15 = vpop.f32.mrb[150].mxu0  ;;  %v5379_v23 = vpop.f32.mrb[150].mxu1 }
 0x296   :  { %v10158_v25 = vpop.f32.mrb[151].mxu0  ;;  %v10166_v24 = vpop.f32.mrb[151].mxu1 }
 0x297   :  { %v8265_v44 = vadd.f32 %v8264_v63, %v8263_v54 }
 0x29b   :  { %v5431_v13 = vpop.f32.mrb[152].mxu0  ;;  %v5486_v19 = vpop.f32.mrb[152].mxu1 }
 0x29c   :  { %v8266_v32 = vsel %vm8242_vm4, %v5431_v13, 0.0  ;;  %v10173_v31 = vpop.f32.mrb[153].mxu0  ;;  %v10181_v34 = vpop.f32.mrb[153].mxu1  ;;  %v8268_v42 = vsel %vm8242_vm4, %v5486_v19, 0.0 }
 0x29d   :  { %v8267_v37 = vadd.f32 %v8266_v32, %v8265_v44  ;;  %v5434_v41 = vpop.f32.mrb[154].mxu0  ;;  %v5489_v29 = vpop.f32.mrb[154].mxu1 }
 0x29e   :  { %v10174_v12 = vpop.f32.mrb[155].mxu0  ;;  %v10182_v33 = vpop.f32.mrb[155].mxu1 }
 0x29f   :  { %v8269_v22 = vadd.f32 %v8268_v42, %v8267_v37 }
 0x2a3   :  { %v5541_v9 = vpop.f32.mrb[156].mxu0  ;;  %v5596_v43 = vpop.f32.mrb[156].mxu1 }
 0x2a4   :  { %v8270_v62 = vsel %vm8242_vm4, %v5541_v9, 0.0  ;;  %v10189_v45 = vpop.f32.mrb[157].mxu0  ;;  %v10197_v35 = vpop.f32.mrb[157].mxu1  ;;  %v8272_v47 = vsel %vm8242_vm4, %v5596_v43, 0.0 }
 0x2a5   :  { %v8271_v58 = vadd.f32 %v8270_v62, %v8269_v22  ;;  %v5544_v21 = vpop.f32.mrb[158].mxu0  ;;  %v5599_v17 = vpop.f32.mrb[158].mxu1 }
 0x2a6   :  { %v10190_v60 = vpop.f32.mrb[159].mxu0  ;;  %v10198_v30 = vpop.f32.mrb[159].mxu1 }
 0x2a7   :  { %v8273_v16 = vadd.f32 %v8272_v47, %v8271_v58 }
 0x2ab   :  { %v5651_v52 = vpop.f32.mrb[160].mxu0  ;;  %v5706_v55 = vpop.f32.mrb[160].mxu1 }
 0x2ac   :  { %v8274_v18 = vsel %vm8242_vm4, %v5651_v52, 0.0  ;;  %v10205_v39 = vpop.f32.mrb[161].mxu0  ;;  %v10213_v28 = vpop.f32.mrb[161].mxu1  ;;  %v8276_v48 = vsel %vm8242_vm4, %v5706_v55, 0.0 }
 0x2ad   :  { %v8275_v46 = vadd.f32 %v8274_v18, %v8273_v16  ;;  %v5654_v36 = vpop.f32.mrb[162].mxu0  ;;  %v5709_v0 = vpop.f32.mrb[162].mxu1 }
 0x2ae   :  { %v10206_v11 = vpop.f32.mrb[163].mxu0  ;;  %v10214_v8 = vpop.f32.mrb[163].mxu1 }
 0x2af   :  { %v8277_v2 = vadd.f32 %v8276_v48, %v8275_v46 }
 0x2b3   :  { %v5761_v61 = vpop.f32.mrb[164].mxu0  ;;  %v5816_v38 = vpop.f32.mrb[164].mxu1 }
 0x2b4   :  { %v8278_v3 = vsel %vm8242_vm4, %v5761_v61, 0.0  ;;  %v10221_v4 = vpop.f32.mrb[165].mxu0  ;;  %v10229_v27 = vpop.f32.mrb[165].mxu1  ;;  %v8280_v6 = vsel %vm8242_vm4, %v5816_v38, 0.0 }
 0x2b5   :  { %v8279_v5 = vadd.f32 %v8278_v3, %v8277_v2  ;;  %v5764_v53 = vpop.f32.mrb[166].mxu0  ;;  %v5819_v26 = vpop.f32.mrb[166].mxu1 }
 0x2b6   :  { %v10222_v56 = vpop.f32.mrb[167].mxu0  ;;  %v10230_v50 = vpop.f32.mrb[167].mxu1 }
 0x2b7   :  { %v8281_v49 = vadd.f32 %v8280_v6, %v8279_v5 }
 0x2bb   :  { %v5871_v10 = vpop.f32.mrb[168].mxu0  ;;  %v5926_v51 = vpop.f32.mrb[168].mxu1 }
 0x2bc   :  { %v8282_v7 = vsel %vm8242_vm4, %v5871_v10, 0.0  ;;  %v10237_v14 = vpop.f32.mrb[169].mxu0  ;;  %v10245_v57 = vpop.f32.mrb[169].mxu1  ;;  %v8284_v54 = vsel %vm8242_vm4, %v5926_v51, 0.0 }
 0x2bd   :  { %v8283_v40 = vadd.f32 %v8282_v7, %v8281_v49  ;;  %v5874_v20 = vpop.f32.mrb[170].mxu0  ;;  %v5929_v59 = vpop.f32.mrb[170].mxu1 }
 0x2be   :  { %v10238_v15 = vpop.f32.mrb[171].mxu0  ;;  %v10246_v23 = vpop.f32.mrb[171].mxu1 }
 0x2bf   :  { %v8285_v63 = vadd.f32 %v8284_v54, %v8283_v40  ;;  %v10920_v15 = vld [vmem:[%s13289_s7] sm:$0xff]  }
 0x2c0   :  { %v8396_v23 = vld [vmem:[%s13290_s8] sm:$0xf]  ;;  %10590 = vmatpush3.bf16.msra.mxu1 %v10920_v15 }
 0x2c1   :  { %10591 = vmatprep.subr.bf16.mxu1 %v10940_v1 }
 0x2c3   :  { %v5981_v25 = vpop.f32.mrb[172].mxu0  ;;  %v6036_v24 = vpop.f32.mrb[172].mxu1 }
 0x2c4   :  { %v8286_v44 = vsel %vm8242_vm4, %v5981_v25, 0.0  ;;  %v10253_v13 = vpop.f32.mrb[173].mxu0  ;;  %v10261_v19 = vpop.f32.mrb[173].mxu1  ;;  %v8288_v37 = vsel %vm8242_vm4, %v6036_v24, 0.0  ;;  %v8381_v24 = vld [vmem:[%s8380_s15] sm:$0x1] }
 0x2c5   :  { %v8287_v32 = vadd.f32 %v8286_v44, %v8285_v63  ;;  %v5984_v31 = vpop.f32.mrb[174].mxu0  ;;  %v6039_v34 = vpop.f32.mrb[174].mxu1  ;;  %v8384_v63 = vld [vmem:[%s8383_s29] sm:$0x1]  ;;  %v8403_v44 = vsel %vm8401_vm5, %v8396_v23, 0  ;;  %v10921_v19 = vld [vmem:[%s13289_s7 + $0x8] sm:$0xff]  }
 0x2c6   :  { %v10254_v41 = vpop.f32.mrb[175].mxu0  ;;  %v10262_v29 = vpop.f32.mrb[175].mxu1  ;;  %v8386_v25 = vrot.slane %v8384_v63, 7  ;;  %10584 = vmatpush3.bf16.msra.mxu0 %v8403_v44  ;;  %10592 = vmatpush3.bf16.msra.mxu1 %v10921_v19 }
 0x2c7   :  { %v8289_v42 = vadd.f32 %v8288_v37, %v8287_v32 }
 0x2c8   :  { %v8389_v13 = vsel %vm8388_vm6, %v8381_v24, %v8386_v25 }
 0x2c9   :  { %v8395_v31 = vpack.c.bf16 %v8389_v13, %v8389_v13 }
 0x2cb   :  { %v6091_v12 = vpop.f32.mrb[176].mxu0  ;;  %v6146_v33 = vpop.f32.mrb[176].mxu1  ;;  %10586 = vmatmul.mubr.msk.bf16.vlgmr.msra.gmra.mrb[0].mxu0 %vm8397_vm7, %v8395_v31 }
 0x2cc   :  { %v8290_v22 = vsel %vm8242_vm4, %v6091_v12, 0.0  ;;  %v10269_v9 = vpop.f32.mrb[177].mxu0  ;;  %v10277_v43 = vpop.f32.mrb[177].mxu1  ;;  %v8292_v58 = vsel %vm8242_vm4, %v6146_v33, 0.0 }
 0x2cd   :  { %v8291_v62 = vadd.f32 %v8290_v22, %v8289_v42  ;;  %v6094_v45 = vpop.f32.mrb[178].mxu0  ;;  %v6149_v35 = vpop.f32.mrb[178].mxu1 }
 0x2ce   :  { %v10270_v21 = vpop.f32.mrb[179].mxu0  ;;  %v10278_v17 = vpop.f32.mrb[179].mxu1 }
 0x2cf   :  { %v8293_v47 = vadd.f32 %v8292_v58, %v8291_v62 }
 0x2d3   :  { %v6201_v60 = vpop.f32.mrb[180].mxu0  ;;  %v6256_v30 = vpop.f32.mrb[180].mxu1 }
 0x2d4   :  { %v8294_v16 = vsel %vm8242_vm4, %v6201_v60, 0.0  ;;  %v10285_v52 = vpop.f32.mrb[181].mxu0  ;;  %v10293_v55 = vpop.f32.mrb[181].mxu1  ;;  %v8296_v46 = vsel %vm8242_vm4, %v6256_v30, 0.0 }
 0x2d5   :  { %v8295_v18 = vadd.f32 %v8294_v16, %v8293_v47  ;;  %v6204_v39 = vpop.f32.mrb[182].mxu0  ;;  %v6259_v28 = vpop.f32.mrb[182].mxu1 }
 0x2d6   :  { %v10286_v36 = vpop.f32.mrb[183].mxu0  ;;  %v10294_v0 = vpop.f32.mrb[183].mxu1 }
 0x2d7   :  { %v8297_v48 = vadd.f32 %v8296_v46, %v8295_v18 }
 0x2db   :  { %v6311_v11 = vpop.f32.mrb[184].mxu0  ;;  %v6366_v8 = vpop.f32.mrb[184].mxu1 }
 0x2dc   :  { %v8298_v2 = vsel %vm8242_vm4, %v6311_v11, 0.0  ;;  %v10301_v61 = vpop.f32.mrb[185].mxu0  ;;  %v10309_v38 = vpop.f32.mrb[185].mxu1  ;;  %v8300_v5 = vsel %vm8242_vm4, %v6366_v8, 0.0 }
 0x2dd   :  { %v8299_v3 = vadd.f32 %v8298_v2, %v8297_v48  ;;  %v6314_v4 = vpop.f32.mrb[186].mxu0  ;;  %v6369_v27 = vpop.f32.mrb[186].mxu1 }
 0x2de   :  { %v10302_v53 = vpop.f32.mrb[187].mxu0  ;;  %v10310_v26 = vpop.f32.mrb[187].mxu1 }
 0x2df   :  { %v8301_v6 = vadd.f32 %v8300_v5, %v8299_v3 }
 0x2e3   :  { %v6421_v56 = vpop.f32.mrb[188].mxu0  ;;  %v6476_v50 = vpop.f32.mrb[188].mxu1 }
 0x2e4   :  { %v8302_v49 = vsel %vm8242_vm4, %v6421_v56, 0.0  ;;  %v10317_v10 = vpop.f32.mrb[189].mxu0  ;;  %v10325_v51 = vpop.f32.mrb[189].mxu1  ;;  %v8304_v40 = vsel %vm8242_vm4, %v6476_v50, 0.0 }
 0x2e5   :  { %v8303_v7 = vadd.f32 %v8302_v49, %v8301_v6  ;;  %v6424_v14 = vpop.f32.mrb[190].mxu0  ;;  %v6479_v57 = vpop.f32.mrb[190].mxu1 }
 0x2e6   :  { %v10318_v20 = vpop.f32.mrb[191].mxu0  ;;  %v10326_v59 = vpop.f32.mrb[191].mxu1 }
 0x2e7   :  { %v8305_v54 = vadd.f32 %v8304_v40, %v8303_v7 }
 0x2eb   :  { %v6531_v32 = vpop.f32.mrb[192].mxu0  ;;  %v6586_v34 = vpop.f32.mrb[192].mxu1 }
 0x2ec   :  { %v8306_v37 = vsel %vm8242_vm4, %v6531_v32, 0.0  ;;  %v10333_v41 = vpop.f32.mrb[193].mxu0  ;;  %v10341_v29 = vpop.f32.mrb[193].mxu1  ;;  %v8308_v22 = vsel %vm8242_vm4, %v6586_v34, 0.0 }
 0x2ed   :  { %v8307_v42 = vadd.f32 %v8306_v37, %v8305_v54  ;;  %v6534_v12 = vpop.f32.mrb[194].mxu0  ;;  %v6589_v1 = vpop.f32.mrb[194].mxu1 }
 0x2ee   :  { %v10334_v33 = vpop.f32.mrb[195].mxu0  ;;  %v10342_v62 = vpop.f32.mrb[195].mxu1 }
 0x2ef   :  { %v8309_v9 = vadd.f32 %v8308_v22, %v8307_v42 }
 0x2f3   :  { %v6641_v43 = vpop.f32.mrb[196].mxu0  ;;  %v6696_v58 = vpop.f32.mrb[196].mxu1 }
 0x2f4   :  { %v8310_v45 = vsel %vm8242_vm4, %v6641_v43, 0.0  ;;  %v10349_v35 = vpop.f32.mrb[197].mxu0  ;;  %v10357_v47 = vpop.f32.mrb[197].mxu1  ;;  %v8312_v60 = vsel %vm8242_vm4, %v6696_v58, 0.0 }
 0x2f5   :  { %v8311_v21 = vadd.f32 %v8310_v45, %v8309_v9  ;;  %v6644_v17 = vpop.f32.mrb[198].mxu0  ;;  %v6699_v16 = vpop.f32.mrb[198].mxu1 }
 0x2f6   :  { %v10350_v30 = vpop.f32.mrb[199].mxu0  ;;  %v10358_v18 = vpop.f32.mrb[199].mxu1 }
 0x2f7   :  { %v8313_v52 = vadd.f32 %v8312_v60, %v8311_v21 }
 0x2fb   :  { %v6751_v55 = vpop.f32.mrb[200].mxu0  ;;  %v6806_v46 = vpop.f32.mrb[200].mxu1 }
 0x2fc   :  { %v8314_v39 = vsel %vm8242_vm4, %v6751_v55, 0.0  ;;  %v10365_v28 = vpop.f32.mrb[201].mxu0  ;;  %v10373_v48 = vpop.f32.mrb[201].mxu1  ;;  %v8316_v11 = vsel %vm8242_vm4, %v6806_v46, 0.0 }
 0x2fd   :  { %v8315_v36 = vadd.f32 %v8314_v39, %v8313_v52  ;;  %v6754_v0 = vpop.f32.mrb[202].mxu0  ;;  %v6809_v2 = vpop.f32.mrb[202].mxu1 }
 0x2fe   :  { %v10366_v8 = vpop.f32.mrb[203].mxu0  ;;  %v10374_v3 = vpop.f32.mrb[203].mxu1 }
 0x2ff   :  { %v8317_v61 = vadd.f32 %v8316_v11, %v8315_v36 }
 0x303   :  { %v6861_v38 = vpop.f32.mrb[204].mxu0  ;;  %v6916_v5 = vpop.f32.mrb[204].mxu1 }
 0x304   :  { %v8318_v4 = vsel %vm8242_vm4, %v6861_v38, 0.0  ;;  %v10381_v27 = vpop.f32.mrb[205].mxu0  ;;  %v10389_v6 = vpop.f32.mrb[205].mxu1  ;;  %v8320_v56 = vsel %vm8242_vm4, %v6916_v5, 0.0 }
 0x305   :  { %v8319_v53 = vadd.f32 %v8318_v4, %v8317_v61  ;;  %v6864_v26 = vpop.f32.mrb[206].mxu0  ;;  %v6919_v49 = vpop.f32.mrb[206].mxu1 }
 0x306   :  { %v10382_v50 = vpop.f32.mrb[207].mxu0  ;;  %v10390_v7 = vpop.f32.mrb[207].mxu1 }
 0x307   :  { %v8321_v10 = vadd.f32 %v8320_v56, %v8319_v53 }
 0x30b   :  { %v6971_v51 = vpop.f32.mrb[208].mxu0  ;;  %v7026_v40 = vpop.f32.mrb[208].mxu1 }
 0x30c   :  { %v8322_v14 = vsel %vm8242_vm4, %v6971_v51, 0.0  ;;  %v10397_v57 = vpop.f32.mrb[209].mxu0  ;;  %v10405_v54 = vpop.f32.mrb[209].mxu1  ;;  %v8324_v15 = vsel %vm8242_vm4, %v7026_v40, 0.0 }
 0x30d   :  { %v8323_v20 = vadd.f32 %v8322_v14, %v8321_v10  ;;  %v6974_v59 = vpop.f32.mrb[210].mxu0  ;;  %v7029_v63 = vpop.f32.mrb[210].mxu1 }
 0x30e   :  { %v10398_v23 = vpop.f32.mrb[211].mxu0  ;;  %v10406_v44 = vpop.f32.mrb[211].mxu1 }
 0x30f   :  { %v8325_v25 = vadd.f32 %v8324_v15, %v8323_v20 }
 0x313   :  { %v7081_v24 = vpop.f32.mrb[212].mxu0  ;;  %v7136_v32 = vpop.f32.mrb[212].mxu1 }
 0x314   :  { %v8326_v13 = vsel %vm8242_vm4, %v7081_v24, 0.0  ;;  %v10413_v19 = vpop.f32.mrb[213].mxu0  ;;  %v10421_v37 = vpop.f32.mrb[213].mxu1  ;;  %v8328_v41 = vsel %vm8242_vm4, %v7136_v32, 0.0 }
 0x315   :  { %v8327_v31 = vadd.f32 %v8326_v13, %v8325_v25  ;;  %v7084_v34 = vpop.f32.mrb[214].mxu0  ;;  %v7139_v42 = vpop.f32.mrb[214].mxu1 }
 0x316   :  { %v10414_v29 = vpop.f32.mrb[215].mxu0  ;;  %v10422_v22 = vpop.f32.mrb[215].mxu1 }
 0x317   :  { %v8329_v12 = vadd.f32 %v8328_v41, %v8327_v31 }
 0x31b   :  { %v7191_v1 = vpop.f32.mrb[216].mxu0  ;;  %v7246_v9 = vpop.f32.mrb[216].mxu1 }
 0x31c   :  { %v8330_v33 = vsel %vm8242_vm4, %v7191_v1, 0.0  ;;  %v10429_v62 = vpop.f32.mrb[217].mxu0  ;;  %v10437_v45 = vpop.f32.mrb[217].mxu1  ;;  %v8332_v35 = vsel %vm8242_vm4, %v7246_v9, 0.0 }
 0x31d   :  { %v8331_v43 = vadd.f32 %v8330_v33, %v8329_v12  ;;  %v7194_v58 = vpop.f32.mrb[218].mxu0  ;;  %v7249_v21 = vpop.f32.mrb[218].mxu1 }
 0x31e   :  { %v10430_v47 = vpop.f32.mrb[219].mxu0  ;;  %v10438_v60 = vpop.f32.mrb[219].mxu1 }
 0x31f   :  { %v8333_v17 = vadd.f32 %v8332_v35, %v8331_v43 }
 0x323   :  { %v7301_v16 = vpop.f32.mrb[220].mxu0  ;;  %v7356_v52 = vpop.f32.mrb[220].mxu1 }
 0x324   :  { %v8334_v30 = vsel %vm8242_vm4, %v7301_v16, 0.0  ;;  %v10445_v18 = vpop.f32.mrb[221].mxu0  ;;  %v10453_v39 = vpop.f32.mrb[221].mxu1  ;;  %v8336_v28 = vsel %vm8242_vm4, %v7356_v52, 0.0 }
 0x325   :  { %v8335_v55 = vadd.f32 %v8334_v30, %v8333_v17  ;;  %v7304_v46 = vpop.f32.mrb[222].mxu0  ;;  %v7359_v36 = vpop.f32.mrb[222].mxu1 }
 0x326   :  { %v10446_v48 = vpop.f32.mrb[223].mxu0  ;;  %v10454_v11 = vpop.f32.mrb[223].mxu1 }
 0x327   :  { %v8337_v0 = vadd.f32 %v8336_v28, %v8335_v55 }
 0x32b   :  { %v7411_v2 = vpop.f32.mrb[224].mxu0  ;;  %v7466_v61 = vpop.f32.mrb[224].mxu1 }
 0x32c   :  { %v8338_v8 = vsel %vm8242_vm4, %v7411_v2, 0.0  ;;  %v10461_v3 = vpop.f32.mrb[225].mxu0  ;;  %v10469_v4 = vpop.f32.mrb[225].mxu1  ;;  %v8340_v27 = vsel %vm8242_vm4, %v7466_v61, 0.0 }
 0x32d   :  { %v8339_v38 = vadd.f32 %v8338_v8, %v8337_v0  ;;  %v7414_v5 = vpop.f32.mrb[226].mxu0  ;;  %v7469_v53 = vpop.f32.mrb[226].mxu1 }
 0x32e   :  { %v10462_v6 = vpop.f32.mrb[227].mxu0  ;;  %v10470_v56 = vpop.f32.mrb[227].mxu1 }
 0x32f   :  { %v8341_v26 = vadd.f32 %v8340_v27, %v8339_v38 }
 0x333   :  { %v7521_v49 = vpop.f32.mrb[228].mxu0  ;;  %v7576_v10 = vpop.f32.mrb[228].mxu1 }
 0x334   :  { %v8342_v50 = vsel %vm8242_vm4, %v7521_v49, 0.0  ;;  %v10477_v7 = vpop.f32.mrb[229].mxu0  ;;  %v10485_v14 = vpop.f32.mrb[229].mxu1  ;;  %v8344_v57 = vsel %vm8242_vm4, %v7576_v10, 0.0 }
 0x335   :  { %v8343_v51 = vadd.f32 %v8342_v50, %v8341_v26  ;;  %v7524_v40 = vpop.f32.mrb[230].mxu0  ;;  %v7579_v20 = vpop.f32.mrb[230].mxu1 }
 0x336   :  { %v10478_v54 = vpop.f32.mrb[231].mxu0  ;;  %v10486_v15 = vpop.f32.mrb[231].mxu1 }
 0x337   :  { %v8345_v59 = vadd.f32 %v8344_v57, %v8343_v51 }
 0x33b   :  { %v7631_v63 = vpop.f32.mrb[232].mxu0  ;;  %v7686_v25 = vpop.f32.mrb[232].mxu1 }
 0x33c   :  { %v8346_v23 = vsel %vm8242_vm4, %v7631_v63, 0.0  ;;  %v10493_v44 = vpop.f32.mrb[233].mxu0  ;;  %v10501_v13 = vpop.f32.mrb[233].mxu1  ;;  %v8348_v19 = vsel %vm8242_vm4, %v7686_v25, 0.0 }
 0x33d   :  { %v8347_v24 = vadd.f32 %v8346_v23, %v8345_v59  ;;  %v7634_v32 = vpop.f32.mrb[234].mxu0  ;;  %v7689_v31 = vpop.f32.mrb[234].mxu1 }
 0x33e   :  { %v10494_v37 = vpop.f32.mrb[235].mxu0  ;;  %v10502_v41 = vpop.f32.mrb[235].mxu1 }
 0x33f   :  { %v8349_v34 = vadd.f32 %v8348_v19, %v8347_v24  ;;  %v8971_v24 = vld [vmem:[%s13287_s5] ss:$0 sm:$0xff] }
 0x343   :  { %v7741_v42 = vpop.f32.mrb[236].mxu0  ;;  %v7796_v12 = vpop.f32.mrb[236].mxu1 }
 0x344   :  { %v8350_v29 = vsel %vm8242_vm4, %v7741_v42, 0.0  ;;  %v10509_v22 = vpop.f32.mrb[237].mxu0  ;;  %v10517_v33 = vpop.f32.mrb[237].mxu1  ;;  %v8352_v62 = vsel %vm8242_vm4, %v7796_v12, 0.0 }
 0x345   :  { %v8351_v1 = vadd.f32 %v8350_v29, %v8349_v34  ;;  %v7744_v9 = vpop.f32.mrb[238].mxu0  ;;  %v7799_v43 = vpop.f32.mrb[238].mxu1  ;;  %v8977_v33 = vld [vmem:[%s13291_s9] ss:$0 sm:$0xff] }
 0x346   :  { %v10510_v45 = vpop.f32.mrb[239].mxu0  ;;  %v10518_v35 = vpop.f32.mrb[239].mxu1  ;;  %v8508_v43 = vlaneseq }
 0x347   :  { %v8353_v58 = vadd.f32 %v8352_v62, %v8351_v1 }
 0x34b   :  { %v7851_v21 = vpop.f32.mrb[240].mxu0  ;;  %v7906_v17 = vpop.f32.mrb[240].mxu1 }
 0x34c   :  { %v8354_v47 = vsel %vm8242_vm4, %v7851_v21, 0.0  ;;  %v10525_v60 = vpop.f32.mrb[241].mxu0  ;;  %v10533_v30 = vpop.f32.mrb[241].mxu1  ;;  %v8356_v18 = vsel %vm8242_vm4, %v7906_v17, 0.0  ;;  %v8509_v21 = vand.u32 127, %v8508_v43 }
 0x34d   :  { %v8355_v16 = vadd.f32 %v8354_v47, %v8353_v58  ;;  %v7854_v52 = vpop.f32.mrb[242].mxu0  ;;  %v7909_v55 = vpop.f32.mrb[242].mxu1 }
 0x34e   :  { %v10526_v39 = vpop.f32.mrb[243].mxu0  ;;  %v10534_v28 = vpop.f32.mrb[243].mxu1  ;;  %vm8510_vm8 = vcmp.ge.s32.totalorder %v8509_v21, 4  ;;  %vm8511_vm9 = vcmp.lt.s32.totalorder %v8509_v21, 7 }
 0x34f   :  { %v8357_v46 = vadd.f32 %v8356_v18, %v8355_v16  ;;  %vm8512_vm10 = vmand %vm8510_vm8, %vm8511_vm9 }
 0x353   :  { %v7961_v36 = vpop.f32.mrb[244].mxu0  ;;  %v8016_v0 = vpop.f32.mrb[244].mxu1 }
 0x354   :  { %v8358_v48 = vsel %vm8242_vm4, %v7961_v36, 0.0  ;;  %v10541_v11 = vpop.f32.mrb[245].mxu0  ;;  %v10549_v8 = vpop.f32.mrb[245].mxu1  ;;  %v8360_v3 = vsel %vm8242_vm4, %v8016_v0, 0.0 }
 0x355   :  { %v8359_v2 = vadd.f32 %v8358_v48, %v8357_v46  ;;  %v7964_v61 = vpop.f32.mrb[246].mxu0  ;;  %v8019_v38 = vpop.f32.mrb[246].mxu1 }
 0x356   :  { %v10542_v4 = vpop.f32.mrb[247].mxu0  ;;  %v10550_v27 = vpop.f32.mrb[247].mxu1 }
 0x357   :  { %v8361_v5 = vadd.f32 %v8360_v3, %v8359_v2 }
 0x35b   :  { %v8071_v53 = vpop.f32.mrb[248].mxu0  ;;  %v8126_v26 = vpop.f32.mrb[248].mxu1 }
 0x35c   :  { %v8362_v6 = vsel %vm8242_vm4, %v8071_v53, 0.0  ;;  %v10557_v56 = vpop.f32.mrb[249].mxu0  ;;  %v10565_v50 = vpop.f32.mrb[249].mxu1  ;;  %v8364_v7 = vsel %vm8242_vm4, %v8126_v26, 0.0 }
 0x35d   :  { %v8363_v49 = vadd.f32 %v8362_v6, %v8361_v5  ;;  %v8074_v10 = vpop.f32.mrb[250].mxu0  ;;  %v8129_v51 = vpop.f32.mrb[250].mxu1 }
 0x35e   :  { %v10558_v14 = vpop.f32.mrb[251].mxu0  ;;  %v10566_v57 = vpop.f32.mrb[251].mxu1 }
 0x35f   :  { %v8365_v40 = vadd.f32 %v8364_v7, %v8363_v49 }
 0x363   :  { %v8181_v20 = vpop.f32.mrb[252].mxu0  ;;  %v8236_v59 = vpop.f32.mrb[252].mxu1 }
 0x364   :  { %v8366_v54 = vsel %vm8242_vm4, %v8181_v20, 0.0  ;;  %v10573_v15 = vpop.f32.mrb[253].mxu0  ;;  %v10581_v23 = vpop.f32.mrb[253].mxu1  ;;  %v8368_v44 = vsel %vm8242_vm4, %v8236_v59, 0.0 }
 0x365   :  { %v8367_v63 = vadd.f32 %v8366_v54, %v8365_v40  ;;  %v8184_v25 = vpop.f32.mrb[254].mxu0  ;;  %v8239_v13 = vpop.f32.mrb[254].mxu1 }
 0x366   :  { %v10574_v32 = vpop.f32.mrb[255].mxu0  ;;  %v10582_v31 = vpop.f32.mrb[255].mxu1 }
 0x367   :  { %v8369_v19 = vadd.f32 %v8368_v44, %v8367_v63 }
 0x369   :  { %v8377_v37 = vadd.f32 %v8971_v24, %v8369_v19 }
 0x36b   :  { %v8378_v34 = vmax.f32 %v8377_v37, 0.0 }
 0x36d   :  { %v8390_v41 = vpack.c.bf16 %v8378_v34, %v8378_v34 }
 0x36f   :  { %10594 = vmatmul.mubr.msk.bf16.vlgmr.msra.gmra.mrb[0].mxu1 %vm4733_vm3, %v8390_v41 }
 0x39e   :  { %v8439_v42 = vpop.f32.mrb[0].mxu0 }
 0x39f   :  { %v10587_v29 = vpop.f32.mrb[1].mxu0 }
 0x3a0   :  { %v8442_v12 = vpop.f32.mrb[2].mxu0 }
 0x3a1   :  { %v10588_v22 = vpop.f32.mrb[3].mxu0 }
 0x442   :  { %v8494_v1 = vpop.f32.mrb[0].mxu1 }
 0x443   :  { %v8495_v9 = vadd.f32 %v8494_v1, %v8439_v42  ;;  %v10595_v62 = vpop.f32.mrb[1].mxu1 }
 0x444   :  { %v8497_v45 = vpop.f32.mrb[2].mxu1 }
 0x445   :  { %v8507_v58 = vadd.f32 %v8977_v33, %v8495_v9  ;;  %v10596_v35 = vpop.f32.mrb[3].mxu1 }
 0x447   :  { %10922 = vtanh.f32 %v8507_v58 }
 0x451   :  { %v10923_v47 = vpop.eup %10922 }
 0x452   :  { %v8514_v17 = vsel %vm8512_vm10, %v10923_v47, %v8507_v58 }
 0x453   :  { %8515 = vst [vmem:[%s13292_s10] sm:$0x3] %v8514_v17 }

</bundles_post_ra>
